<compile_context>
chip_gen: v7x
topology: tpu7x:2x2x1
jax: 0.10.0
libtpu: 0.0.40
codegen_flags: <defaults>
</compile_context>

<pallas_src>
import functools

import jax
import jax.numpy as jnp
from jax.experimental import pallas as pl
from jax.experimental.pallas import tpu as pltpu


def _round_up(x, m):
    return (x + m - 1) // m * m


# ---------------------------------------------------------------------------
# Pallas kernel: fused bf16 GEMM (f32 accum) + per-column scale/bias + act
# ---------------------------------------------------------------------------
def _gemm_bn_act_kernel(a_ref, b_ref, s_ref, c_ref, o_ref, *, relu, clamp):
    # a_ref: (tm, K) bf16   b_ref: (K, tn) bf16
    # s_ref: (1, tn) f32    c_ref: (1, tn) f32
    acc = jnp.dot(a_ref[...], b_ref[...], preferred_element_type=jnp.float32)
    y = acc * s_ref[...] + c_ref[...]
    if relu:
        y = jnp.maximum(y, 0.0)
    if clamp:
        y = jnp.clip(y, -1.0, 1.0)
    o_ref[...] = y.astype(o_ref.dtype)


def _gemm_bn_act(a, b, scale, bias, relu, clamp):
    """out = act(scale * (a @ b) + bias), per-column scale/bias.

    a: (M, K) f32, b: (K, Ncols) f32, scale/bias: (Ncols,) f32.
    Returns (M, Ncols) f32.  All FLOPs run on the MXU in bf16 / f32-accum.
    """
    M, K = a.shape
    Kb, ncols = b.shape
    assert K == Kb

    # ---- column tiling: lane-dense, multiple of 128, VMEM-bounded --------
    tn = min(_round_up(ncols, 128), 2048)
    ncols_p = _round_up(ncols, tn)
    if ncols_p != ncols:
        b = jnp.pad(b, ((0, 0), (0, ncols_p - ncols)))
        scale = jnp.pad(scale, (0, ncols_p - ncols))
        bias = jnp.pad(bias, (0, ncols_p - ncols))

    a_bf = a.astype(jnp.bfloat16)
    b_bf = b.astype(jnp.bfloat16)

    # ---- row tile from a VMEM budget (v7x has only 64 MiB VMEM) ----------
    budget = 24 * 1024 * 1024
    fixed = 2 * (K * tn * 2 + 2 * tn * 4)        # double-buffered B tile + scale/bias
    per_row = 2 * (K * 2 + tn * 4)               # double-buffered A row (bf16) + out row (f32)
    tm = (budget - fixed) // per_row
    tm = max(16, min(1024, (tm // 16) * 16))
    # keep >= 2 row steps when M is big enough so both TensorCores get work
    half = _round_up((M + 1) // 2, 16)
    tm = max(16, min(tm, half))

    Mp = _round_up(M, tm)
    if Mp != M:
        a_bf = jnp.pad(a_bf, ((0, Mp - M), (0, 0)))

    grid = (Mp // tm, ncols_p // tn)
    kernel = functools.partial(_gemm_bn_act_kernel, relu=relu, clamp=clamp)

    out = pl.pallas_call(
        kernel,
        out_shape=jax.ShapeDtypeStruct((Mp, ncols_p), jnp.float32),
        grid=grid,
        in_specs=[
            pl.BlockSpec((tm, K), lambda i, j: (i, 0)),
            pl.BlockSpec((K, tn), lambda i, j: (0, j)),
            pl.BlockSpec((1, tn), lambda i, j: (0, j)),
            pl.BlockSpec((1, tn), lambda i, j: (0, j)),
        ],
        out_specs=pl.BlockSpec((tm, tn), lambda i, j: (i, j)),
        compiler_params=pltpu.CompilerParams(
            dimension_semantics=("parallel", "parallel"),
            vmem_limit_bytes=48 * 1024 * 1024,
        ),
        cost_estimate=pl.CostEstimate(
            flops=2 * Mp * K * ncols_p,
            transcendentals=0,
            bytes_accessed=(Mp * K * 2 * (ncols_p // tn)
                            + K * ncols_p * 2 * (Mp // tm)
                            + Mp * ncols_p * 4),
        ),
    )(a_bf, b_bf, scale.reshape(1, -1), bias.reshape(1, -1))

    return out[:M, :ncols]


# ---------------------------------------------------------------------------
# col2im for ConvTranspose2d(k=4, stride=2, pad=1): pure layout glue in XLA.
# y[n, i, j, kh, kw, c] contributes to out[n, 2i-1+kh, 2j-1+kw, c].
# Each output pixel receives exactly 4 contributions (2 taps per spatial dim).
# ---------------------------------------------------------------------------
def _col2im_stride2(y):
    N, H, W, _, _, C = y.shape
    yp = jnp.pad(y, ((0, 0), (1, 1), (1, 1), (0, 0), (0, 0), (0, 0)))
    # phase (parity) -> ((padded-offset, kernel tap), ...)
    taps = {0: ((1, 1), (0, 3)), 1: ((2, 0), (1, 2))}
    rows = []
    for r in (0, 1):
        cols = []
        for s in (0, 1):
            acc = 0.0
            for (ro, kh) in taps[r]:
                for (co, kw) in taps[s]:
                    acc = acc + yp[:, ro:ro + H, co:co + W, kh, kw, :]
            cols.append(acc)
        rows.append(jnp.stack(cols, axis=3))     # (N, H, W, 2, C)  [n, m, w, s, c]
    out = jnp.stack(rows, axis=2)                # (N, H, 2, W, 2, C) [n, m, r, w, s, c]
    return out.reshape(N, 2 * H, 2 * W, C)


# ---------------------------------------------------------------------------
# ConvTranspose2d(4, 2, 1) + folded BN + activation, weight-stationary GEMM
# ---------------------------------------------------------------------------
def conv_transpose2d_s2_bn_act(x, w, scale, bias, relu, clamp):
    """x: (N, H, W, Cin) f32.  w: (Cin, Cout, 4, 4) — PyTorch ConvTranspose2d layout."""
    N, H, W, cin = x.shape
    cout = w.shape[1]

    # GEMM columns ordered (kh, kw, cout); BN scale folds per-column (linear).
    wmat = jnp.transpose(w, (0, 2, 3, 1)).reshape(cin, 16 * cout)
    scale_cols = jnp.tile(scale, 16)
    zero_cols = jnp.zeros((16 * cout,), jnp.float32)

    a = x.reshape(N * H * W, cin)
    y = _gemm_bn_act(a, wmat, scale_cols, zero_cols, relu=False, clamp=False)
    y = y.reshape(N, H, W, 4, 4, cout)

    # col2im + bias + activation (f32, fused by XLA with the shifted adds).
    out = _col2im_stride2(y) + bias.reshape(1, 1, 1, cout)
    if relu:
        out = jnp.maximum(out, 0.0)
    if clamp:
        out = jnp.clip(out, -1.0, 1.0)
    return out


# ---------------------------------------------------------------------------
# Parameter initialization (deterministic, DCGAN-style)
# ---------------------------------------------------------------------------
def init_params(key, nz, nc, ngf, num_classes):
    eps = 1e-5

    def convT_w(k, cin, cout):
        return 0.02 * jax.random.normal(k, (cin, cout, 4, 4), jnp.float32)

    def bn_folded(k, c):
        gamma = 1.0 + 0.02 * jax.random.normal(k, (c,), jnp.float32)
        beta = jnp.zeros((c,), jnp.float32)
        running_mean = jnp.zeros((c,), jnp.float32)
        running_var = jnp.ones((c,), jnp.float32)
        s = gamma / jnp.sqrt(running_var + eps)
        b = beta - running_mean * s
        return s, b

    keys = jax.random.split(key, 14)
    p = {}
    p["w_noise"] = convT_w(keys[0], nz, ngf * 8)
    p["s_noise"], p["b_noise"] = bn_folded(keys[1], ngf * 8)
    p["w_label"] = convT_w(keys[2], num_classes, ngf * 8)
    p["s_label"], p["b_label"] = bn_folded(keys[3], ngf * 8)

    chans = [ngf * 16, ngf * 8, ngf * 4, ngf * 2, ngf]
    for i in range(4):
        p[f"w_m{i}"] = convT_w(keys[4 + 2 * i], chans[i], chans[i + 1])
        p[f"s_m{i}"], p[f"b_m{i}"] = bn_folded(keys[5 + 2 * i], chans[i + 1])
    p["w_m4"] = convT_w(keys[12], ngf, nc)  # final layer: no BN
    return p


# ---------------------------------------------------------------------------
# Generator forward (mirrors the PyTorch module)
# ---------------------------------------------------------------------------
def generator_forward(params, z_nchw, label_nchw):
    N, nz = z_nchw.shape[0], z_nchw.shape[1]
    ncls = label_nchw.shape[1]
    c8 = params["w_noise"].shape[1]

    # conv_noise / conv_label: ConvT(4, s=1, p=0) on a 1x1 input is a pure
    # GEMM producing (N, 4, 4, c8).  Fuse both + the channel concat into ONE
    # GEMM with a block-diagonal weight; output columns ordered (kh, kw, c).
    z = z_nchw.reshape(N, nz)
    lbl = label_nchw.reshape(N, ncls)
    wn = jnp.transpose(params["w_noise"], (0, 2, 3, 1))   # (nz, 4, 4, c8)
    wl = jnp.transpose(params["w_label"], (0, 2, 3, 1))   # (ncls, 4, 4, c8)
    top = jnp.concatenate([wn, jnp.zeros_like(wn)], axis=-1)
    bot = jnp.concatenate([jnp.zeros_like(wl), wl], axis=-1)
    wc = jnp.concatenate([top, bot], axis=0).reshape(nz + ncls, 16 * 2 * c8)
    s_cols = jnp.tile(jnp.concatenate([params["s_noise"], params["s_label"]]), 16)
    b_cols = jnp.tile(jnp.concatenate([params["b_noise"], params["b_label"]]), 16)

    a0 = jnp.concatenate([z, lbl], axis=1)
    h = _gemm_bn_act(a0, wc, s_cols, b_cols, relu=True, clamp=False)
    h = h.reshape(N, 4, 4, 2 * c8)   # == torch.cat([x, y], dim=1) in NHWC

    # main stack: 4x (ConvT(4, s=2, p=1) + BN + ReLU)
    for i in range(4):
        h = conv_transpose2d_s2_bn_act(h, params[f"w_m{i}"], params[f"s_m{i}"],
                                       params[f"b_m{i}"], relu=True, clamp=False)

    # final ConvT (no BN / no ReLU) + clamp(-1, 1); gaussian_filter is None here
    nc_out = params["w_m4"].shape[1]
    h = conv_transpose2d_s2_bn_act(h, params["w_m4"],
                                   jnp.ones((nc_out,), jnp.float32),
                                   jnp.zeros((nc_out,), jnp.float32),
                                   relu=False, clamp=True)

    # NHWC -> NCHW (PyTorch output convention)
    return jnp.transpose(h, (0, 3, 1, 2))


if __name__ == "__main__":
    nz, nc, ngf, num_classes, batch = 8, 3, 8, 4, 2

    key = jax.random.PRNGKey(0)
    kp, kz = jax.random.split(key)
    params = init_params(kp, nz, nc, ngf, num_classes)

    z = jax.random.normal(kz, (batch, nz, 1, 1), jnp.float32)
    labels = jnp.array([0, 1], dtype=jnp.int32)
    label = jax.nn.one_hot(labels, num_classes, dtype=jnp.float32).reshape(
        batch, num_classes, 1, 1)

    out = jax.jit(generator_forward)(params, z, label)
    out = jax.block_until_ready(out)

    assert out.shape == (batch, nc, 128, 128), out.shape
    assert bool(jnp.all(out >= -1.0)) and bool(jnp.all(out <= 1.0))
    print("KERNEL_OK")
</pallas_src>

<mosaic_0001>
module attributes {stable_mosaic.version = 11 : i64} {
  func.func @_gemm_bn_act_kernel(%arg0: i32, %arg1: i32, %arg2: memref<16x12xbf16, #tpu.memory_space<vmem>>, %arg3: memref<12x2048xbf16, #tpu.memory_space<vmem>>, %arg4: memref<1x2048xf32, #tpu.memory_space<vmem>>, %arg5: memref<1x2048xf32, #tpu.memory_space<vmem>>, %arg6: memref<16x2048xf32, #tpu.memory_space<vmem>>) attributes {dimension_semantics = [#tpu.dimension_semantics<parallel>, #tpu.dimension_semantics<parallel>], iteration_bounds = array<i64: 1, 1>, scalar_prefetch = 0 : i64, scratch_operands = 0 : i64, tpu.core_type = #tpu.core_type<tc>, window_params = [{transform_indices = @transform_0, window_bounds = array<i64: 16, 12>}, {transform_indices = @transform_1, window_bounds = array<i64: 12, 2048>}, {transform_indices = @transform_2, window_bounds = array<i64: 1, 2048>}, {transform_indices = @transform_3, window_bounds = array<i64: 1, 2048>}, {transform_indices = @transform_4, window_bounds = array<i64: 16, 2048>}]} {
    %c0 = arith.constant 0 : index
    %c0_0 = arith.constant 0 : index
    %0 = vector.load %arg2[%c0, %c0_0] : memref<16x12xbf16, #tpu.memory_space<vmem>>, vector<16x12xbf16>
    %c0_1 = arith.constant 0 : index
    %c0_2 = arith.constant 0 : index
    %1 = vector.load %arg3[%c0_1, %c0_2] : memref<12x2048xbf16, #tpu.memory_space<vmem>>, vector<12x2048xbf16>
    %cst = arith.constant dense<0.000000e+00> : vector<16x2048xf32>
    %2 = tpu.matmul %0, %1, %cst {dimension_numbers = #tpu.dot_dimension_numbers<[1], [0], [0], [1], [0, 0, 1, 1], [], []>} : vector<16x12xbf16>, vector<12x2048xbf16>, vector<16x2048xf32> -> vector<16x2048xf32>
    %c0_3 = arith.constant 0 : index
    %c0_4 = arith.constant 0 : index
    %3 = vector.load %arg4[%c0_3, %c0_4] : memref<1x2048xf32, #tpu.memory_space<vmem>>, vector<1x2048xf32>
    %4 = vector.broadcast %3 : vector<1x2048xf32> to vector<16x2048xf32>
    %5 = arith.mulf %2, %4 : vector<16x2048xf32>
    %c0_5 = arith.constant 0 : index
    %c0_6 = arith.constant 0 : index
    %6 = vector.load %arg5[%c0_5, %c0_6] : memref<1x2048xf32, #tpu.memory_space<vmem>>, vector<1x2048xf32>
    %7 = vector.broadcast %6 : vector<1x2048xf32> to vector<16x2048xf32>
    %8 = arith.addf %5, %7 : vector<16x2048xf32>
    %cst_7 = arith.constant 0.000000e+00 : f32
    %9 = vector.broadcast %cst_7 : f32 to vector<16x2048xf32>
    %10 = arith.maximumf %8, %9 : vector<16x2048xf32>
    %c0_8 = arith.constant 0 : index
    %c0_9 = arith.constant 0 : index
    %11 = vector.load %arg6[%c0_8, %c0_9] : memref<16x2048xf32, #tpu.memory_space<vmem>>, vector<16x2048xf32>
    tpu.vector_store %arg6[%c0_8, %c0_9], %10 {strides = array<i32>} : memref<16x2048xf32, #tpu.memory_space<vmem>>, vector<16x2048xf32>,
    return
  }
  func.func @transform_0(%arg0: i32, %arg1: i32) -> (i32, i32) {
    %c0_i32 = arith.constant 0 : i32
    %c0_i32_0 = arith.constant 0 : i32
    return %arg0, %c0_i32 : i32, i32
  }
  func.func @transform_1(%arg0: i32, %arg1: i32) -> (i32, i32) {
    %c0_i32 = arith.constant 0 : i32
    %c0_i32_0 = arith.constant 0 : i32
    return %c0_i32, %arg1 : i32, i32
  }
  func.func @transform_2(%arg0: i32, %arg1: i32) -> (i32, i32) {
    %c0_i32 = arith.constant 0 : i32
    %c0_i32_0 = arith.constant 0 : i32
    return %c0_i32, %arg1 : i32, i32
  }
  func.func @transform_3(%arg0: i32, %arg1: i32) -> (i32, i32) {
    %c0_i32 = arith.constant 0 : i32
    %c0_i32_0 = arith.constant 0 : i32
    return %c0_i32, %arg1 : i32, i32
  }
  func.func @transform_4(%arg0: i32, %arg1: i32) -> (i32, i32) {
    %c0_i32 = arith.constant 0 : i32
    return %arg0, %arg1 : i32, i32
  }
}

module attributes {stable_mosaic.version = 11 : i64} {
  func.func @_gemm_bn_act_kernel(%arg0: i32, %arg1: i32, %arg2: memref<16x128xbf16, #tpu.memory_space<vmem>>, %arg3: memref<128x1024xbf16, #tpu.memory_space<vmem>>, %arg4: memref<1x1024xf32, #tpu.memory_space<vmem>>, %arg5: memref<1x1024xf32, #tpu.memory_space<vmem>>, %arg6: memref<16x1024xf32, #tpu.memory_space<vmem>>) attributes {dimension_semantics = [#tpu.dimension_semantics<parallel>, #tpu.dimension_semantics<parallel>], iteration_bounds = array<i64: 2, 1>, scalar_prefetch = 0 : i64, scratch_operands = 0 : i64, tpu.core_type = #tpu.core_type<tc>, window_params = [{transform_indices = @transform_0, window_bounds = array<i64: 16, 128>}, {transform_indices = @transform_1, window_bounds = array<i64: 128, 1024>}, {transform_indices = @transform_2, window_bounds = array<i64: 1, 1024>}, {transform_indices = @transform_3, window_bounds = array<i64: 1, 1024>}, {transform_indices = @transform_4, window_bounds = array<i64: 16, 1024>}]} {
    %c0 = arith.constant 0 : index
    %c0_0 = arith.constant 0 : index
    %0 = vector.load %arg2[%c0, %c0_0] : memref<16x128xbf16, #tpu.memory_space<vmem>>, vector<16x128xbf16>
    %c0_1 = arith.constant 0 : index
    %c0_2 = arith.constant 0 : index
    %1 = vector.load %arg3[%c0_1, %c0_2] : memref<128x1024xbf16, #tpu.memory_space<vmem>>, vector<128x1024xbf16>
    %cst = arith.constant dense<0.000000e+00> : vector<16x1024xf32>
    %2 = tpu.matmul %0, %1, %cst {dimension_numbers = #tpu.dot_dimension_numbers<[1], [0], [0], [1], [0, 0, 1, 1], [], []>} : vector<16x128xbf16>, vector<128x1024xbf16>, vector<16x1024xf32> -> vector<16x1024xf32>
    %c0_3 = arith.constant 0 : index
    %c0_4 = arith.constant 0 : index
    %3 = vector.load %arg4[%c0_3, %c0_4] : memref<1x1024xf32, #tpu.memory_space<vmem>>, vector<1x1024xf32>
    %4 = vector.broadcast %3 : vector<1x1024xf32> to vector<16x1024xf32>
    %5 = arith.mulf %2, %4 : vector<16x1024xf32>
    %c0_5 = arith.constant 0 : index
    %c0_6 = arith.constant 0 : index
    %6 = vector.load %arg5[%c0_5, %c0_6] : memref<1x1024xf32, #tpu.memory_space<vmem>>, vector<1x1024xf32>
    %7 = vector.broadcast %6 : vector<1x1024xf32> to vector<16x1024xf32>
    %8 = arith.addf %5, %7 : vector<16x1024xf32>
    %c0_7 = arith.constant 0 : index
    %c0_8 = arith.constant 0 : index
    %9 = vector.load %arg6[%c0_7, %c0_8] : memref<16x1024xf32, #tpu.memory_space<vmem>>, vector<16x1024xf32>
    tpu.vector_store %arg6[%c0_7, %c0_8], %8 {strides = array<i32>} : memref<16x1024xf32, #tpu.memory_space<vmem>>, vector<16x1024xf32>,
    return
  }
  func.func @transform_0(%arg0: i32, %arg1: i32) -> (i32, i32) {
    %c0_i32 = arith.constant 0 : i32
    %c0_i32_0 = arith.constant 0 : i32
    return %arg0, %c0_i32 : i32, i32
  }
  func.func @transform_1(%arg0: i32, %arg1: i32) -> (i32, i32) {
    %c0_i32 = arith.constant 0 : i32
    %c0_i32_0 = arith.constant 0 : i32
    return %c0_i32, %arg1 : i32, i32
  }
  func.func @transform_2(%arg0: i32, %arg1: i32) -> (i32, i32) {
    %c0_i32 = arith.constant 0 : i32
    %c0_i32_0 = arith.constant 0 : i32
    return %c0_i32, %arg1 : i32, i32
  }
  func.func @transform_3(%arg0: i32, %arg1: i32) -> (i32, i32) {
    %c0_i32 = arith.constant 0 : i32
    %c0_i32_0 = arith.constant 0 : i32
    return %c0_i32, %arg1 : i32, i32
  }
  func.func @transform_4(%arg0: i32, %arg1: i32) -> (i32, i32) {
    %c0_i32 = arith.constant 0 : i32
    return %arg0, %arg1 : i32, i32
  }
}

module attributes {stable_mosaic.version = 11 : i64} {
  func.func @_gemm_bn_act_kernel(%arg0: i32, %arg1: i32, %arg2: memref<64x64xbf16, #tpu.memory_space<vmem>>, %arg3: memref<64x512xbf16, #tpu.memory_space<vmem>>, %arg4: memref<1x512xf32, #tpu.memory_space<vmem>>, %arg5: memref<1x512xf32, #tpu.memory_space<vmem>>, %arg6: memref<64x512xf32, #tpu.memory_space<vmem>>) attributes {dimension_semantics = [#tpu.dimension_semantics<parallel>, #tpu.dimension_semantics<parallel>], iteration_bounds = array<i64: 2, 1>, scalar_prefetch = 0 : i64, scratch_operands = 0 : i64, tpu.core_type = #tpu.core_type<tc>, window_params = [{transform_indices = @transform_0, window_bounds = array<i64: 64, 64>}, {transform_indices = @transform_1, window_bounds = array<i64: 64, 512>}, {transform_indices = @transform_2, window_bounds = array<i64: 1, 512>}, {transform_indices = @transform_3, window_bounds = array<i64: 1, 512>}, {transform_indices = @transform_4, window_bounds = array<i64: 64, 512>}]} {
    %c0 = arith.constant 0 : index
    %c0_0 = arith.constant 0 : index
    %0 = vector.load %arg2[%c0, %c0_0] : memref<64x64xbf16, #tpu.memory_space<vmem>>, vector<64x64xbf16>
    %c0_1 = arith.constant 0 : index
    %c0_2 = arith.constant 0 : index
    %1 = vector.load %arg3[%c0_1, %c0_2] : memref<64x512xbf16, #tpu.memory_space<vmem>>, vector<64x512xbf16>
    %cst = arith.constant dense<0.000000e+00> : vector<64x512xf32>
    %2 = tpu.matmul %0, %1, %cst {dimension_numbers = #tpu.dot_dimension_numbers<[1], [0], [0], [1], [0, 0, 1, 1], [], []>} : vector<64x64xbf16>, vector<64x512xbf16>, vector<64x512xf32> -> vector<64x512xf32>
    %c0_3 = arith.constant 0 : index
    %c0_4 = arith.constant 0 : index
    %3 = vector.load %arg4[%c0_3, %c0_4] : memref<1x512xf32, #tpu.memory_space<vmem>>, vector<1x512xf32>
    %4 = vector.broadcast %3 : vector<1x512xf32> to vector<64x512xf32>
    %5 = arith.mulf %2, %4 : vector<64x512xf32>
    %c0_5 = arith.constant 0 : index
    %c0_6 = arith.constant 0 : index
    %6 = vector.load %arg5[%c0_5, %c0_6] : memref<1x512xf32, #tpu.memory_space<vmem>>, vector<1x512xf32>
    %7 = vector.broadcast %6 : vector<1x512xf32> to vector<64x512xf32>
    %8 = arith.addf %5, %7 : vector<64x512xf32>
    %c0_7 = arith.constant 0 : index
    %c0_8 = arith.constant 0 : index
    %9 = vector.load %arg6[%c0_7, %c0_8] : memref<64x512xf32, #tpu.memory_space<vmem>>, vector<64x512xf32>
    tpu.vector_store %arg6[%c0_7, %c0_8], %8 {strides = array<i32>} : memref<64x512xf32, #tpu.memory_space<vmem>>, vector<64x512xf32>,
    return
  }
  func.func @transform_0(%arg0: i32, %arg1: i32) -> (i32, i32) {
    %c0_i32 = arith.constant 0 : i32
    %c0_i32_0 = arith.constant 0 : i32
    return %arg0, %c0_i32 : i32, i32
  }
  func.func @transform_1(%arg0: i32, %arg1: i32) -> (i32, i32) {
    %c0_i32 = arith.constant 0 : i32
    %c0_i32_0 = arith.constant 0 : i32
    return %c0_i32, %arg1 : i32, i32
  }
  func.func @transform_2(%arg0: i32, %arg1: i32) -> (i32, i32) {
    %c0_i32 = arith.constant 0 : i32
    %c0_i32_0 = arith.constant 0 : i32
    return %c0_i32, %arg1 : i32, i32
  }
  func.func @transform_3(%arg0: i32, %arg1: i32) -> (i32, i32) {
    %c0_i32 = arith.constant 0 : i32
    %c0_i32_0 = arith.constant 0 : i32
    return %c0_i32, %arg1 : i32, i32
  }
  func.func @transform_4(%arg0: i32, %arg1: i32) -> (i32, i32) {
    %c0_i32 = arith.constant 0 : i32
    return %arg0, %arg1 : i32, i32
  }
}

module attributes {stable_mosaic.version = 11 : i64} {
  func.func @_gemm_bn_act_kernel(%arg0: i32, %arg1: i32, %arg2: memref<256x32xbf16, #tpu.memory_space<vmem>>, %arg3: memref<32x256xbf16, #tpu.memory_space<vmem>>, %arg4: memref<1x256xf32, #tpu.memory_space<vmem>>, %arg5: memref<1x256xf32, #tpu.memory_space<vmem>>, %arg6: memref<256x256xf32, #tpu.memory_space<vmem>>) attributes {dimension_semantics = [#tpu.dimension_semantics<parallel>, #tpu.dimension_semantics<parallel>], iteration_bounds = array<i64: 2, 1>, scalar_prefetch = 0 : i64, scratch_operands = 0 : i64, tpu.core_type = #tpu.core_type<tc>, window_params = [{transform_indices = @transform_0, window_bounds = array<i64: 256, 32>}, {transform_indices = @transform_1, window_bounds = array<i64: 32, 256>}, {transform_indices = @transform_2, window_bounds = array<i64: 1, 256>}, {transform_indices = @transform_3, window_bounds = array<i64: 1, 256>}, {transform_indices = @transform_4, window_bounds = array<i64: 256, 256>}]} {
    %c0 = arith.constant 0 : index
    %c0_0 = arith.constant 0 : index
    %0 = vector.load %arg2[%c0, %c0_0] : memref<256x32xbf16, #tpu.memory_space<vmem>>, vector<256x32xbf16>
    %c0_1 = arith.constant 0 : index
    %c0_2 = arith.constant 0 : index
    %1 = vector.load %arg3[%c0_1, %c0_2] : memref<32x256xbf16, #tpu.memory_space<vmem>>, vector<32x256xbf16>
    %cst = arith.constant dense<0.000000e+00> : vector<256x256xf32>
    %2 = tpu.matmul %0, %1, %cst {dimension_numbers = #tpu.dot_dimension_numbers<[1], [0], [0], [1], [0, 0, 1, 1], [], []>} : vector<256x32xbf16>, vector<32x256xbf16>, vector<256x256xf32> -> vector<256x256xf32>
    %c0_3 = arith.constant 0 : index
    %c0_4 = arith.constant 0 : index
    %3 = vector.load %arg4[%c0_3, %c0_4] : memref<1x256xf32, #tpu.memory_space<vmem>>, vector<1x256xf32>
    %4 = vector.broadcast %3 : vector<1x256xf32> to vector<256x256xf32>
    %5 = arith.mulf %2, %4 : vector<256x256xf32>
    %c0_5 = arith.constant 0 : index
    %c0_6 = arith.constant 0 : index
    %6 = vector.load %arg5[%c0_5, %c0_6] : memref<1x256xf32, #tpu.memory_space<vmem>>, vector<1x256xf32>
    %7 = vector.broadcast %6 : vector<1x256xf32> to vector<256x256xf32>
    %8 = arith.addf %5, %7 : vector<256x256xf32>
    %c0_7 = arith.constant 0 : index
    %c0_8 = arith.constant 0 : index
    %9 = vector.load %arg6[%c0_7, %c0_8] : memref<256x256xf32, #tpu.memory_space<vmem>>, vector<256x256xf32>
    tpu.vector_store %arg6[%c0_7, %c0_8], %8 {strides = array<i32>} : memref<256x256xf32, #tpu.memory_space<vmem>>, vector<256x256xf32>,
    return
  }
  func.func @transform_0(%arg0: i32, %arg1: i32) -> (i32, i32) {
    %c0_i32 = arith.constant 0 : i32
    %c0_i32_0 = arith.constant 0 : i32
    return %arg0, %c0_i32 : i32, i32
  }
  func.func @transform_1(%arg0: i32, %arg1: i32) -> (i32, i32) {
    %c0_i32 = arith.constant 0 : i32
    %c0_i32_0 = arith.constant 0 : i32
    return %c0_i32, %arg1 : i32, i32
  }
  func.func @transform_2(%arg0: i32, %arg1: i32) -> (i32, i32) {
    %c0_i32 = arith.constant 0 : i32
    %c0_i32_0 = arith.constant 0 : i32
    return %c0_i32, %arg1 : i32, i32
  }
  func.func @transform_3(%arg0: i32, %arg1: i32) -> (i32, i32) {
    %c0_i32 = arith.constant 0 : i32
    %c0_i32_0 = arith.constant 0 : i32
    return %c0_i32, %arg1 : i32, i32
  }
  func.func @transform_4(%arg0: i32, %arg1: i32) -> (i32, i32) {
    %c0_i32 = arith.constant 0 : i32
    return %arg0, %arg1 : i32, i32
  }
}

module attributes {stable_mosaic.version = 11 : i64} {
  func.func @_gemm_bn_act_kernel(%arg0: i32, %arg1: i32, %arg2: memref<1024x16xbf16, #tpu.memory_space<vmem>>, %arg3: memref<16x128xbf16, #tpu.memory_space<vmem>>, %arg4: memref<1x128xf32, #tpu.memory_space<vmem>>, %arg5: memref<1x128xf32, #tpu.memory_space<vmem>>, %arg6: memref<1024x128xf32, #tpu.memory_space<vmem>>) attributes {dimension_semantics = [#tpu.dimension_semantics<parallel>, #tpu.dimension_semantics<parallel>], iteration_bounds = array<i64: 2, 1>, scalar_prefetch = 0 : i64, scratch_operands = 0 : i64, tpu.core_type = #tpu.core_type<tc>, window_params = [{transform_indices = @transform_0, window_bounds = array<i64: 1024, 16>}, {transform_indices = @transform_1, window_bounds = array<i64: 16, 128>}, {transform_indices = @transform_2, window_bounds = array<i64: 1, 128>}, {transform_indices = @transform_3, window_bounds = array<i64: 1, 128>}, {transform_indices = @transform_4, window_bounds = array<i64: 1024, 128>}]} {
    %c0 = arith.constant 0 : index
    %c0_0 = arith.constant 0 : index
    %0 = vector.load %arg2[%c0, %c0_0] : memref<1024x16xbf16, #tpu.memory_space<vmem>>, vector<1024x16xbf16>
    %c0_1 = arith.constant 0 : index
    %c0_2 = arith.constant 0 : index
    %1 = vector.load %arg3[%c0_1, %c0_2] : memref<16x128xbf16, #tpu.memory_space<vmem>>, vector<16x128xbf16>
    %cst = arith.constant dense<0.000000e+00> : vector<1024x128xf32>
    %2 = tpu.matmul %0, %1, %cst {dimension_numbers = #tpu.dot_dimension_numbers<[1], [0], [0], [1], [0, 0, 1, 1], [], []>} : vector<1024x16xbf16>, vector<16x128xbf16>, vector<1024x128xf32> -> vector<1024x128xf32>
    %c0_3 = arith.constant 0 : index
    %c0_4 = arith.constant 0 : index
    %3 = vector.load %arg4[%c0_3, %c0_4] : memref<1x128xf32, #tpu.memory_space<vmem>>, vector<1x128xf32>
    %4 = vector.broadcast %3 : vector<1x128xf32> to vector<1024x128xf32>
    %5 = arith.mulf %2, %4 : vector<1024x128xf32>
    %c0_5 = arith.constant 0 : index
    %c0_6 = arith.constant 0 : index
    %6 = vector.load %arg5[%c0_5, %c0_6] : memref<1x128xf32, #tpu.memory_space<vmem>>, vector<1x128xf32>
    %7 = vector.broadcast %6 : vector<1x128xf32> to vector<1024x128xf32>
    %8 = arith.addf %5, %7 : vector<1024x128xf32>
    %c0_7 = arith.constant 0 : index
    %c0_8 = arith.constant 0 : index
    %9 = vector.load %arg6[%c0_7, %c0_8] : memref<1024x128xf32, #tpu.memory_space<vmem>>, vector<1024x128xf32>
    tpu.vector_store %arg6[%c0_7, %c0_8], %8 {strides = array<i32>} : memref<1024x128xf32, #tpu.memory_space<vmem>>, vector<1024x128xf32>,
    return
  }
  func.func @transform_0(%arg0: i32, %arg1: i32) -> (i32, i32) {
    %c0_i32 = arith.constant 0 : i32
    %c0_i32_0 = arith.constant 0 : i32
    return %arg0, %c0_i32 : i32, i32
  }
  func.func @transform_1(%arg0: i32, %arg1: i32) -> (i32, i32) {
    %c0_i32 = arith.constant 0 : i32
    %c0_i32_0 = arith.constant 0 : i32
    return %c0_i32, %arg1 : i32, i32
  }
  func.func @transform_2(%arg0: i32, %arg1: i32) -> (i32, i32) {
    %c0_i32 = arith.constant 0 : i32
    %c0_i32_0 = arith.constant 0 : i32
    return %c0_i32, %arg1 : i32, i32
  }
  func.func @transform_3(%arg0: i32, %arg1: i32) -> (i32, i32) {
    %c0_i32 = arith.constant 0 : i32
    %c0_i32_0 = arith.constant 0 : i32
    return %c0_i32, %arg1 : i32, i32
  }
  func.func @transform_4(%arg0: i32, %arg1: i32) -> (i32, i32) {
    %c0_i32 = arith.constant 0 : i32
    return %arg0, %arg1 : i32, i32
  }
}

module attributes {stable_mosaic.version = 11 : i64} {
  func.func @_gemm_bn_act_kernel(%arg0: i32, %arg1: i32, %arg2: memref<1024x8xbf16, #tpu.memory_space<vmem>>, %arg3: memref<8x128xbf16, #tpu.memory_space<vmem>>, %arg4: memref<1x128xf32, #tpu.memory_space<vmem>>, %arg5: memref<1x128xf32, #tpu.memory_space<vmem>>, %arg6: memref<1024x128xf32, #tpu.memory_space<vmem>>) attributes {dimension_semantics = [#tpu.dimension_semantics<parallel>, #tpu.dimension_semantics<parallel>], iteration_bounds = array<i64: 8, 1>, scalar_prefetch = 0 : i64, scratch_operands = 0 : i64, tpu.core_type = #tpu.core_type<tc>, window_params = [{transform_indices = @transform_0, window_bounds = array<i64: 1024, 8>}, {transform_indices = @transform_1, window_bounds = array<i64: 8, 128>}, {transform_indices = @transform_2, window_bounds = array<i64: 1, 128>}, {transform_indices = @transform_3, window_bounds = array<i64: 1, 128>}, {transform_indices = @transform_4, window_bounds = array<i64: 1024, 128>}]} {
    %c0 = arith.constant 0 : index
    %c0_0 = arith.constant 0 : index
    %0 = vector.load %arg2[%c0, %c0_0] : memref<1024x8xbf16, #tpu.memory_space<vmem>>, vector<1024x8xbf16>
    %c0_1 = arith.constant 0 : index
    %c0_2 = arith.constant 0 : index
    %1 = vector.load %arg3[%c0_1, %c0_2] : memref<8x128xbf16, #tpu.memory_space<vmem>>, vector<8x128xbf16>
    %cst = arith.constant dense<0.000000e+00> : vector<1024x128xf32>
    %2 = tpu.matmul %0, %1, %cst {dimension_numbers = #tpu.dot_dimension_numbers<[1], [0], [0], [1], [0, 0, 1, 1], [], []>} : vector<1024x8xbf16>, vector<8x128xbf16>, vector<1024x128xf32> -> vector<1024x128xf32>
    %c0_3 = arith.constant 0 : index
    %c0_4 = arith.constant 0 : index
    %3 = vector.load %arg4[%c0_3, %c0_4] : memref<1x128xf32, #tpu.memory_space<vmem>>, vector<1x128xf32>
    %4 = vector.broadcast %3 : vector<1x128xf32> to vector<1024x128xf32>
    %5 = arith.mulf %2, %4 : vector<1024x128xf32>
    %c0_5 = arith.constant 0 : index
    %c0_6 = arith.constant 0 : index
    %6 = vector.load %arg5[%c0_5, %c0_6] : memref<1x128xf32, #tpu.memory_space<vmem>>, vector<1x128xf32>
    %7 = vector.broadcast %6 : vector<1x128xf32> to vector<1024x128xf32>
    %8 = arith.addf %5, %7 : vector<1024x128xf32>
    %c0_7 = arith.constant 0 : index
    %c0_8 = arith.constant 0 : index
    %9 = vector.load %arg6[%c0_7, %c0_8] : memref<1024x128xf32, #tpu.memory_space<vmem>>, vector<1024x128xf32>
    tpu.vector_store %arg6[%c0_7, %c0_8], %8 {strides = array<i32>} : memref<1024x128xf32, #tpu.memory_space<vmem>>, vector<1024x128xf32>,
    return
  }
  func.func @transform_0(%arg0: i32, %arg1: i32) -> (i32, i32) {
    %c0_i32 = arith.constant 0 : i32
    %c0_i32_0 = arith.constant 0 : i32
    return %arg0, %c0_i32 : i32, i32
  }
  func.func @transform_1(%arg0: i32, %arg1: i32) -> (i32, i32) {
    %c0_i32 = arith.constant 0 : i32
    %c0_i32_0 = arith.constant 0 : i32
    return %c0_i32, %arg1 : i32, i32
  }
  func.func @transform_2(%arg0: i32, %arg1: i32) -> (i32, i32) {
    %c0_i32 = arith.constant 0 : i32
    %c0_i32_0 = arith.constant 0 : i32
    return %c0_i32, %arg1 : i32, i32
  }
  func.func @transform_3(%arg0: i32, %arg1: i32) -> (i32, i32) {
    %c0_i32 = arith.constant 0 : i32
    %c0_i32_0 = arith.constant 0 : i32
    return %c0_i32, %arg1 : i32, i32
  }
  func.func @transform_4(%arg0: i32, %arg1: i32) -> (i32, i32) {
    %c0_i32 = arith.constant 0 : i32
    return %arg0, %arg1 : i32, i32
  }
}

</mosaic_0001>

<bundles_post_ra>
// kernel: tile.35
= control target key start
LH: loop header
LB: loop body
LE: loop exit
PB: predicated region body
PF: predicated region fallthrough
CT: control target
= control target key end

     0   :  { %s28_s0 = inlined_call_operand.vmem [shape: f32[128], index: 0, kind: input, shape index: {}]   ;;  %s29_s1 = inlined_call_operand.vmem [shape: f32[16,128], index: 1, kind: output, shape index: {}]  }
   0x1   :  { %v4_v0 = vld [vmem:[%s28_s0] ss:$0 sm:$0xff] }
   0x2   :  { %5 = vst [vmem:[%s29_s1] sm:$0xff] %v4_v0  ;;  %8 = vst [vmem:[%s29_s1 + $0x8] sm:$0xff] %v4_v0 }

// kernel: tile.45
= control target key start
LH: loop header
LB: loop body
LE: loop exit
PB: predicated region body
PF: predicated region fallthrough
CT: control target
= control target key end

     0   :  { %2 = vsyncpa [#allocation1], 0  ;;  %s47_s6 = smov [#allocation0]   ;;  %s76_s0 = inlined_call_operand.hbm [shape: f32[64], index: 0, kind: input, shape index: {}]   ;;  %s77_s1 = inlined_call_operand.vmem [shape: f32[16,64], index: 1, kind: output, shape index: {}]  }
   0x1   :  { %s9_s7 = sshll.u32 %s47_s6, 4  ;;  %s23_s10 = scalar_lea.hbm %s76_s0, 16  ;;  %s10_s7 = int_to_ptr.vmem [resolvable:$true] %s9_s7 }
   0x2   :  { %p24_p0 = scmp.ne.s32.totalorder %s76_s0, %s23_s10  ;;  %p27_p1 = scmp.lt.u32.totalorder %s23_s10, %s76_s0 }
   0x4   :  { %p29_p2 = pnand %p27_p1, %p24_p0 }
   0x6   :  { %32 = shalt.err (!%p29_p2)
}
   0x7   :  { %s33_s15 = scalar_lea.vmem %s10_s7, 16  ;;  %s37_s16 = scalar_lea.vmem %s10_s7, 32 }
   0x8   :  { %p34_p3 = scmp.ne.s32.totalorder %s10_s7, %s33_s15  ;;  %p38_p4 = scmp.lt.s32.totalorder %s10_s7, %s10_s7 }
   0x9   :  { %p39_p5 = scmp.lt.s32.totalorder %s37_s16, %s33_s15 }
   0xb   :  { %p40_p6 = por %p39_p5, %p38_p4 }
   0xd   :  { %p41_p7 = pnand %p40_p6, %p34_p3 }
   0xf   :  { %44 = shalt.err (!%p41_p7)
}
  0x10   :  { %12 = dma.hbm_to_vmem [thread:$0]  %s76_s0, 16, %s10_s7, [#allocation1]  }
  0x11   :  { %45 = dma.done.wait [#allocation1], 16  }
  0x12   :  { %46 = vsyncadd [#allocation1], 4294967280  ;;  %v16_v0 = vld [vmem:[#allocation0] ss:$0 sm:$0xff] }
  0x13   :  { %17 = vst [vmem:[%s77_s1] sm:$0xff] %v16_v0  ;;  %21 = vst [vmem:[%s77_s1 + $0x8] sm:$0xff] %v16_v0 }
  0x14   :  { %20 = vsyncpa [#allocation1], 1 }

// kernel: tile.46
= control target key start
LH: loop header
LB: loop body
LE: loop exit
PB: predicated region body
PF: predicated region fallthrough
CT: control target
= control target key end

     0   :  { %vm3_vm0 = vcmask 523264   ;;  %vm10_vm1 = vcmask 1048064   ;;  %s116_s0 = inlined_call_operand.vmem [shape: f32[16,64], index: 0, kind: input, shape index: {}]   ;;  %s117_s1 = inlined_call_operand.vmem [shape: f32[1,1024], index: 1, kind: output, shape index: {}]  }
   0x1   :  { %v66_v0 = vld [vmem:[%s116_s0 + $0x1] ss:$2 sm:$0xff]   ;;  %v2_v1 = vld [vmem:[%s116_s0] ss:$2 sm:$0xff]   ;;  %s75_s0 = smov 64  }
   0x2   :  { %8 = vrot.lane.b32.xlu0 %v66_v0, %s75_s0  ;;  %4 = vst.msk [vmem:[#allocation0] ss:$8 sm:$0xf] %vm3_vm0, %v2_v1   ;;  %5 = vst.msk [vmem:[#allocation0] ss:$8 sm:$0xf0] %vm3_vm0, %v2_v1  }
  0x74   :  { %v9_v2 = vpop.permute.xlu0 %8  }
  0x75   :  { %11 = vst.msk [vmem:[#allocation0] ss:$8 sm:$0xf] %vm10_vm1, %v9_v2   ;;  %12 = vst.msk [vmem:[#allocation0] ss:$8 sm:$0xf0] %vm10_vm1, %v9_v2  }
  0x7c   :  { %v16_v3 = vld [vmem:[#allocation0] sm:$0x1]  ;;  %v20_v4 = vld [vmem:[#allocation0 + $0x8] sm:$0x1]  ;;  %v25_v5 = vld [vmem:[#allocation0 + $0x10] sm:$0x1] }
  0x7d   :  { %18 = vst [vmem:[%s117_s1] sm:$0x1] %v16_v3  ;;  %67 = vst [vmem:[%s117_s1 + $0x1] sm:$0x1] %v20_v4  ;;  %v31_v6 = vld [vmem:[#allocation0 + $0x18] sm:$0x1] }
  0x7e   :  { %68 = vst [vmem:[%s117_s1 + $0x2] sm:$0x1] %v25_v5  ;;  %v37_v7 = vld [vmem:[#allocation0 + $0x20] sm:$0x1]  ;;  %v43_v8 = vld [vmem:[#allocation0 + $0x28] sm:$0x1] }
  0x7f   :  { %69 = vst [vmem:[%s117_s1 + $0x3] sm:$0x1] %v31_v6  ;;  %70 = vst [vmem:[%s117_s1 + $0x4] sm:$0x1] %v37_v7  ;;  %v49_v9 = vld [vmem:[#allocation0 + $0x30] sm:$0x1] }
  0x80   :  { %71 = vst [vmem:[%s117_s1 + $0x5] sm:$0x1] %v43_v8  ;;  %v55_v10 = vld [vmem:[#allocation0 + $0x38] sm:$0x1]  ;;  %72 = vst [vmem:[%s117_s1 + $0x6] sm:$0x1] %v49_v9 }
  0x81   :  { %73 = vst [vmem:[%s117_s1 + $0x7] sm:$0x1] %v55_v10 }

// kernel: tile.51
= control target key start
LH: loop header
LB: loop body
LE: loop exit
PB: predicated region body
PF: predicated region fallthrough
CT: control target
= control target key end

     0   :  { %s57_s8 = smov 96   ;;  %vm3_vm0 = vcmask 261120   ;;  %s59_s15 = smov 64   ;;  %vm9_vm1 = vcmask 1048320   ;;  %vm15_vm2 = vcmask 785920   ;;  %vm21_vm3 = vcmask 523520   ;;  %s94_s0 = inlined_call_operand.vmem [shape: f32[16,32], index: 0, kind: input, shape index: {}]   ;;  %s95_s1 = inlined_call_operand.vmem [shape: f32[1,512], index: 1, kind: output, shape index: {}]  }
   0x1   :  { %v48_v0 = vld [vmem:[%s94_s0 + $0x3] ss:$4 sm:$0xf]   ;;  %v49_v1 = vld [vmem:[%s94_s0 + $0x2] ss:$4 sm:$0xf]  }
   0x2   :  { %7 = vrot.lane.b32.xlu0 %v48_v0, %s57_s8  ;;  %v50_v2 = vld [vmem:[%s94_s0 + $0x1] ss:$4 sm:$0xf]   ;;  %v2_v3 = vld [vmem:[%s94_s0] ss:$4 sm:$0xf]  }
   0x3   :  { %s58_s0 = smov 32   ;;  %4 = vst.msk [vmem:[#allocation0] ss:$8 sm:$0xf] %vm3_vm0, %v2_v3  }
   0x4   :  { %19 = vrot.lane.b32.xlu1 %v50_v2, %s58_s0 }
   0x6   :  { %13 = vrot.lane.b32.xlu0 %v49_v1, %s59_s15 }
  0x74   :  { %v8_v4 = vpop.permute.xlu0 %7  }
  0x75   :  { %10 = vst.msk [vmem:[#allocation0] ss:$8 sm:$0xf] %vm9_vm1, %v8_v4  }
  0x76   :  { %v20_v5 = vpop.permute.xlu1 %19  }
  0x78   :  { %v14_v6 = vpop.permute.xlu0 %13  }
  0x79   :  { %16 = vst.msk [vmem:[#allocation0] ss:$8 sm:$0xf] %vm15_vm2, %v14_v6  }
  0x7a   :  { %22 = vst.msk [vmem:[#allocation0] ss:$8 sm:$0xf] %vm21_vm3, %v20_v5  }
  0x81   :  { %v26_v7 = vld [vmem:[#allocation0] sm:$0x1]  ;;  %v30_v8 = vld [vmem:[#allocation0 + $0x8] sm:$0x1]  ;;  %v35_v9 = vld [vmem:[#allocation0 + $0x10] sm:$0x1] }
  0x82   :  { %28 = vst [vmem:[%s95_s1] sm:$0x1] %v26_v7  ;;  %51 = vst [vmem:[%s95_s1 + $0x1] sm:$0x1] %v30_v8  ;;  %v41_v10 = vld [vmem:[#allocation0 + $0x18] sm:$0x1] }
  0x83   :  { %52 = vst [vmem:[%s95_s1 + $0x2] sm:$0x1] %v35_v9  ;;  %53 = vst [vmem:[%s95_s1 + $0x3] sm:$0x1] %v41_v10 }

// kernel: tile.55
= control target key start
LH: loop header
LB: loop body
LE: loop exit
PB: predicated region body
PF: predicated region fallthrough
CT: control target
= control target key end

     0   :  { %2 = vsyncpa [#allocation1], 0  ;;  %s47_s6 = smov [#allocation0]   ;;  %s76_s0 = inlined_call_operand.hbm [shape: f32[16], index: 0, kind: input, shape index: {}]   ;;  %s77_s1 = inlined_call_operand.vmem [shape: f32[16,16], index: 1, kind: output, shape index: {}]  }
   0x1   :  { %s9_s7 = sshll.u32 %s47_s6, 4  ;;  %s23_s10 = scalar_lea.hbm %s76_s0, 16  ;;  %s10_s7 = int_to_ptr.vmem [resolvable:$true] %s9_s7 }
   0x2   :  { %p24_p0 = scmp.ne.s32.totalorder %s76_s0, %s23_s10  ;;  %p27_p1 = scmp.lt.u32.totalorder %s23_s10, %s76_s0 }
   0x4   :  { %p29_p2 = pnand %p27_p1, %p24_p0 }
   0x6   :  { %32 = shalt.err (!%p29_p2)
}
   0x7   :  { %s33_s15 = scalar_lea.vmem %s10_s7, 16  ;;  %s37_s16 = scalar_lea.vmem %s10_s7, 32 }
   0x8   :  { %p34_p3 = scmp.ne.s32.totalorder %s10_s7, %s33_s15  ;;  %p38_p4 = scmp.lt.s32.totalorder %s10_s7, %s10_s7 }
   0x9   :  { %p39_p5 = scmp.lt.s32.totalorder %s37_s16, %s33_s15 }
   0xb   :  { %p40_p6 = por %p39_p5, %p38_p4 }
   0xd   :  { %p41_p7 = pnand %p40_p6, %p34_p3 }
   0xf   :  { %44 = shalt.err (!%p41_p7)
}
  0x10   :  { %12 = dma.hbm_to_vmem [thread:$0]  %s76_s0, 16, %s10_s7, [#allocation1]  }
  0x11   :  { %45 = dma.done.wait [#allocation1], 16  }
  0x12   :  { %46 = vsyncadd [#allocation1], 4294967280  ;;  %v16_v0 = vld [vmem:[#allocation0] ss:$0 sm:$0xff] }
  0x13   :  { %17 = vst [vmem:[%s77_s1] sm:$0xff] %v16_v0  ;;  %21 = vst [vmem:[%s77_s1 + $0x8] sm:$0xff] %v16_v0 }
  0x14   :  { %20 = vsyncpa [#allocation1], 1 }

// kernel: tile.50
= control target key start
LH: loop header
LB: loop body
LE: loop exit
PB: predicated region body
PF: predicated region fallthrough
CT: control target
= control target key end

     0   :  { %2 = vsyncpa [#allocation1], 0  ;;  %s47_s6 = smov [#allocation0]   ;;  %s76_s0 = inlined_call_operand.hbm [shape: f32[32], index: 0, kind: input, shape index: {}]   ;;  %s77_s1 = inlined_call_operand.vmem [shape: f32[16,32], index: 1, kind: output, shape index: {}]  }
   0x1   :  { %s9_s7 = sshll.u32 %s47_s6, 4  ;;  %s23_s10 = scalar_lea.hbm %s76_s0, 16  ;;  %s10_s7 = int_to_ptr.vmem [resolvable:$true] %s9_s7 }
   0x2   :  { %p24_p0 = scmp.ne.s32.totalorder %s76_s0, %s23_s10  ;;  %p27_p1 = scmp.lt.u32.totalorder %s23_s10, %s76_s0 }
   0x4   :  { %p29_p2 = pnand %p27_p1, %p24_p0 }
   0x6   :  { %32 = shalt.err (!%p29_p2)
}
   0x7   :  { %s33_s15 = scalar_lea.vmem %s10_s7, 16  ;;  %s37_s16 = scalar_lea.vmem %s10_s7, 32 }
   0x8   :  { %p34_p3 = scmp.ne.s32.totalorder %s10_s7, %s33_s15  ;;  %p38_p4 = scmp.lt.s32.totalorder %s10_s7, %s10_s7 }
   0x9   :  { %p39_p5 = scmp.lt.s32.totalorder %s37_s16, %s33_s15 }
   0xb   :  { %p40_p6 = por %p39_p5, %p38_p4 }
   0xd   :  { %p41_p7 = pnand %p40_p6, %p34_p3 }
   0xf   :  { %44 = shalt.err (!%p41_p7)
}
  0x10   :  { %12 = dma.hbm_to_vmem [thread:$0]  %s76_s0, 16, %s10_s7, [#allocation1]  }
  0x11   :  { %45 = dma.done.wait [#allocation1], 16  }
  0x12   :  { %46 = vsyncadd [#allocation1], 4294967280  ;;  %v16_v0 = vld [vmem:[#allocation0] ss:$0 sm:$0xff] }
  0x13   :  { %17 = vst [vmem:[%s77_s1] sm:$0xff] %v16_v0  ;;  %21 = vst [vmem:[%s77_s1 + $0x8] sm:$0xff] %v16_v0 }
  0x14   :  { %20 = vsyncpa [#allocation1], 1 }

// kernel: tile.56
= control target key start
LH: loop header
LB: loop body
LE: loop exit
PB: predicated region body
PF: predicated region fallthrough
CT: control target
= control target key end

     0   :  { %s7_s6 = smov 3  ;;  %s21_s9 = smov 3  ;;  %vm4_vm0 = vcmask 130048   ;;  %vm11_vm1 = vcmask 1048448   ;;  %vm18_vm2 = vcmask 917248   ;;  %vm25_vm3 = vcmask 786048   ;;  %s128_s0 = inlined_call_operand.vmem [shape: f32[16,16], index: 0, kind: input, shape index: {}]   ;;  %s129_s1 = inlined_call_operand.vmem [shape: f32[1,256], index: 1, kind: output, shape index: {}]  }
   0x1   :  { %v66_v0 = vld [vmem:[%s128_s0 + $0x7] ss:$8 sm:%s7_s6]   ;;  %s81_s10 = smov 112   ;;  %v68_v1 = vld [vmem:[%s128_s0 + $0x5] ss:$8 sm:%s21_s9]   ;;  %s14_s13 = smov 3 }
   0x2   :  { %9 = vrot.lane.b32.xlu0 %v66_v0, %s81_s10  ;;  %s82_s14 = smov 80   ;;  %v67_v2 = vld [vmem:[%s128_s0 + $0x6] ss:$8 sm:%s14_s13]   ;;  %s28_s17 = smov 3  ;;  %vm32_vm4 = vcmask 654848   ;;  %vm39_vm5 = vcmask 523648  }
   0x3   :  { %23 = vrot.lane.b32.xlu1 %v68_v1, %s82_s14  ;;  %v69_v3 = vld [vmem:[%s128_s0 + $0x4] ss:$8 sm:%s28_s17]   ;;  %s35_s20 = smov 3  ;;  %s42_s21 = smov 3  ;;  %vm46_vm6 = vcmask 392448   ;;  %vm53_vm7 = vcmask 261248  }
   0x4   :  { %s83_s22 = smov 96   ;;  %s84_s23 = smov 64   ;;  %v70_v4 = vld [vmem:[%s128_s0 + $0x3] ss:$8 sm:%s35_s20]   ;;  %v71_v5 = vld [vmem:[%s128_s0 + $0x2] ss:$8 sm:%s42_s21]  }
   0x5   :  { %s2_s26 = smov 3  ;;  %s49_s29 = smov 3 }
   0x6   :  { %16 = vrot.lane.b32.xlu0 %v67_v2, %s83_s22  ;;  %v3_v6 = vld [vmem:[%s128_s0] ss:$8 sm:%s2_s26]   ;;  %s85_s3 = smov 48   ;;  %s86_s4 = smov 32  }
   0x7   :  { %30 = vrot.lane.b32.xlu1 %v69_v3, %s84_s23  ;;  %5 = vst.msk [vmem:[#allocation0] ss:$8 sm:$0x3] %vm4_vm0, %v3_v6   ;;  %v72_v7 = vld [vmem:[%s128_s0 + $0x1] ss:$8 sm:%s49_s29]   ;;  %s87_s0 = smov 16  }
   0xa   :  { %37 = vrot.lane.b32.xlu0 %v70_v4, %s85_s3 }
   0xb   :  { %44 = vrot.lane.b32.xlu1 %v71_v5, %s86_s4 }
   0xe   :  { %51 = vrot.lane.b32.xlu0 %v72_v7, %s87_s0 }
  0x74   :  { %v10_v8 = vpop.permute.xlu0 %9  }
  0x75   :  { %12 = vst.msk [vmem:[#allocation0] ss:$8 sm:$0x3] %vm11_vm1, %v10_v8   ;;  %v24_v9 = vpop.permute.xlu1 %23  }
  0x78   :  { %v17_v10 = vpop.permute.xlu0 %16  }
  0x79   :  { %19 = vst.msk [vmem:[#allocation0] ss:$8 sm:$0x3] %vm18_vm2, %v17_v10   ;;  %v31_v11 = vpop.permute.xlu1 %30  }
  0x7a   :  { %26 = vst.msk [vmem:[#allocation0] ss:$8 sm:$0x3] %vm25_vm3, %v24_v9  }
  0x7b   :  { %33 = vst.msk [vmem:[#allocation0] ss:$8 sm:$0x3] %vm32_vm4, %v31_v11  }
  0x7c   :  { %v38_v12 = vpop.permute.xlu0 %37  }
  0x7d   :  { %40 = vst.msk [vmem:[#allocation0] ss:$8 sm:$0x3] %vm39_vm5, %v38_v12   ;;  %v45_v13 = vpop.permute.xlu1 %44  }
  0x7e   :  { %47 = vst.msk [vmem:[#allocation0] ss:$8 sm:$0x3] %vm46_vm6, %v45_v13  }
  0x80   :  { %v52_v14 = vpop.permute.xlu0 %51  }
  0x81   :  { %54 = vst.msk [vmem:[#allocation0] ss:$8 sm:$0x3] %vm53_vm7, %v52_v14  }
  0x88   :  { %v58_v15 = vld [vmem:[#allocation0] sm:$0x1]  ;;  %v62_v16 = vld [vmem:[#allocation0 + $0x8] sm:$0x1] }
  0x89   :  { %60 = vst [vmem:[%s129_s1] sm:$0x1] %v58_v15  ;;  %73 = vst [vmem:[%s129_s1 + $0x1] sm:$0x1] %v62_v16 }

// kernel: tile.60
= control target key start
LH: loop header
LB: loop body
LE: loop exit
PB: predicated region body
PF: predicated region fallthrough
CT: control target
= control target key end

     0   :  { %2 = vsyncpa [#allocation1], 0  ;;  %s47_s6 = smov [#allocation0]   ;;  %s76_s0 = inlined_call_operand.hbm [shape: f32[8], index: 0, kind: input, shape index: {}]   ;;  %s77_s1 = inlined_call_operand.vmem [shape: f32[16,8], index: 1, kind: output, shape index: {}]  }
   0x1   :  { %s9_s7 = sshll.u32 %s47_s6, 4  ;;  %s23_s10 = scalar_lea.hbm %s76_s0, 16  ;;  %s10_s7 = int_to_ptr.vmem [resolvable:$true] %s9_s7 }
   0x2   :  { %p24_p0 = scmp.ne.s32.totalorder %s76_s0, %s23_s10  ;;  %p27_p1 = scmp.lt.u32.totalorder %s23_s10, %s76_s0 }
   0x4   :  { %p29_p2 = pnand %p27_p1, %p24_p0 }
   0x6   :  { %32 = shalt.err (!%p29_p2)
}
   0x7   :  { %s33_s15 = scalar_lea.vmem %s10_s7, 16  ;;  %s37_s16 = scalar_lea.vmem %s10_s7, 32 }
   0x8   :  { %p34_p3 = scmp.ne.s32.totalorder %s10_s7, %s33_s15  ;;  %p38_p4 = scmp.lt.s32.totalorder %s10_s7, %s10_s7 }
   0x9   :  { %p39_p5 = scmp.lt.s32.totalorder %s37_s16, %s33_s15 }
   0xb   :  { %p40_p6 = por %p39_p5, %p38_p4 }
   0xd   :  { %p41_p7 = pnand %p40_p6, %p34_p3 }
   0xf   :  { %44 = shalt.err (!%p41_p7)
}
  0x10   :  { %12 = dma.hbm_to_vmem [thread:$0]  %s76_s0, 16, %s10_s7, [#allocation1]  }
  0x11   :  { %45 = dma.done.wait [#allocation1], 16  }
  0x12   :  { %46 = vsyncadd [#allocation1], 4294967280  ;;  %v16_v0 = vld [vmem:[#allocation0] ss:$0 sm:$0xff] }
  0x13   :  { %17 = vst [vmem:[%s77_s1] sm:$0xff] %v16_v0  ;;  %21 = vst [vmem:[%s77_s1 + $0x8] sm:$0xff] %v16_v0 }
  0x14   :  { %20 = vsyncpa [#allocation1], 1 }

// kernel: tile.61
= control target key start
LH: loop header
LB: loop body
LE: loop exit
PB: predicated region body
PF: predicated region fallthrough
CT: control target
= control target key end

     0   :  { %s131_s10 = smov 120   ;;  %s132_s11 = smov 104   ;;  %vm3_vm0 = vcmask 64512   ;;  %vm9_vm1 = vcmask 1048512   ;;  %vm15_vm2 = vcmask 982912   ;;  %vm21_vm3 = vcmask 917312   ;;  %s207_s0 = inlined_call_operand.vmem [shape: f32[16,8], index: 0, kind: input, shape index: {}]   ;;  %s208_s1 = inlined_call_operand.vmem [shape: f32[1,128], index: 1, kind: output, shape index: {}]  }
   0x1   :  { %v101_v0 = vld [vmem:[%s207_s0 + $0xf] sm:$0x1]   ;;  %v103_v1 = vld [vmem:[%s207_s0 + $0xd] sm:$0x1]   ;;  %v102_v2 = vld [vmem:[%s207_s0 + $0xe] sm:$0x1]  }
   0x2   :  { %7 = vrot.lane.b32.xlu0 %v101_v0, %s131_s10  ;;  %19 = vrot.lane.b32.xlu1 %v103_v1, %s132_s11  ;;  %v104_v3 = vld [vmem:[%s207_s0 + $0xc] sm:$0x1]   ;;  %s133_s16 = smov 112   ;;  %s134_s17 = smov 96   ;;  %v105_v4 = vld [vmem:[%s207_s0 + $0xb] sm:$0x1]  }
   0x3   :  { %v106_v5 = vld [vmem:[%s207_s0 + $0xa] sm:$0x1]   ;;  %v2_v6 = vld [vmem:[%s207_s0] sm:$0x1]   ;;  %s135_s24 = smov 88   ;;  %s136_s25 = smov 80  }
   0x4   :  { %4 = vst.msk [vmem:[#allocation0] sm:$0x1] %vm3_vm0, %v2_v6   ;;  %v107_v7 = vld [vmem:[%s207_s0 + $0x9] sm:$0x1]   ;;  %v108_v8 = vld [vmem:[%s207_s0 + $0x8] sm:$0x1]  }
   0x5   :  { %s137_s30 = smov 72   ;;  %s138_s2 = smov 64   ;;  %v109_v9 = vld [vmem:[%s207_s0 + $0x7] sm:$0x1]   ;;  %v110_v10 = vld [vmem:[%s207_s0 + $0x6] sm:$0x1]  }
   0x6   :  { %13 = vrot.lane.b32.xlu0 %v102_v2, %s133_s16  ;;  %25 = vrot.lane.b32.xlu1 %v104_v3, %s134_s17  ;;  %s139_s7 = smov 56   ;;  %s140_s8 = smov 48   ;;  %v111_v11 = vld [vmem:[%s207_s0 + $0x5] sm:$0x1]   ;;  %v112_v12 = vld [vmem:[%s207_s0 + $0x4] sm:$0x1]  }
   0x7   :  { %s141_s13 = smov 40   ;;  %s142_s14 = smov 32   ;;  %v113_v13 = vld [vmem:[%s207_s0 + $0x3] sm:$0x1]   ;;  %v114_v14 = vld [vmem:[%s207_s0 + $0x2] sm:$0x1]  }
   0x8   :  { %s143_s19 = smov 24   ;;  %s144_s20 = smov 16   ;;  %v115_v15 = vld [vmem:[%s207_s0 + $0x1] sm:$0x1]   ;;  %vm27_vm4 = vcmask 851712   ;;  %vm33_vm5 = vcmask 786112  }
   0x9   :  { %s145_s0 = smov 8   ;;  %vm39_vm6 = vcmask 720512   ;;  %vm45_vm7 = vcmask 654912   ;;  %vm51_vm8 = vcmask 589312   ;;  %vm57_vm9 = vcmask 523712  }
   0xa   :  { %31 = vrot.lane.b32.xlu0 %v105_v4, %s135_s24  ;;  %37 = vrot.lane.b32.xlu1 %v106_v5, %s136_s25  ;;  %vm63_vm10 = vcmask 458112   ;;  %vm69_vm11 = vcmask 392512   ;;  %vm75_vm12 = vcmask 326912   ;;  %vm81_vm13 = vcmask 261312  }
   0xb   :  { %vm87_vm14 = vcmask 195712   ;;  %vm93_vm15 = vcmask 130112  }
   0xe   :  { %43 = vrot.lane.b32.xlu0 %v107_v7, %s137_s30  ;;  %49 = vrot.lane.b32.xlu1 %v108_v8, %s138_s2 }
  0x12   :  { %55 = vrot.lane.b32.xlu0 %v109_v9, %s139_s7  ;;  %61 = vrot.lane.b32.xlu1 %v110_v10, %s140_s8 }
  0x16   :  { %67 = vrot.lane.b32.xlu0 %v111_v11, %s141_s13  ;;  %73 = vrot.lane.b32.xlu1 %v112_v12, %s142_s14 }
  0x1a   :  { %79 = vrot.lane.b32.xlu0 %v113_v13, %s143_s19  ;;  %85 = vrot.lane.b32.xlu1 %v114_v14, %s144_s20 }
  0x1e   :  { %91 = vrot.lane.b32.xlu0 %v115_v15, %s145_s0 }
  0x74   :  { %v8_v16 = vpop.permute.xlu0 %7   ;;  %v20_v17 = vpop.permute.xlu1 %19  }
  0x75   :  { %10 = vst.msk [vmem:[#allocation0] sm:$0x1] %vm9_vm1, %v8_v16  }
  0x78   :  { %v14_v18 = vpop.permute.xlu0 %13   ;;  %v26_v19 = vpop.permute.xlu1 %25  }
  0x79   :  { %16 = vst.msk [vmem:[#allocation0] sm:$0x1] %vm15_vm2, %v14_v18  }
  0x7a   :  { %22 = vst.msk [vmem:[#allocation0] sm:$0x1] %vm21_vm3, %v20_v17  }
  0x7b   :  { %28 = vst.msk [vmem:[#allocation0] sm:$0x1] %vm27_vm4, %v26_v19  }
  0x7c   :  { %v32_v20 = vpop.permute.xlu0 %31   ;;  %v38_v21 = vpop.permute.xlu1 %37  }
  0x7d   :  { %34 = vst.msk [vmem:[#allocation0] sm:$0x1] %vm33_vm5, %v32_v20  }
  0x7e   :  { %40 = vst.msk [vmem:[#allocation0] sm:$0x1] %vm39_vm6, %v38_v21  }
  0x80   :  { %v44_v22 = vpop.permute.xlu0 %43   ;;  %v50_v23 = vpop.permute.xlu1 %49  }
  0x81   :  { %46 = vst.msk [vmem:[#allocation0] sm:$0x1] %vm45_vm7, %v44_v22  }
  0x82   :  { %52 = vst.msk [vmem:[#allocation0] sm:$0x1] %vm51_vm8, %v50_v23  }
  0x84   :  { %v56_v24 = vpop.permute.xlu0 %55   ;;  %v62_v25 = vpop.permute.xlu1 %61  }
  0x85   :  { %58 = vst.msk [vmem:[#allocation0] sm:$0x1] %vm57_vm9, %v56_v24  }
  0x86   :  { %64 = vst.msk [vmem:[#allocation0] sm:$0x1] %vm63_vm10, %v62_v25  }
  0x88   :  { %v68_v26 = vpop.permute.xlu0 %67   ;;  %v74_v27 = vpop.permute.xlu1 %73  }
  0x89   :  { %70 = vst.msk [vmem:[#allocation0] sm:$0x1] %vm69_vm11, %v68_v26  }
  0x8a   :  { %76 = vst.msk [vmem:[#allocation0] sm:$0x1] %vm75_vm12, %v74_v27  }
  0x8c   :  { %v80_v28 = vpop.permute.xlu0 %79   ;;  %v86_v29 = vpop.permute.xlu1 %85  }
  0x8d   :  { %82 = vst.msk [vmem:[#allocation0] sm:$0x1] %vm81_vm13, %v80_v28  }
  0x8e   :  { %88 = vst.msk [vmem:[#allocation0] sm:$0x1] %vm87_vm14, %v86_v29  }
  0x90   :  { %v92_v30 = vpop.permute.xlu0 %91  }
  0x91   :  { %94 = vst.msk [vmem:[#allocation0] sm:$0x1] %vm93_vm15, %v92_v30  }
  0x98   :  { %v98_v31 = vld [vmem:[#allocation0] sm:$0x1] }
  0x99   :  { %100 = vst [vmem:[%s208_s1] sm:$0x1] %v98_v31 }

// kernel: generator_forward.7
= control target key start
LH: loop header
LB: loop body
LE: loop exit
PB: predicated region body
PF: predicated region fallthrough
CT: control target
= control target key end

     0   :  { %s1263_s15 = smov 0   ;;  %s1265_s16 = smov 0   ;;  %s1542_s0 = inlined_call_operand.vmem [shape: bf16[32,128], index: 0, kind: input, shape index: {}]   ;;  %s1543_s1 = inlined_call_operand.vmem [shape: bf16[128,1024], index: 1, kind: input, shape index: {}]   ;;  %s1544_s2 = inlined_call_operand.vmem [shape: f32[1,1024], index: 2, kind: input, shape index: {}]   ;;  %s1545_s3 = inlined_call_operand.vmem [shape: f32[1,1024], index: 3, kind: input, shape index: {}]   ;;  %s1546_s4 = inlined_call_operand.vmem [shape: f32[32,1024], index: 4, kind: output, shape index: {}]  }
   0x1   :  { %s1267_s17 = smov 0  }
   0x2 LB: > { %s26_s18 = sadd.s32 1, %s1231_s16  ;;  %p1113_p0 = scmp.ge.s32.totalorder %s1235_s17, 1  ;;  %s1235_s17 = sphi %s1267_s17, %s14_s17   ;;  %s1231_s16 = sphi %s1265_s16, %s1548_s16   ;;  %s1227_s15 = sphi %s1263_s15, %s1547_s15  }
   0x3   : > { %p28_p1 = scmp.ge.s32.totalorder %s26_s18, 2  ;;  %p208_p2 = scmp.lt.s32.totalorder %s1235_s17, 3 }
   0x5   : > { %s1550_s18 = smov (%p28_p1, %s26_s18), 0  ;;  %p209_p3 = pnand %p1113_p0, %p208_p2 }
   0x6   : > { %v289_v0 = vld [vmem:[%s1543_s1] sm:$0xff] (!%p209_p3)  ;;  %v290_v2 = vld [vmem:[%s1543_s1 + $0x8] sm:$0xff] (!%p209_p3)  ;;  %s1114_s25 = sshll.u32 (!%p209_p3), %s1227_s15, 1  ;;  %v1237_v8 = vmov (!%p209_p3), 0   ;;  %v291_v63 = vld [vmem:[%s1543_s1 + $0x10] sm:$0xff] (!%p209_p3) }
   0x7   : > { %212 = sbr.rel (%p209_p3) target bundleno = 294 (0x126), region = 36  ;;  %v293_v1 = vld [vmem:[%s1543_s1 + $0x20] sm:$0xff] (!%p209_p3)  ;;  %v294_v4 = vld [vmem:[%s1543_s1 + $0x28] sm:$0xff] (!%p209_p3)  ;;  %711 = vmatprep.mubr.bf16.mxu0 (!%p209_p3), %v1237_v8  ;;  %754 = vmatprep.mubr.bf16.mxu1 (!%p209_p3), %v1237_v8  ;;  %p253_p4 = scmp.lt.s32.totalorder (!%p209_p3), %s1114_s25, 3 }
   0x8   : > { %v1121_v3 = vcombine.high (!%p209_p3), %v289_v0, %v293_v1  ;;  %v1120_v5 = vcombine.low (!%p209_p3), %v289_v0, %v293_v1  ;;  %v297_v6 = vld [vmem:[%s1543_s1 + $0x40] sm:$0xff] (!%p209_p3)  ;;  %v1123_v9 = vcombine.high (!%p209_p3), %v290_v2, %v294_v4  ;;  %v1122_v10 = vcombine.low (!%p209_p3), %v290_v2, %v294_v4  ;;  %v298_v12 = vld [vmem:[%s1543_s1 + $0x48] sm:$0xff] (!%p209_p3)  ;;  %v295_v0 = vld [vmem:[%s1543_s1 + $0x30] sm:$0xff] (!%p209_p3) }
   0x9   : > { %v301_v7 = vld [vmem:[%s1543_s1 + $0x60] sm:$0xff] (!%p209_p3)  ;;  %v302_v13 = vld [vmem:[%s1543_s1 + $0x68] sm:$0xff] (!%p209_p3)  ;;  %v292_v1 = vld [vmem:[%s1543_s1 + $0x18] sm:$0xff] (!%p209_p3) }
   0xa   : > { %v1129_v11 = vcombine.high (!%p209_p3), %v297_v6, %v301_v7  ;;  %v305_v14 = vld [vmem:[%s1543_s1 + $0x80] sm:$0xff] (!%p209_p3)  ;;  %679 = vmatprep.subr.bf16.mxu0 (!%p209_p3), %v1121_v3  ;;  %v1131_v15 = vcombine.high (!%p209_p3), %v298_v12, %v302_v13  ;;  %v306_v17 = vld [vmem:[%s1543_s1 + $0x88] sm:$0xff] (!%p209_p3)  ;;  %722 = vmatprep.subr.bf16.mxu1 (!%p209_p3), %v1123_v9  ;;  %v1128_v19 = vcombine.low (!%p209_p3), %v297_v6, %v301_v7  ;;  %v296_v2 = vld [vmem:[%s1543_s1 + $0x38] sm:$0xff] (!%p209_p3) }
   0xb   : > { %v309_v16 = vld [vmem:[%s1543_s1 + $0xa0] sm:$0xff] (!%p209_p3)  ;;  %v310_v18 = vld [vmem:[%s1543_s1 + $0xa8] sm:$0xff] (!%p209_p3)  ;;  %680 = vmatpush1.bf16.msra.mxu0 (!%p209_p3), %v1120_v5  ;;  %723 = vmatpush1.bf16.msra.mxu1 (!%p209_p3), %v1122_v10  ;;  %v1130_v20 = vcombine.low (!%p209_p3), %v298_v12, %v302_v13  ;;  %v1125_v5 = vcombine.high (!%p209_p3), %v291_v63, %v295_v0  ;;  %v1127_v6 = vcombine.high (!%p209_p3), %v292_v1, %v296_v2  ;;  %v299_v7 = vld [vmem:[%s1543_s1 + $0x50] sm:$0xff] (!%p209_p3) }
   0xc   : > { %681 = vmatprep.subr.bf16.mxu0 (!%p209_p3), %v1129_v11  ;;  %v1137_v21 = vcombine.high (!%p209_p3), %v305_v14, %v309_v16  ;;  %724 = vmatprep.subr.bf16.mxu1 (!%p209_p3), %v1131_v15  ;;  %v1139_v22 = vcombine.high (!%p209_p3), %v306_v17, %v310_v18  ;;  %v313_v23 = vld [vmem:[%s1543_s1 + $0xc0] sm:$0xff] (!%p209_p3)  ;;  %v314_v25 = vld [vmem:[%s1543_s1 + $0xc8] sm:$0xff] (!%p209_p3)  ;;  %v1136_v27 = vcombine.low (!%p209_p3), %v305_v14, %v309_v16  ;;  %v303_v9 = vld [vmem:[%s1543_s1 + $0x70] sm:$0xff] (!%p209_p3) }
   0xd   : > { %v317_v24 = vld [vmem:[%s1543_s1 + $0xe0] sm:$0xff] (!%p209_p3)  ;;  %v318_v26 = vld [vmem:[%s1543_s1 + $0xe8] sm:$0xff] (!%p209_p3)  ;;  %v1138_v28 = vcombine.low (!%p209_p3), %v306_v17, %v310_v18  ;;  %v300_v11 = vld [vmem:[%s1543_s1 + $0x58] sm:$0xff] (!%p209_p3)  ;;  %v1124_v13 = vcombine.low (!%p209_p3), %v291_v63, %v295_v0  ;;  %v1126_v14 = vcombine.low (!%p209_p3), %v292_v1, %v296_v2  ;;  %v1133_v15 = vcombine.high (!%p209_p3), %v299_v7, %v303_v9 }
   0xe   : > { %s1552_s25 = smov (!%p253_p4, %s1114_s25), 3  ;;  %v1145_v29 = vcombine.high %v313_v23, %v317_v24  ;;  %v1147_v30 = vcombine.high %v314_v25, %v318_v26  ;;  %v321_v31 = vld [vmem:[%s1543_s1 + $0x100] sm:$0xff]  ;;  %v322_v33 = vld [vmem:[%s1543_s1 + $0x108] sm:$0xff]  ;;  %v1144_v35 = vcombine.low %v313_v23, %v317_v24  ;;  %v1146_v36 = vcombine.low %v314_v25, %v318_v26  ;;  %v304_v12 = vld [vmem:[%s1543_s1 + $0x78] sm:$0xff] }
   0xf   : > { %s1115_s26 = sshll.u32 %s1552_s25, 2  ;;  %682 = vmatpush1.bf16.msra.mxu0 %v1128_v19  ;;  %725 = vmatpush1.bf16.msra.mxu1 %v1130_v20  ;;  %v325_v32 = vld [vmem:[%s1543_s1 + $0x120] sm:$0xff]  ;;  %v326_v34 = vld [vmem:[%s1543_s1 + $0x128] sm:$0xff]  ;;  %v1135_v16 = vcombine.high %v300_v11, %v304_v12  ;;  %v307_v17 = vld [vmem:[%s1543_s1 + $0x90] sm:$0xff]  ;;  %v853_v2 = vlaneseq  ;;  %s1186_s24 = sshll.u32 %s1552_s25, 6 }
  0x10   : > { %683 = vmatprep.subr.bf16.mxu0 %v1137_v21  ;;  %s1340_s7 = scalar_lea.vmem %s1542_s0, %s1115_s26  ;;  %726 = vmatprep.subr.bf16.mxu1 %v1139_v22  ;;  %v1153_v37 = vcombine.high %v321_v31, %v325_v32  ;;  %v1155_v38 = vcombine.high %v322_v33, %v326_v34  ;;  %v329_v39 = vld [vmem:[%s1543_s1 + $0x140] sm:$0xff]  ;;  %v330_v41 = vld [vmem:[%s1543_s1 + $0x148] sm:$0xff]  ;;  %v1152_v43 = vcombine.low %v321_v31, %v325_v32  ;;  %v311_v18 = vld [vmem:[%s1543_s1 + $0xb0] sm:$0xff]  ;;  %s1511_s28 = scalar_lea.vmem %s1546_s4, %s1186_s24 }
  0x11   : > { %v333_v40 = vld [vmem:[%s1543_s1 + $0x160] sm:$0xff]  ;;  %v334_v42 = vld [vmem:[%s1543_s1 + $0x168] sm:$0xff]  ;;  %v1154_v44 = vcombine.low %v322_v33, %v326_v34  ;;  %v308_v19 = vld [vmem:[%s1543_s1 + $0x98] sm:$0xff]  ;;  %v1132_v21 = vcombine.low %v299_v7, %v303_v9  ;;  %v1134_v22 = vcombine.low %v300_v11, %v304_v12  ;;  %v1141_v23 = vcombine.high %v307_v17, %v311_v18 }
  0x12   : > { %v1161_v45 = vcombine.high %v329_v39, %v333_v40  ;;  %v1163_v46 = vcombine.high %v330_v41, %v334_v42  ;;  %v337_v47 = vld [vmem:[%s1543_s1 + $0x180] sm:$0xff]  ;;  %v338_v49 = vld [vmem:[%s1543_s1 + $0x188] sm:$0xff]  ;;  %v1160_v51 = vcombine.low %v329_v39, %v333_v40  ;;  %v1162_v52 = vcombine.low %v330_v41, %v334_v42  ;;  %v312_v20 = vld [vmem:[%s1543_s1 + $0xb8] sm:$0xff] }
  0x13   : > { %684 = vmatpush1.bf16.msra.mxu0 %v1136_v27  ;;  %727 = vmatpush1.bf16.msra.mxu1 %v1138_v28  ;;  %v341_v48 = vld [vmem:[%s1543_s1 + $0x1a0] sm:$0xff]  ;;  %v342_v50 = vld [vmem:[%s1543_s1 + $0x1a8] sm:$0xff]  ;;  %v1143_v24 = vcombine.high %v308_v19, %v312_v20  ;;  %v315_v25 = vld [vmem:[%s1543_s1 + $0xd0] sm:$0xff] }
  0x14   : > { %685 = vmatprep.subr.bf16.mxu0 %v1145_v29  ;;  %728 = vmatprep.subr.bf16.mxu1 %v1147_v30  ;;  %v1169_v53 = vcombine.high %v337_v47, %v341_v48  ;;  %v1171_v54 = vcombine.high %v338_v49, %v342_v50  ;;  %v345_v55 = vld [vmem:[%s1543_s1 + $0x1c0] sm:$0xff]  ;;  %v346_v57 = vld [vmem:[%s1543_s1 + $0x1c8] sm:$0xff]  ;;  %v1168_v59 = vcombine.low %v337_v47, %v341_v48  ;;  %v319_v26 = vld [vmem:[%s1543_s1 + $0xf0] sm:$0xff] }
  0x15   : > { %v349_v56 = vld [vmem:[%s1543_s1 + $0x1e0] sm:$0xff]  ;;  %v350_v58 = vld [vmem:[%s1543_s1 + $0x1e8] sm:$0xff]  ;;  %v1170_v60 = vcombine.low %v338_v49, %v342_v50  ;;  %v316_v27 = vld [vmem:[%s1543_s1 + $0xd8] sm:$0xff]  ;;  %v1140_v29 = vcombine.low %v307_v17, %v311_v18  ;;  %v1142_v30 = vcombine.low %v308_v19, %v312_v20  ;;  %v1149_v31 = vcombine.high %v315_v25, %v319_v26 }
  0x16   : > { %v1177_v61 = vcombine.high %v345_v55, %v349_v56  ;;  %v1179_v62 = vcombine.high %v346_v57, %v350_v58  ;;  %v1176_v3 = vcombine.low %v345_v55, %v349_v56  ;;  %v1178_v4 = vcombine.low %v346_v57, %v350_v58  ;;  %v1409_v10 = vld [vmem:[%s1340_s7] sm:$0xff]   ;;  %v320_v28 = vld [vmem:[%s1543_s1 + $0xf8] sm:$0xff]  ;;  %v323_v33 = vld [vmem:[%s1543_s1 + $0x110] sm:$0xff] }
  0x17   : > { %686 = vmatpush1.bf16.msra.mxu0 %v1144_v35  ;;  %729 = vmatpush1.bf16.msra.mxu1 %v1146_v36  ;;  %v1151_v32 = vcombine.high %v316_v27, %v320_v28  ;;  %v327_v34 = vld [vmem:[%s1543_s1 + $0x130] sm:$0xff]  ;;  %v328_v35 = vld [vmem:[%s1543_s1 + $0x138] sm:$0xff]  ;;  %v1148_v36 = vcombine.low %v315_v25, %v319_v26  ;;  %v909_v11 = vld [vmem:[%s1545_s3] sm:$0xff] }
  0x18   : > { %687 = vmatprep.subr.bf16.mxu0 %v1153_v37  ;;  %730 = vmatprep.subr.bf16.mxu1 %v1155_v38  ;;  %v1150_v37 = vcombine.low %v316_v27, %v320_v28  ;;  %v1157_v38 = vcombine.high %v323_v33, %v327_v34  ;;  %v331_v40 = vld [vmem:[%s1543_s1 + $0x150] sm:$0xff]  ;;  %v332_v42 = vld [vmem:[%s1543_s1 + $0x158] sm:$0xff] }
  0x19   : > { %v335_v41 = vld [vmem:[%s1543_s1 + $0x170] sm:$0xff]  ;;  %v340_v50 = vld [vmem:[%s1543_s1 + $0x198] sm:$0xff] }
  0x1a   : > { %v339_v48 = vld [vmem:[%s1543_s1 + $0x190] sm:$0xff]  ;;  %v348_v58 = vld [vmem:[%s1543_s1 + $0x1d8] sm:$0xff] }
  0x1b   : > { %688 = vmatpush1.bf16.msra.mxu0 %v1152_v43  ;;  %731 = vmatpush1.bf16.msra.mxu1 %v1154_v44  ;;  %v336_v43 = vld [vmem:[%s1543_s1 + $0x178] sm:$0xff]  ;;  %v1156_v44 = vcombine.low %v323_v33, %v327_v34  ;;  %v343_v49 = vld [vmem:[%s1543_s1 + $0x1b0] sm:$0xff] }
  0x1c   : > { %689 = vmatprep.subr.bf16.mxu0 %v1161_v45  ;;  %732 = vmatprep.subr.bf16.mxu1 %v1163_v46  ;;  %v1165_v46 = vcombine.high %v331_v40, %v335_v41  ;;  %v1167_v47 = vcombine.high %v332_v42, %v336_v43  ;;  %v347_v56 = vld [vmem:[%s1543_s1 + $0x1d0] sm:$0xff] }
  0x1d   : > { %v351_v57 = vld [vmem:[%s1543_s1 + $0x1f0] sm:$0xff] }
  0x1e   : > { %v1180_v0 = vcombine.low %v347_v56, %v351_v57 }
  0x1f   : > { %690 = vmatpush1.bf16.msra.mxu0 %v1160_v51  ;;  %733 = vmatpush1.bf16.msra.mxu1 %v1162_v52  ;;  %v344_v51 = vld [vmem:[%s1543_s1 + $0x1b8] sm:$0xff]  ;;  %v1164_v52 = vcombine.low %v331_v40, %v335_v41 }
  0x20   : > { %691 = vmatprep.subr.bf16.mxu0 %v1169_v53  ;;  %734 = vmatprep.subr.bf16.mxu1 %v1171_v54  ;;  %v1166_v53 = vcombine.low %v332_v42, %v336_v43  ;;  %v1173_v54 = vcombine.high %v339_v48, %v343_v49  ;;  %v1175_v55 = vcombine.high %v340_v50, %v344_v51 }
  0x23   : > { %692 = vmatpush1.bf16.msra.mxu0 %v1168_v59  ;;  %735 = vmatpush1.bf16.msra.mxu1 %v1170_v60  ;;  %v352_v59 = vld [vmem:[%s1543_s1 + $0x1f8] sm:$0xff]  ;;  %v1172_v60 = vcombine.low %v339_v48, %v343_v49 }
  0x24   : > { %693 = vmatprep.subr.bf16.mxu0 %v1177_v61  ;;  %736 = vmatprep.subr.bf16.mxu1 %v1179_v62  ;;  %v1174_v61 = vcombine.low %v340_v50, %v344_v51  ;;  %v1181_v62 = vcombine.high %v347_v56, %v351_v57  ;;  %v1183_v63 = vcombine.high %v348_v58, %v352_v59 }
  0x25   : > { %v1182_v1 = vcombine.low %v348_v58, %v352_v59 }
  0x27   : > { %694 = vmatpush1.bf16.msra.mxu0 %v1176_v3  ;;  %737 = vmatpush1.bf16.msra.mxu1 %v1178_v4  ;;  %v1495_v3 = vshrl.u32 %v853_v2, 7 }
  0x28   : > { %765 = vmatprep.subr.bf16.mxu0 %v1125_v5  ;;  %808 = vmatprep.subr.bf16.mxu1 %v1127_v6  ;;  %v851_v5 = vld [vmem:[%s1544_s2] sm:$0xff] }
  0x29   : > { %v855_v4 = vsub.s32 0, %v1495_v3  ;;  %v863_v6 = vsub.s32 2, %v1495_v3  ;;  %v859_v7 = vsub.s32 1, %v1495_v3  ;;  %v867_v9 = vsub.s32 3, %v1495_v3 }
  0x2a   : > { %712 = vmatmul.mubr.bf16.vlgmr.msra.gmra.mrb[0].mxu0 %v1409_v10  ;;  %755 = vmatmul.mubr.bf16.vlgmr.msra.gmra.mrb[0].mxu1 %v1409_v10  ;;  %v871_v42 = vsub.s32 4, %v1495_v3  ;;  %v879_v43 = vsub.s32 6, %v1495_v3 }
  0x2b   : > { %766 = vmatpush1.bf16.msra.mxu0 %v1124_v13  ;;  %809 = vmatpush1.bf16.msra.mxu1 %v1126_v14  ;;  %v864_v12 = vrot.slane %v851_v5, %v863_v6  ;;  %v860_v13 = vrot.slane %v851_v5, %v859_v7  ;;  %v914_v14 = vrot.slane %v909_v11, %v855_v4 }
  0x2c   : > { %767 = vmatprep.subr.bf16.mxu0 %v1133_v15  ;;  %810 = vmatprep.subr.bf16.mxu1 %v1135_v16  ;;  %v868_v15 = vrot.slane %v851_v5, %v867_v9  ;;  %v922_v17 = vrot.slane %v909_v11, %v863_v6  ;;  %v918_v18 = vrot.slane %v909_v11, %v859_v7 }
  0x2d   : > { %797 = vmatprep.mubr.bf16.mxu0 %v1237_v8  ;;  %840 = vmatprep.mubr.bf16.mxu1 %v1237_v8  ;;  %v324_v8 = vld [vmem:[%s1543_s1 + $0x118] sm:$0xff]  ;;  %v930_v49 = vrot.slane %v909_v11, %v871_v42 }
  0x2e   : > { %v1159_v39 = vcombine.high %v324_v8, %v328_v35  ;;  %v1158_v45 = vcombine.low %v324_v8, %v328_v35 }
  0x2f   : > { %768 = vmatpush1.bf16.msra.mxu0 %v1132_v21  ;;  %811 = vmatpush1.bf16.msra.mxu1 %v1134_v22  ;;  %v926_v22 = vrot.slane %v909_v11, %v867_v9 }
  0x30   : > { %769 = vmatprep.subr.bf16.mxu0 %v1141_v23  ;;  %812 = vmatprep.subr.bf16.mxu1 %v1143_v24 }
  0x33   : > { %770 = vmatpush1.bf16.msra.mxu0 %v1140_v29  ;;  %813 = vmatpush1.bf16.msra.mxu1 %v1142_v30 }
  0x34   : > { %771 = vmatprep.subr.bf16.mxu0 %v1149_v31  ;;  %814 = vmatprep.subr.bf16.mxu1 %v1151_v32 }
  0x37   : > { %772 = vmatpush1.bf16.msra.mxu0 %v1148_v36  ;;  %815 = vmatpush1.bf16.msra.mxu1 %v1150_v37 }
  0x38   : > { %773 = vmatprep.subr.bf16.mxu0 %v1157_v38  ;;  %816 = vmatprep.subr.bf16.mxu1 %v1159_v39 }
  0x3b   : > { %774 = vmatpush1.bf16.msra.mxu0 %v1156_v44  ;;  %817 = vmatpush1.bf16.msra.mxu1 %v1158_v45  ;;  %v875_v44 = vsub.s32 5, %v1495_v3  ;;  %v883_v45 = vsub.s32 7, %v1495_v3 }
  0x3c   : > { %775 = vmatprep.subr.bf16.mxu0 %v1165_v46  ;;  %818 = vmatprep.subr.bf16.mxu1 %v1167_v47  ;;  %v872_v46 = vrot.slane %v851_v5, %v871_v42  ;;  %v880_v47 = vrot.slane %v851_v5, %v879_v43 }
  0x3d   : > { %v876_v48 = vrot.slane %v851_v5, %v875_v44  ;;  %v884_v50 = vrot.slane %v851_v5, %v883_v45  ;;  %v942_v57 = vrot.slane %v909_v11, %v883_v45 }
  0x3f   : > { %776 = vmatpush1.bf16.msra.mxu0 %v1164_v52  ;;  %819 = vmatpush1.bf16.msra.mxu1 %v1166_v53  ;;  %v938_v52 = vrot.slane %v909_v11, %v879_v43  ;;  %v934_v53 = vrot.slane %v909_v11, %v875_v44 }
  0x40   : > { %777 = vmatprep.subr.bf16.mxu0 %v1173_v54  ;;  %820 = vmatprep.subr.bf16.mxu1 %v1175_v55 }
  0x43   : > { %778 = vmatpush1.bf16.msra.mxu0 %v1172_v60  ;;  %821 = vmatpush1.bf16.msra.mxu1 %v1174_v61 }
  0x44   : > { %779 = vmatprep.subr.bf16.mxu0 %v1181_v62  ;;  %822 = vmatprep.subr.bf16.mxu1 %v1183_v63 }
  0x47   : > { %780 = vmatpush1.bf16.msra.mxu0 %v1180_v0  ;;  %823 = vmatpush1.bf16.msra.mxu1 %v1182_v1 }
  0x4a   : > { %798 = vmatmul.mubr.bf16.vlgmr.msra.gmra.mrb[4].mxu0 %v1409_v10  ;;  %841 = vmatmul.mubr.bf16.vlgmr.msra.gmra.mrb[4].mxu1 %v1409_v10  ;;  %v856_v10 = vrot.slane %v851_v5, %v855_v4 }
  0xfd   : > { %v713_v16 = vpop.f32.mrb[0].mxu0  ;;  %v756_v20 = vpop.f32.mrb[0].mxu1 }
  0xfe   : > { %v893_v19 = vmul.f32 %v856_v10, %v713_v16  ;;  %v715_v21 = vpop.f32.mrb[1].mxu0  ;;  %v895_v23 = vmul.f32 %v864_v12, %v756_v20  ;;  %v758_v25 = vpop.f32.mrb[1].mxu1 }
  0xff   : > { %v894_v24 = vmul.f32 %v860_v13, %v715_v21  ;;  %v717_v26 = vpop.f32.mrb[2].mxu0  ;;  %v896_v28 = vmul.f32 %v868_v15, %v758_v25  ;;  %v760_v30 = vpop.f32.mrb[2].mxu1 }
 0x100   : > { %v951_v27 = vadd.f32 %v914_v14, %v893_v19  ;;  %v901_v29 = vmul.f32 %v856_v10, %v717_v26  ;;  %v719_v31 = vpop.f32.mrb[3].mxu0  ;;  %v953_v32 = vadd.f32 %v922_v17, %v895_v23  ;;  %v903_v34 = vmul.f32 %v864_v12, %v760_v30  ;;  %v762_v35 = vpop.f32.mrb[3].mxu1 }
 0x101   : > { %v952_v33 = vadd.f32 %v918_v18, %v894_v24  ;;  %v902_v8 = vmul.f32 %v860_v13, %v719_v31  ;;  %v954_v36 = vadd.f32 %v926_v22, %v896_v28  ;;  %v904_v38 = vmul.f32 %v868_v15, %v762_v35 }
 0x102   : > { %967 = vst [vmem:[%s1511_s28] sm:$0xff] %v951_v27  ;;  %v959_v37 = vadd.f32 %v914_v14, %v901_v29  ;;  %969 = vst [vmem:[%s1511_s28 + $0x10] sm:$0xff] %v953_v32  ;;  %v961_v39 = vadd.f32 %v922_v17, %v903_v34 }
 0x103   : > { %968 = vst [vmem:[%s1511_s28 + $0x8] sm:$0xff] %v952_v33  ;;  %v960_v40 = vadd.f32 %v918_v18, %v902_v8  ;;  %970 = vst [vmem:[%s1511_s28 + $0x18] sm:$0xff] %v954_v36  ;;  %v962_v41 = vadd.f32 %v926_v22, %v904_v38 }
 0x104   : > { %975 = vst [vmem:[%s1511_s28 + $0x40] sm:$0xff] %v959_v37  ;;  %977 = vst [vmem:[%s1511_s28 + $0x50] sm:$0xff] %v961_v39 }
 0x105   : > { %976 = vst [vmem:[%s1511_s28 + $0x48] sm:$0xff] %v960_v40  ;;  %978 = vst [vmem:[%s1511_s28 + $0x58] sm:$0xff] %v962_v41 }
 0x11d   : > { %v799_v51 = vpop.f32.mrb[4].mxu0  ;;  %v842_v55 = vpop.f32.mrb[4].mxu1 }
 0x11e   : > { %v897_v54 = vmul.f32 %v872_v46, %v799_v51  ;;  %v801_v56 = vpop.f32.mrb[5].mxu0  ;;  %v899_v58 = vmul.f32 %v880_v47, %v842_v55  ;;  %v844_v60 = vpop.f32.mrb[5].mxu1 }
 0x11f   : > { %v898_v59 = vmul.f32 %v876_v48, %v801_v56  ;;  %v803_v61 = vpop.f32.mrb[6].mxu0  ;;  %v900_v63 = vmul.f32 %v884_v50, %v844_v60  ;;  %v846_v1 = vpop.f32.mrb[6].mxu1 }
 0x120   : > { %v955_v62 = vadd.f32 %v930_v49, %v897_v54  ;;  %v905_v0 = vmul.f32 %v872_v46, %v803_v61  ;;  %v805_v2 = vpop.f32.mrb[7].mxu0  ;;  %v957_v3 = vadd.f32 %v938_v52, %v899_v58  ;;  %v907_v5 = vmul.f32 %v880_v47, %v846_v1  ;;  %v848_v7 = vpop.f32.mrb[7].mxu1 }
 0x121   : > { %v956_v4 = vadd.f32 %v934_v53, %v898_v59  ;;  %v906_v6 = vmul.f32 %v876_v48, %v805_v2  ;;  %v958_v9 = vadd.f32 %v942_v57, %v900_v63  ;;  %v908_v10 = vmul.f32 %v884_v50, %v848_v7 }
 0x122   : > { %971 = vst [vmem:[%s1511_s28 + $0x20] sm:$0xff] %v955_v62  ;;  %v963_v11 = vadd.f32 %v930_v49, %v905_v0  ;;  %973 = vst [vmem:[%s1511_s28 + $0x30] sm:$0xff] %v957_v3  ;;  %v965_v12 = vadd.f32 %v938_v52, %v907_v5 }
 0x123   : > { %972 = vst [vmem:[%s1511_s28 + $0x28] sm:$0xff] %v956_v4  ;;  %v964_v13 = vadd.f32 %v934_v53, %v906_v6  ;;  %974 = vst [vmem:[%s1511_s28 + $0x38] sm:$0xff] %v958_v9  ;;  %v966_v14 = vadd.f32 %v942_v57, %v908_v10 }
 0x124   : > { %979 = vst [vmem:[%s1511_s28 + $0x60] sm:$0xff] %v963_v11  ;;  %981 = vst [vmem:[%s1511_s28 + $0x70] sm:$0xff] %v965_v12 }
 0x125   : > { %980 = vst [vmem:[%s1511_s28 + $0x68] sm:$0xff] %v964_v13  ;;  %982 = vst [vmem:[%s1511_s28 + $0x78] sm:$0xff] %v966_v14 }
 0x126 PF: > { %s14_s17 = sadd.s32 1, %s1235_s17   ;;  %s1547_s15 = smov %s1231_s16 }
 0x127   : > { %p11_p5 = scmp.ge.s32.totalorder %s14_s17, 4   ;;  %s1548_s16 = smov %s1550_s18 }
 0x129   :  { %13 = sbr.rel (!%p11_p5) target bundleno = 2 (0x2), region = 75 }

// kernel: generator_forward.6
= control target key start
LH: loop header
LB: loop body
LE: loop exit
PB: predicated region body
PF: predicated region fallthrough
CT: control target
= control target key end

     0   :  { %vm109_vm0 = vcmask 1045504   ;;  %v837_v3 = vmov 0   ;;  %vm105_vm1 = vcmask 97280   ;;  %v506_v42 = vlaneseq  ;;  %s1142_s1 = inlined_call_operand.vmem [shape: bf16[12,2048], index: 1, kind: input, shape index: {}]   ;;  %s1143_s0 = inlined_call_operand.vmem [shape: bf16[16,12], index: 0, kind: input, shape index: {}]   ;;  %s1144_s2 = inlined_call_operand.vmem [shape: f32[1,2048], index: 2, kind: input, shape index: {}]   ;;  %s1145_s3 = inlined_call_operand.vmem [shape: f32[1,2048], index: 3, kind: input, shape index: {}]   ;;  %s1146_s4 = inlined_call_operand.vmem [shape: f32[16,2048], index: 4, kind: output, shape index: {}]  }
   0x1   :  { %v20_v0 = vld [vmem:[%s1142_s1] sm:$0xff]  ;;  %v21_v2 = vld [vmem:[%s1142_s1 + $0x8] sm:$0xff]  ;;  %190 = vmatprep.mubr.bf16.mxu0 %v837_v3  ;;  %233 = vmatprep.mubr.bf16.mxu1 %v837_v3  ;;  %v22_v10 = vld [vmem:[%s1142_s1 + $0x10] sm:$0xff] }
   0x2   :  { %v28_v1 = vld [vmem:[%s1142_s1 + $0x40] sm:$0x33]  ;;  %v29_v5 = vld [vmem:[%s1142_s1 + $0x48] sm:$0x33]  ;;  %v30_v11 = vld [vmem:[%s1142_s1 + $0x50] sm:$0x33] }
   0x3   :  { %v804_v4 = vcombine.high %v20_v0, %v28_v1  ;;  %v803_v6 = vcombine.low %v20_v0, %v28_v1  ;;  %v806_v7 = vcombine.high %v21_v2, %v29_v5  ;;  %v805_v8 = vcombine.low %v21_v2, %v29_v5  ;;  %v880_v9 = vld [vmem:[%s1143_s0] sm:$0xff]   ;;  %v23_v14 = vld [vmem:[%s1142_s1 + $0x18] sm:$0xff]  ;;  %v25_v22 = vld [vmem:[%s1142_s1 + $0x28] sm:$0xff] }
   0x4   :  { %v808_v13 = vcombine.high %v22_v10, %v30_v11  ;;  %v31_v15 = vld [vmem:[%s1142_s1 + $0x58] sm:$0x33]  ;;  %v807_v16 = vcombine.low %v22_v10, %v30_v11  ;;  %v24_v17 = vld [vmem:[%s1142_s1 + $0x20] sm:$0xff]  ;;  %v33_v23 = vld [vmem:[%s1142_s1 + $0x68] sm:$0x33]  ;;  %v507_v43 = vshrl.u32 %v506_v42, 7 }
   0x5   :  { %819 = vmatprep.subr.msk.bf16.mxu0 %vm109_vm0, %v804_v4  ;;  %v111_v12 = vsel %vm109_vm0, %v803_v6, 0  ;;  %821 = vmatprep.subr.msk.bf16.mxu1 %vm109_vm0, %v806_v7  ;;  %v117_v18 = vsel %vm109_vm0, %v805_v8, 0  ;;  %v810_v19 = vcombine.high %v23_v14, %v31_v15  ;;  %v809_v20 = vcombine.low %v23_v14, %v31_v15  ;;  %v32_v21 = vld [vmem:[%s1142_s1 + $0x60] sm:$0x33]  ;;  %v26_v30 = vld [vmem:[%s1142_s1 + $0x30] sm:$0xff]  ;;  %v27_v32 = vld [vmem:[%s1142_s1 + $0x38] sm:$0xff] }
   0x6   :  { %159 = vmatpush1.bf16.msra.mxu0 %v111_v12  ;;  %202 = vmatpush1.bf16.msra.mxu1 %v117_v18  ;;  %v123_v24 = vsel %vm109_vm0, %v807_v16, 0  ;;  %v812_v26 = vcombine.high %v24_v17, %v32_v21  ;;  %v814_v27 = vcombine.high %v25_v22, %v33_v23  ;;  %v811_v28 = vcombine.low %v24_v17, %v32_v21  ;;  %v34_v31 = vld [vmem:[%s1142_s1 + $0x70] sm:$0x33]  ;;  %v35_v33 = vld [vmem:[%s1142_s1 + $0x78] sm:$0x33]  ;;  %v502_v45 = vld [vmem:[%s1144_s2] sm:$0xff] }
   0x7   :  { %823 = vmatprep.subr.msk.bf16.mxu0 %vm109_vm0, %v808_v13  ;;  %825 = vmatprep.subr.msk.bf16.mxu1 %vm109_vm0, %v810_v19  ;;  %v129_v25 = vsel %vm109_vm0, %v809_v20, 0  ;;  %v813_v29 = vcombine.low %v25_v22, %v33_v23  ;;  %v816_v36 = vcombine.high %v26_v30, %v34_v31  ;;  %v818_v37 = vcombine.high %v27_v32, %v35_v33  ;;  %v970_v49 = vld [vmem:[%s1145_s3] sm:$0xff] }
   0x8   :  { %v135_v34 = vsel %vm109_vm0, %v811_v28, 0  ;;  %v815_v38 = vcombine.low %v26_v30, %v34_v31  ;;  %v817_v39 = vcombine.low %v27_v32, %v35_v33  ;;  %v956_v44 = vsub.s32 0, %v507_v43  ;;  %v999_v28 = vld [vmem:[%s1144_s2 + $0x8] sm:$0xff] }
   0x9   :  { %820 = vmatmul.mubr.msk.bf16.vlgmr.msra.gmra.mrb[0].mxu0 %vm105_vm1, %v880_v9  ;;  %822 = vmatmul.mubr.msk.bf16.vlgmr.msra.gmra.mrb[0].mxu1 %vm105_vm1, %v880_v9  ;;  %v141_v35 = vsel %vm109_vm0, %v813_v29, 0  ;;  %v961_v46 = vsub.s32 2, %v507_v43  ;;  %v963_v47 = vsub.s32 1, %v507_v43  ;;  %v965_v48 = vsub.s32 3, %v507_v43 }
   0xa   :  { %245 = vmatpush1.bf16.msra.mxu0 %v123_v24  ;;  %288 = vmatpush1.bf16.msra.mxu1 %v129_v25  ;;  %v147_v40 = vsel %vm109_vm0, %v815_v38, 0  ;;  %v153_v41 = vsel %vm109_vm0, %v817_v39, 0  ;;  %v509_v50 = vrot.slane %v502_v45, %v956_v44  ;;  %v973_v51 = vsub.s32 4, %v507_v43 }
   0xb   :  { %276 = vmatprep.mubr.bf16.mxu0 %v837_v3  ;;  %319 = vmatprep.mubr.bf16.mxu1 %v837_v3  ;;  %v517_v52 = vrot.slane %v502_v45, %v961_v46  ;;  %v513_v53 = vrot.slane %v502_v45, %v963_v47  ;;  %v977_v54 = vsub.s32 6, %v507_v43  ;;  %v979_v55 = vsub.s32 5, %v507_v43 }
   0xc   :  { %827 = vmatprep.subr.msk.bf16.mxu0 %vm109_vm0, %v812_v26  ;;  %829 = vmatprep.subr.msk.bf16.mxu1 %vm109_vm0, %v814_v27  ;;  %v625_v56 = vrot.slane %v970_v49, %v956_v44  ;;  %v521_v57 = vrot.slane %v502_v45, %v965_v48  ;;  %v984_v58 = vsub.s32 7, %v507_v43  ;;  %v633_v60 = vrot.slane %v970_v49, %v961_v46 }
   0xd   :  { %v629_v61 = vrot.slane %v970_v49, %v963_v47  ;;  %v637_v1 = vrot.slane %v970_v49, %v965_v48  ;;  %v525_v2 = vrot.slane %v502_v45, %v973_v51  ;;  %v533_v7 = vrot.slane %v502_v45, %v977_v54 }
   0xe   :  { %v529_v8 = vrot.slane %v502_v45, %v979_v55  ;;  %v537_v14 = vrot.slane %v502_v45, %v984_v58  ;;  %v641_v32 = vrot.slane %v970_v49, %v973_v51  ;;  %v653_v42 = vrot.slane %v970_v49, %v984_v58 }
   0xf   :  { %v541_v43 = vrot.slane %v999_v28, %v956_v44 }
  0x11   :  { %824 = vmatmul.mubr.msk.bf16.vlgmr.msra.gmra.mrb[4].mxu0 %vm105_vm1, %v880_v9  ;;  %826 = vmatmul.mubr.msk.bf16.vlgmr.msra.gmra.mrb[4].mxu1 %vm105_vm1, %v880_v9 }
  0x12   :  { %331 = vmatpush1.bf16.msra.mxu0 %v135_v34  ;;  %374 = vmatpush1.bf16.msra.mxu1 %v141_v35 }
  0x13   :  { %362 = vmatprep.mubr.bf16.mxu0 %v837_v3  ;;  %405 = vmatprep.mubr.bf16.mxu1 %v837_v3 }
  0x14   :  { %831 = vmatprep.subr.msk.bf16.mxu0 %vm109_vm0, %v816_v36  ;;  %833 = vmatprep.subr.msk.bf16.mxu1 %vm109_vm0, %v818_v37  ;;  %v649_v36 = vrot.slane %v970_v49, %v977_v54  ;;  %v645_v37 = vrot.slane %v970_v49, %v979_v55  ;;  %v545_v49 = vrot.slane %v999_v28, %v963_v47 }
  0x19   :  { %828 = vmatmul.mubr.msk.bf16.vlgmr.msra.gmra.mrb[8].mxu0 %vm105_vm1, %v880_v9  ;;  %830 = vmatmul.mubr.msk.bf16.vlgmr.msra.gmra.mrb[8].mxu1 %vm105_vm1, %v880_v9 }
  0x1a   :  { %417 = vmatpush1.bf16.msra.mxu0 %v147_v40  ;;  %460 = vmatpush1.bf16.msra.mxu1 %v153_v41 }
  0x1b   :  { %448 = vmatprep.mubr.bf16.mxu0 %v837_v3  ;;  %491 = vmatprep.mubr.bf16.mxu1 %v837_v3 }
  0x21   :  { %832 = vmatmul.mubr.msk.bf16.vlgmr.msra.gmra.mrb[12].mxu0 %vm105_vm1, %v880_v9  ;;  %834 = vmatmul.mubr.msk.bf16.vlgmr.msra.gmra.mrb[12].mxu1 %vm105_vm1, %v880_v9 }
  0xdc   :  { %v192_v59 = vpop.f32.mrb[0].mxu0  ;;  %v235_v63 = vpop.f32.mrb[0].mxu1 }
  0xdd   :  { %v586_v62 = vmul.f32 %v509_v50, %v192_v59  ;;  %v194_v0 = vpop.f32.mrb[1].mxu0  ;;  %v588_v3 = vmul.f32 %v517_v52, %v235_v63  ;;  %v237_v5 = vpop.f32.mrb[1].mxu1  ;;  %v553_v63 = vrot.slane %v999_v28, %v965_v48 }
  0xde   :  { %v587_v4 = vmul.f32 %v513_v53, %v194_v0  ;;  %v196_v6 = vpop.f32.mrb[2].mxu0  ;;  %v589_v10 = vmul.f32 %v521_v57, %v237_v5  ;;  %v239_v12 = vpop.f32.mrb[2].mxu1 }
  0xdf   :  { %v702_v9 = vadd.f32 %v625_v56, %v586_v62  ;;  %v602_v11 = vmul.f32 %v509_v50, %v196_v6  ;;  %v198_v13 = vpop.f32.mrb[3].mxu0  ;;  %v704_v15 = vadd.f32 %v633_v60, %v588_v3  ;;  %v604_v17 = vmul.f32 %v517_v52, %v239_v12  ;;  %v241_v19 = vpop.f32.mrb[3].mxu1  ;;  %v1044_v6 = vld [vmem:[%s1145_s3 + $0x8] sm:$0xff] }
  0xe0   :  { %v703_v16 = vadd.f32 %v629_v61, %v587_v4  ;;  %v603_v18 = vmul.f32 %v513_v53, %v198_v13  ;;  %v705_v21 = vadd.f32 %v637_v1, %v589_v10  ;;  %v605_v23 = vmul.f32 %v521_v57, %v241_v19 }
  0xe1   :  { %v734_v20 = vmax.f32 %v702_v9, 0.0  ;;  %v718_v22 = vadd.f32 %v625_v56, %v602_v11  ;;  %v736_v24 = vmax.f32 %v704_v15, 0.0  ;;  %v720_v26 = vadd.f32 %v633_v60, %v604_v17 }
  0xe2   :  { %v735_v25 = vmax.f32 %v703_v16, 0.0  ;;  %v719_v27 = vadd.f32 %v629_v61, %v603_v18  ;;  %v737_v29 = vmax.f32 %v705_v21, 0.0  ;;  %v721_v31 = vadd.f32 %v637_v1, %v605_v23 }
  0xe3   :  { %766 = vst [vmem:[%s1146_s4] sm:$0xff] %v734_v20  ;;  %v750_v30 = vmax.f32 %v718_v22, 0.0  ;;  %768 = vst [vmem:[%s1146_s4 + $0x10] sm:$0xff] %v736_v24  ;;  %v752_v33 = vmax.f32 %v720_v26, 0.0  ;;  %v549_v56 = vrot.slane %v999_v28, %v961_v46  ;;  %v657_v18 = vrot.slane %v1044_v6, %v956_v44 }
  0xe4   :  { %767 = vst [vmem:[%s1146_s4 + $0x8] sm:$0xff] %v735_v25  ;;  %v751_v34 = vmax.f32 %v719_v27, 0.0  ;;  %v278_v35 = vpop.f32.mrb[4].mxu0  ;;  %769 = vst [vmem:[%s1146_s4 + $0x18] sm:$0xff] %v737_v29  ;;  %v753_v38 = vmax.f32 %v721_v31, 0.0  ;;  %v321_v40 = vpop.f32.mrb[4].mxu1  ;;  %v665_v21 = vrot.slane %v1044_v6, %v961_v46  ;;  %v661_v22 = vrot.slane %v1044_v6, %v963_v47 }
  0xe5   :  { %782 = vst [vmem:[%s1146_s4 + $0x80] sm:$0xff] %v750_v30  ;;  %v590_v39 = vmul.f32 %v525_v2, %v278_v35  ;;  %v280_v41 = vpop.f32.mrb[5].mxu0  ;;  %784 = vst [vmem:[%s1146_s4 + $0x90] sm:$0xff] %v752_v33  ;;  %v592_v45 = vmul.f32 %v533_v7, %v321_v40  ;;  %v323_v52 = vpop.f32.mrb[5].mxu1  ;;  %v669_v26 = vrot.slane %v1044_v6, %v965_v48 }
  0xe6   :  { %783 = vst [vmem:[%s1146_s4 + $0x88] sm:$0xff] %v751_v34  ;;  %v591_v50 = vmul.f32 %v529_v8, %v280_v41  ;;  %v282_v53 = vpop.f32.mrb[6].mxu0  ;;  %785 = vst [vmem:[%s1146_s4 + $0x98] sm:$0xff] %v753_v38  ;;  %v593_v59 = vmul.f32 %v537_v14, %v323_v52  ;;  %v325_v61 = vpop.f32.mrb[6].mxu1  ;;  %v557_v46 = vrot.slane %v999_v28, %v973_v51 }
  0xe7   :  { %v706_v57 = vadd.f32 %v641_v32, %v590_v39  ;;  %v606_v60 = vmul.f32 %v525_v2, %v282_v53  ;;  %v284_v62 = vpop.f32.mrb[7].mxu0  ;;  %v708_v0 = vadd.f32 %v649_v36, %v592_v45  ;;  %v608_v3 = vmul.f32 %v533_v7, %v325_v61  ;;  %v327_v5 = vpop.f32.mrb[7].mxu1 }
  0xe8   :  { %v707_v1 = vadd.f32 %v645_v37, %v591_v50  ;;  %v607_v4 = vmul.f32 %v529_v8, %v284_v62  ;;  %v709_v10 = vadd.f32 %v653_v42, %v593_v59  ;;  %v609_v12 = vmul.f32 %v537_v14, %v327_v5 }
  0xe9   :  { %v738_v9 = vmax.f32 %v706_v57, 0.0  ;;  %v722_v11 = vadd.f32 %v641_v32, %v606_v60  ;;  %v740_v2 = vmax.f32 %v708_v0, 0.0  ;;  %v724_v15 = vadd.f32 %v649_v36, %v608_v3 }
  0xea   :  { %v739_v13 = vmax.f32 %v707_v1, 0.0  ;;  %v723_v16 = vadd.f32 %v645_v37, %v607_v4  ;;  %v741_v7 = vmax.f32 %v709_v10, 0.0  ;;  %v725_v17 = vadd.f32 %v653_v42, %v609_v12 }
  0xeb   :  { %770 = vst [vmem:[%s1146_s4 + $0x20] sm:$0xff] %v738_v9  ;;  %v754_v8 = vmax.f32 %v722_v11, 0.0  ;;  %772 = vst [vmem:[%s1146_s4 + $0x30] sm:$0xff] %v740_v2  ;;  %v756_v14 = vmax.f32 %v724_v15, 0.0  ;;  %v565_v31 = vrot.slane %v999_v28, %v977_v54  ;;  %v561_v48 = vrot.slane %v999_v28, %v979_v55 }
  0xec   :  { %771 = vst [vmem:[%s1146_s4 + $0x28] sm:$0xff] %v739_v13  ;;  %v755_v19 = vmax.f32 %v723_v16, 0.0  ;;  %v364_v20 = vpop.f32.mrb[8].mxu0  ;;  %773 = vst [vmem:[%s1146_s4 + $0x38] sm:$0xff] %v741_v7  ;;  %v757_v44 = vmax.f32 %v725_v17, 0.0  ;;  %v407_v24 = vpop.f32.mrb[8].mxu1  ;;  %v569_v37 = vrot.slane %v999_v28, %v984_v58  ;;  %v681_v1 = vrot.slane %v1044_v6, %v977_v54 }
  0xed   :  { %786 = vst [vmem:[%s1146_s4 + $0xa0] sm:$0xff] %v754_v8  ;;  %v594_v23 = vmul.f32 %v541_v43, %v364_v20  ;;  %v366_v25 = vpop.f32.mrb[9].mxu0  ;;  %788 = vst [vmem:[%s1146_s4 + $0xb0] sm:$0xff] %v756_v14  ;;  %v596_v47 = vmul.f32 %v549_v56, %v407_v24  ;;  %v409_v29 = vpop.f32.mrb[9].mxu1  ;;  %v677_v3 = vrot.slane %v1044_v6, %v979_v55 }
  0xee   :  { %787 = vst [vmem:[%s1146_s4 + $0xa8] sm:$0xff] %v755_v19  ;;  %v595_v27 = vmul.f32 %v545_v49, %v366_v25  ;;  %v368_v30 = vpop.f32.mrb[10].mxu0  ;;  %789 = vst [vmem:[%s1146_s4 + $0xb8] sm:$0xff] %v757_v44  ;;  %v597_v33 = vmul.f32 %v553_v63, %v409_v29  ;;  %v411_v35 = vpop.f32.mrb[10].mxu1  ;;  %v685_v10 = vrot.slane %v1044_v6, %v984_v58 }
  0xef   :  { %v710_v32 = vadd.f32 %v657_v18, %v594_v23  ;;  %v610_v34 = vmul.f32 %v541_v43, %v368_v30  ;;  %v370_v36 = vpop.f32.mrb[11].mxu0  ;;  %v712_v38 = vadd.f32 %v665_v21, %v596_v47  ;;  %v612_v40 = vmul.f32 %v549_v56, %v411_v35  ;;  %v413_v42 = vpop.f32.mrb[11].mxu1 }
  0xf0   :  { %v711_v39 = vadd.f32 %v661_v22, %v595_v27  ;;  %v611_v41 = vmul.f32 %v545_v49, %v370_v36  ;;  %v713_v50 = vadd.f32 %v669_v26, %v597_v33  ;;  %v613_v53 = vmul.f32 %v553_v63, %v413_v42 }
  0xf1   :  { %v742_v45 = vmax.f32 %v710_v32, 0.0  ;;  %v726_v52 = vadd.f32 %v657_v18, %v610_v34  ;;  %v744_v57 = vmax.f32 %v712_v38, 0.0  ;;  %v728_v60 = vadd.f32 %v665_v21, %v612_v40 }
  0xf2   :  { %v743_v59 = vmax.f32 %v711_v39, 0.0  ;;  %v727_v61 = vadd.f32 %v661_v22, %v611_v41  ;;  %v745_v43 = vmax.f32 %v713_v50, 0.0  ;;  %v729_v28 = vadd.f32 %v669_v26, %v613_v53 }
  0xf3   :  { %774 = vst [vmem:[%s1146_s4 + $0x40] sm:$0xff] %v742_v45  ;;  %v758_v62 = vmax.f32 %v726_v52, 0.0  ;;  %v673_v56 = vrot.slane %v1044_v6, %v973_v51  ;;  %776 = vst [vmem:[%s1146_s4 + $0x50] sm:$0xff] %v744_v57  ;;  %v760_v49 = vmax.f32 %v728_v60, 0.0 }
  0xf4   :  { %775 = vst [vmem:[%s1146_s4 + $0x48] sm:$0xff] %v743_v59  ;;  %v759_v63 = vmax.f32 %v727_v61, 0.0  ;;  %v450_v0 = vpop.f32.mrb[12].mxu0  ;;  %777 = vst [vmem:[%s1146_s4 + $0x58] sm:$0xff] %v745_v43  ;;  %v761_v51 = vmax.f32 %v729_v28, 0.0  ;;  %v493_v5 = vpop.f32.mrb[12].mxu1 }
  0xf5   :  { %790 = vst [vmem:[%s1146_s4 + $0xc0] sm:$0xff] %v758_v62  ;;  %v598_v4 = vmul.f32 %v557_v46, %v450_v0  ;;  %v452_v9 = vpop.f32.mrb[13].mxu0  ;;  %792 = vst [vmem:[%s1146_s4 + $0xd0] sm:$0xff] %v760_v49  ;;  %v600_v54 = vmul.f32 %v565_v31, %v493_v5  ;;  %v495_v11 = vpop.f32.mrb[13].mxu1 }
  0xf6   :  { %791 = vst [vmem:[%s1146_s4 + $0xc8] sm:$0xff] %v759_v63  ;;  %v599_v55 = vmul.f32 %v561_v48, %v452_v9  ;;  %v454_v12 = vpop.f32.mrb[14].mxu0  ;;  %793 = vst [vmem:[%s1146_s4 + $0xd8] sm:$0xff] %v761_v51  ;;  %v601_v13 = vmul.f32 %v569_v37, %v495_v11  ;;  %v497_v58 = vpop.f32.mrb[14].mxu1 }
  0xf7   :  { %v714_v2 = vadd.f32 %v673_v56, %v598_v4  ;;  %v614_v15 = vmul.f32 %v557_v46, %v454_v12  ;;  %v456_v6 = vpop.f32.mrb[15].mxu0  ;;  %v716_v16 = vadd.f32 %v681_v1, %v600_v54  ;;  %v616_v8 = vmul.f32 %v565_v31, %v497_v58  ;;  %v499_v18 = vpop.f32.mrb[15].mxu1 }
  0xf8   :  { %v715_v7 = vadd.f32 %v677_v3, %v599_v55  ;;  %v615_v17 = vmul.f32 %v561_v48, %v456_v6  ;;  %v717_v19 = vadd.f32 %v685_v10, %v601_v13  ;;  %v617_v21 = vmul.f32 %v569_v37, %v499_v18 }
  0xf9   :  { %v746_v14 = vmax.f32 %v714_v2, 0.0  ;;  %v730_v20 = vadd.f32 %v673_v56, %v614_v15  ;;  %v748_v22 = vmax.f32 %v716_v16, 0.0  ;;  %v732_v23 = vadd.f32 %v681_v1, %v616_v8 }
  0xfa   :  { %v747_v44 = vmax.f32 %v715_v7, 0.0  ;;  %v731_v24 = vadd.f32 %v677_v3, %v615_v17  ;;  %v749_v25 = vmax.f32 %v717_v19, 0.0  ;;  %v733_v46 = vadd.f32 %v685_v10, %v617_v21 }
  0xfb   :  { %778 = vst [vmem:[%s1146_s4 + $0x60] sm:$0xff] %v746_v14  ;;  %v762_v26 = vmax.f32 %v730_v20, 0.0  ;;  %780 = vst [vmem:[%s1146_s4 + $0x70] sm:$0xff] %v748_v22  ;;  %v764_v47 = vmax.f32 %v732_v23, 0.0 }
  0xfc   :  { %779 = vst [vmem:[%s1146_s4 + $0x68] sm:$0xff] %v747_v44  ;;  %v763_v27 = vmax.f32 %v731_v24, 0.0  ;;  %781 = vst [vmem:[%s1146_s4 + $0x78] sm:$0xff] %v749_v25  ;;  %v765_v29 = vmax.f32 %v733_v46, 0.0 }
  0xfd   :  { %794 = vst [vmem:[%s1146_s4 + $0xe0] sm:$0xff] %v762_v26  ;;  %796 = vst [vmem:[%s1146_s4 + $0xf0] sm:$0xff] %v764_v47 }
  0xfe   :  { %795 = vst [vmem:[%s1146_s4 + $0xe8] sm:$0xff] %v763_v27  ;;  %797 = vst [vmem:[%s1146_s4 + $0xf8] sm:$0xff] %v765_v29 }

// kernel: generator_forward.8
= control target key start
LH: loop header
LB: loop body
LE: loop exit
PB: predicated region body
PF: predicated region fallthrough
CT: control target
= control target key end

     0   :  { %s980_s15 = smov 0   ;;  %s982_s16 = smov 0   ;;  %s1193_s0 = inlined_call_operand.vmem [shape: bf16[128,64], index: 0, kind: input, shape index: {}]   ;;  %s1194_s1 = inlined_call_operand.vmem [shape: bf16[64,512], index: 1, kind: input, shape index: {}]   ;;  %s1195_s2 = inlined_call_operand.vmem [shape: f32[1,512], index: 2, kind: input, shape index: {}]   ;;  %s1196_s3 = inlined_call_operand.vmem [shape: f32[1,512], index: 3, kind: input, shape index: {}]   ;;  %s1197_s4 = inlined_call_operand.vmem [shape: f32[128,512], index: 4, kind: output, shape index: {}]  }
   0x1   :  { %s984_s17 = smov 0  }
   0x2 LB: > { %s26_s18 = sadd.s32 1, %s948_s16  ;;  %p840_p0 = scmp.ge.s32.totalorder %s952_s17, 1  ;;  %s952_s17 = sphi %s984_s17, %s14_s17   ;;  %s948_s16 = sphi %s982_s16, %s1199_s16   ;;  %s944_s15 = sphi %s980_s15, %s1198_s15  }
   0x3   : > { %p28_p1 = scmp.ge.s32.totalorder %s26_s18, 2  ;;  %p208_p2 = scmp.lt.s32.totalorder %s952_s17, 3 }
   0x5   : > { %s1201_s18 = smov (%p28_p1, %s26_s18), 0  ;;  %p209_p3 = pnand %p840_p0, %p208_p2 }
   0x6   : > { %v902_v0 = vld [vmem:[%s1194_s1 + $0x4] ss:$16 sps:$4 sm:$0xff] (!%p209_p3)   ;;  %s841_s21 = sshll.u32 (!%p209_p3), %s944_s15, 3  ;;  %v904_v1 = vld [vmem:[%s1194_s1 + $0xc] ss:$16 sps:$4 sm:$0xff] (!%p209_p3)   ;;  %v954_v2 = vmov (!%p209_p3), 0   ;;  %v572_v21 = vlaneseq (!%p209_p3) }
   0x7   : > { %212 = sbr.rel (%p209_p3) target bundleno = 268 (0x10c), region = 36  ;;  %456 = vmatprep.mubr.bf16.mxu0 (!%p209_p3), %v954_v2  ;;  %529 = vmatprep.mubr.bf16.mxu1 (!%p209_p3), %v954_v2  ;;  %p253_p4 = scmp.lt.s32.totalorder (!%p209_p3), %s841_s21, 15  ;;  %v906_v3 = vld [vmem:[%s1194_s1] ss:$16 sps:$4 sm:$0xff] (!%p209_p3)   ;;  %v907_v4 = vld [vmem:[%s1194_s1 + $0x8] ss:$16 sps:$4 sm:$0xff] (!%p209_p3)  }
   0x8   : > { %424 = vmatprep.subr.bf16.mxu0 (!%p209_p3), %v902_v0  ;;  %497 = vmatprep.subr.bf16.mxu1 (!%p209_p3), %v904_v1  ;;  %v908_v5 = vld [vmem:[%s1194_s1 + $0x24] ss:$16 sps:$4 sm:$0xff] (!%p209_p3)   ;;  %v910_v6 = vld [vmem:[%s1194_s1 + $0x2c] ss:$16 sps:$4 sm:$0xff] (!%p209_p3)   ;;  %v912_v7 = vld [vmem:[%s1194_s1 + $0x20] ss:$16 sps:$4 sm:$0xff] (!%p209_p3)  }
   0x9   : > { %425 = vmatpush1.bf16.msra.mxu0 (!%p209_p3), %v906_v3  ;;  %498 = vmatpush1.bf16.msra.mxu1 (!%p209_p3), %v907_v4  ;;  %v913_v8 = vld [vmem:[%s1194_s1 + $0x28] ss:$16 sps:$4 sm:$0xff] (!%p209_p3)   ;;  %v914_v9 = vld [vmem:[%s1194_s1 + $0x44] ss:$16 sps:$4 sm:$0xff] (!%p209_p3)   ;;  %v916_v10 = vld [vmem:[%s1194_s1 + $0x4c] ss:$16 sps:$4 sm:$0xff] (!%p209_p3)  }
   0xa   : > { %426 = vmatprep.subr.bf16.mxu0 (!%p209_p3), %v908_v5  ;;  %499 = vmatprep.subr.bf16.mxu1 (!%p209_p3), %v910_v6  ;;  %v918_v11 = vld [vmem:[%s1194_s1 + $0x40] ss:$16 sps:$4 sm:$0xff] (!%p209_p3)   ;;  %v919_v12 = vld [vmem:[%s1194_s1 + $0x48] ss:$16 sps:$4 sm:$0xff] (!%p209_p3)   ;;  %v920_v13 = vld [vmem:[%s1194_s1 + $0x64] ss:$16 sps:$4 sm:$0xff] (!%p209_p3)  }
   0xb   : > { %v922_v14 = vld [vmem:[%s1194_s1 + $0x6c] ss:$16 sps:$4 sm:$0xff] (!%p209_p3)   ;;  %v924_v15 = vld [vmem:[%s1194_s1 + $0x60] ss:$16 sps:$4 sm:$0xff] (!%p209_p3)   ;;  %v925_v16 = vld [vmem:[%s1194_s1 + $0x68] ss:$16 sps:$4 sm:$0xff] (!%p209_p3)  }
   0xc   : > { %vm411_vm0 = vcmask (!%p209_p3), 523264   ;;  %v573_v22 = vshrl.u32 (!%p209_p3), %v572_v21, 7  ;;  %v570_v25 = vld [vmem:[%s1195_s2] sm:$0xf] (!%p209_p3) }
   0xd   : > { %427 = vmatpush1.bf16.msra.mxu0 (!%p209_p3), %v912_v7  ;;  %500 = vmatpush1.bf16.msra.mxu1 (!%p209_p3), %v913_v8  ;;  %v624_v28 = vld [vmem:[%s1196_s3] sm:$0xf] (!%p209_p3) }
   0xe   : > { %s1203_s21 = smov (!%p253_p4, %s841_s21), 15  ;;  %428 = vmatprep.subr.bf16.mxu0 %v914_v9  ;;  %501 = vmatprep.subr.bf16.mxu1 %v916_v10  ;;  %v574_v23 = vsub.s32 0, %v573_v22  ;;  %v582_v24 = vsub.s32 2, %v573_v22  ;;  %v578_v26 = vsub.s32 1, %v573_v22  ;;  %v586_v27 = vsub.s32 3, %v573_v22 }
   0xf   : > { %s842_s12 = sshll.u32 %s1203_s21, 2 }
  0x10   : > { %s256_s29 = scalar_lea.vmem %s1193_s0, %s842_s12  ;;  %v1066_v29 = vrot.slane %v570_v25, %v574_v23  ;;  %v1068_v30 = vrot.slane %v570_v25, %v582_v24  ;;  %v1070_v31 = vrot.slane %v570_v25, %v578_v26  ;;  %v1072_v32 = vrot.slane %v570_v25, %v586_v27  ;;  %s876_s12 = sshll.u32 %s1203_s21, 5 }
  0x11   : > { %429 = vmatpush1.bf16.msra.mxu0 %v918_v11  ;;  %502 = vmatpush1.bf16.msra.mxu1 %v919_v12  ;;  %v926_v17 = vld [vmem:[%s256_s29] sm:$0xff]   ;;  %v927_v18 = vld [vmem:[%s256_s29 + $0x8] sm:$0xff]   ;;  %v928_v19 = vld [vmem:[%s256_s29 + $0x10] sm:$0xff]   ;;  %v1075_v33 = vrot.slane %v624_v28, %v574_v23  ;;  %v1077_v34 = vrot.slane %v624_v28, %v582_v24  ;;  %v1079_v37 = vrot.slane %v624_v28, %v578_v26  ;;  %s1088_s21 = scalar_lea.vmem %s1197_s4, %s876_s12 }
  0x12   : > { %430 = vmatprep.subr.bf16.mxu0 %v920_v13  ;;  %503 = vmatprep.subr.bf16.mxu1 %v922_v14  ;;  %v929_v20 = vld [vmem:[%s256_s29 + $0x18] sm:$0xff]   ;;  %v1081_v38 = vrot.slane %v624_v28, %v586_v27 }
  0x15   : > { %431 = vmatpush1.bf16.msra.mxu0 %v924_v15  ;;  %504 = vmatpush1.bf16.msra.mxu1 %v925_v16 }
  0x18   : > { %866 = vmatmul.mubr.msk.bf16.vlgmr.msra.gmra.mrb[0].mxu0 %vm411_vm0, %v926_v17  ;;  %870 = vmatmul.mubr.msk.bf16.vlgmr.msra.gmra.mrb[0].mxu1 %vm411_vm0, %v926_v17 }
  0x19   : > { %466 = vmatprep.mubr.bf16.mxu0 %v954_v2  ;;  %539 = vmatprep.mubr.bf16.mxu1 %v954_v2 }
  0x20   : > { %867 = vmatmul.mubr.msk.bf16.gmra.mrb[4].mxu0 %vm411_vm0, %v927_v18  ;;  %871 = vmatmul.mubr.msk.bf16.gmra.mrb[4].mxu1 %vm411_vm0, %v927_v18 }
  0x21   : > { %476 = vmatprep.mubr.bf16.mxu0 %v954_v2  ;;  %549 = vmatprep.mubr.bf16.mxu1 %v954_v2 }
  0x28   : > { %868 = vmatmul.mubr.msk.bf16.gmra.mrb[8].mxu0 %vm411_vm0, %v928_v19  ;;  %872 = vmatmul.mubr.msk.bf16.gmra.mrb[8].mxu1 %vm411_vm0, %v928_v19 }
  0x29   : > { %486 = vmatprep.mubr.bf16.mxu0 %v954_v2  ;;  %559 = vmatprep.mubr.bf16.mxu1 %v954_v2 }
  0x30   : > { %869 = vmatmul.mubr.msk.bf16.gmra.mrb[12].mxu0 %vm411_vm0, %v929_v20  ;;  %873 = vmatmul.mubr.msk.bf16.gmra.mrb[12].mxu1 %vm411_vm0, %v929_v20 }
  0xeb   : > { %v458_v35 = vpop.f32.mrb[0].mxu0  ;;  %v531_v36 = vpop.f32.mrb[0].mxu1 }
  0xec   : > { %v592_v39 = vmul.f32 %v1066_v29, %v458_v35  ;;  %v594_v40 = vmul.f32 %v1068_v30, %v531_v36  ;;  %v460_v41 = vpop.f32.mrb[1].mxu0  ;;  %v533_v42 = vpop.f32.mrb[1].mxu1 }
  0xed   : > { %v593_v43 = vmul.f32 %v1070_v31, %v460_v41  ;;  %v595_v44 = vmul.f32 %v1072_v32, %v533_v42  ;;  %v462_v45 = vpop.f32.mrb[2].mxu0  ;;  %v535_v46 = vpop.f32.mrb[2].mxu1 }
  0xee   : > { %v646_v47 = vadd.f32 %v1075_v33, %v592_v39  ;;  %v648_v48 = vadd.f32 %v1077_v34, %v594_v40  ;;  %v596_v49 = vmul.f32 %v1066_v29, %v462_v45  ;;  %v598_v50 = vmul.f32 %v1068_v30, %v535_v46  ;;  %v464_v51 = vpop.f32.mrb[3].mxu0  ;;  %v537_v52 = vpop.f32.mrb[3].mxu1 }
  0xef   : > { %v647_v53 = vadd.f32 %v1079_v37, %v593_v43  ;;  %v649_v54 = vadd.f32 %v1081_v38, %v595_v44  ;;  %v597_v55 = vmul.f32 %v1070_v31, %v464_v51  ;;  %v599_v56 = vmul.f32 %v1072_v32, %v537_v52 }
  0xf0   : > { %678 = vst [vmem:[%s1088_s21] sm:$0xff] %v646_v47  ;;  %680 = vst [vmem:[%s1088_s21 + $0x10] sm:$0xff] %v648_v48  ;;  %v650_v57 = vadd.f32 %v1075_v33, %v596_v49  ;;  %v652_v58 = vadd.f32 %v1077_v34, %v598_v50 }
  0xf1   : > { %679 = vst [vmem:[%s1088_s21 + $0x8] sm:$0xff] %v647_v53  ;;  %681 = vst [vmem:[%s1088_s21 + $0x18] sm:$0xff] %v649_v54  ;;  %v651_v59 = vadd.f32 %v1079_v37, %v597_v55  ;;  %v653_v60 = vadd.f32 %v1081_v38, %v599_v56 }
  0xf2   : > { %682 = vst [vmem:[%s1088_s21 + $0x20] sm:$0xff] %v650_v57  ;;  %684 = vst [vmem:[%s1088_s21 + $0x30] sm:$0xff] %v652_v58 }
  0xf3   : > { %683 = vst [vmem:[%s1088_s21 + $0x28] sm:$0xff] %v651_v59  ;;  %685 = vst [vmem:[%s1088_s21 + $0x38] sm:$0xff] %v653_v60  ;;  %v468_v61 = vpop.f32.mrb[4].mxu0  ;;  %v541_v62 = vpop.f32.mrb[4].mxu1 }
  0xf4   : > { %v600_v63 = vmul.f32 %v1066_v29, %v468_v61  ;;  %v602_v0 = vmul.f32 %v1068_v30, %v541_v62  ;;  %v470_v1 = vpop.f32.mrb[5].mxu0  ;;  %v543_v2 = vpop.f32.mrb[5].mxu1 }
  0xf5   : > { %v601_v3 = vmul.f32 %v1070_v31, %v470_v1  ;;  %v603_v4 = vmul.f32 %v1072_v32, %v543_v2  ;;  %v472_v5 = vpop.f32.mrb[6].mxu0  ;;  %v545_v6 = vpop.f32.mrb[6].mxu1 }
  0xf6   : > { %v654_v7 = vadd.f32 %v1075_v33, %v600_v63  ;;  %v656_v8 = vadd.f32 %v1077_v34, %v602_v0  ;;  %v604_v9 = vmul.f32 %v1066_v29, %v472_v5  ;;  %v606_v10 = vmul.f32 %v1068_v30, %v545_v6  ;;  %v474_v11 = vpop.f32.mrb[7].mxu0  ;;  %v547_v12 = vpop.f32.mrb[7].mxu1 }
  0xf7   : > { %v655_v13 = vadd.f32 %v1079_v37, %v601_v3  ;;  %v657_v14 = vadd.f32 %v1081_v38, %v603_v4  ;;  %v605_v15 = vmul.f32 %v1070_v31, %v474_v11  ;;  %v607_v16 = vmul.f32 %v1072_v32, %v547_v12 }
  0xf8   : > { %686 = vst [vmem:[%s1088_s21 + $0x40] sm:$0xff] %v654_v7  ;;  %688 = vst [vmem:[%s1088_s21 + $0x50] sm:$0xff] %v656_v8  ;;  %v658_v17 = vadd.f32 %v1075_v33, %v604_v9  ;;  %v660_v18 = vadd.f32 %v1077_v34, %v606_v10 }
  0xf9   : > { %687 = vst [vmem:[%s1088_s21 + $0x48] sm:$0xff] %v655_v13  ;;  %689 = vst [vmem:[%s1088_s21 + $0x58] sm:$0xff] %v657_v14  ;;  %v659_v19 = vadd.f32 %v1079_v37, %v605_v15  ;;  %v661_v20 = vadd.f32 %v1081_v38, %v607_v16 }
  0xfa   : > { %690 = vst [vmem:[%s1088_s21 + $0x60] sm:$0xff] %v658_v17  ;;  %692 = vst [vmem:[%s1088_s21 + $0x70] sm:$0xff] %v660_v18 }
  0xfb   : > { %691 = vst [vmem:[%s1088_s21 + $0x68] sm:$0xff] %v659_v19  ;;  %693 = vst [vmem:[%s1088_s21 + $0x78] sm:$0xff] %v661_v20  ;;  %v478_v21 = vpop.f32.mrb[8].mxu0  ;;  %v551_v22 = vpop.f32.mrb[8].mxu1 }
  0xfc   : > { %v608_v23 = vmul.f32 %v1066_v29, %v478_v21  ;;  %v610_v24 = vmul.f32 %v1068_v30, %v551_v22  ;;  %v480_v25 = vpop.f32.mrb[9].mxu0  ;;  %v553_v26 = vpop.f32.mrb[9].mxu1 }
  0xfd   : > { %v609_v27 = vmul.f32 %v1070_v31, %v480_v25  ;;  %v611_v28 = vmul.f32 %v1072_v32, %v553_v26  ;;  %v482_v35 = vpop.f32.mrb[10].mxu0  ;;  %v555_v36 = vpop.f32.mrb[10].mxu1 }
  0xfe   : > { %v662_v39 = vadd.f32 %v1075_v33, %v608_v23  ;;  %v664_v40 = vadd.f32 %v1077_v34, %v610_v24  ;;  %v612_v41 = vmul.f32 %v1066_v29, %v482_v35  ;;  %v614_v42 = vmul.f32 %v1068_v30, %v555_v36  ;;  %v484_v43 = vpop.f32.mrb[11].mxu0  ;;  %v557_v44 = vpop.f32.mrb[11].mxu1 }
  0xff   : > { %v663_v45 = vadd.f32 %v1079_v37, %v609_v27  ;;  %v665_v46 = vadd.f32 %v1081_v38, %v611_v28  ;;  %v613_v47 = vmul.f32 %v1070_v31, %v484_v43  ;;  %v615_v48 = vmul.f32 %v1072_v32, %v557_v44 }
 0x100   : > { %694 = vst [vmem:[%s1088_s21 + $0x80] sm:$0xff] %v662_v39  ;;  %696 = vst [vmem:[%s1088_s21 + $0x90] sm:$0xff] %v664_v40  ;;  %v666_v49 = vadd.f32 %v1075_v33, %v612_v41  ;;  %v668_v50 = vadd.f32 %v1077_v34, %v614_v42 }
 0x101   : > { %695 = vst [vmem:[%s1088_s21 + $0x88] sm:$0xff] %v663_v45  ;;  %697 = vst [vmem:[%s1088_s21 + $0x98] sm:$0xff] %v665_v46  ;;  %v667_v51 = vadd.f32 %v1079_v37, %v613_v47  ;;  %v669_v52 = vadd.f32 %v1081_v38, %v615_v48 }
 0x102   : > { %698 = vst [vmem:[%s1088_s21 + $0xa0] sm:$0xff] %v666_v49  ;;  %700 = vst [vmem:[%s1088_s21 + $0xb0] sm:$0xff] %v668_v50 }
 0x103   : > { %699 = vst [vmem:[%s1088_s21 + $0xa8] sm:$0xff] %v667_v51  ;;  %701 = vst [vmem:[%s1088_s21 + $0xb8] sm:$0xff] %v669_v52  ;;  %v488_v53 = vpop.f32.mrb[12].mxu0  ;;  %v561_v54 = vpop.f32.mrb[12].mxu1 }
 0x104   : > { %v616_v55 = vmul.f32 %v1066_v29, %v488_v53  ;;  %v618_v56 = vmul.f32 %v1068_v30, %v561_v54  ;;  %v490_v57 = vpop.f32.mrb[13].mxu0  ;;  %v563_v58 = vpop.f32.mrb[13].mxu1 }
 0x105   : > { %v617_v59 = vmul.f32 %v1070_v31, %v490_v57  ;;  %v619_v60 = vmul.f32 %v1072_v32, %v563_v58  ;;  %v492_v61 = vpop.f32.mrb[14].mxu0  ;;  %v565_v62 = vpop.f32.mrb[14].mxu1 }
 0x106   : > { %v670_v63 = vadd.f32 %v1075_v33, %v616_v55  ;;  %v672_v0 = vadd.f32 %v1077_v34, %v618_v56  ;;  %v620_v1 = vmul.f32 %v1066_v29, %v492_v61  ;;  %v622_v2 = vmul.f32 %v1068_v30, %v565_v62  ;;  %v494_v3 = vpop.f32.mrb[15].mxu0  ;;  %v567_v4 = vpop.f32.mrb[15].mxu1 }
 0x107   : > { %v671_v5 = vadd.f32 %v1079_v37, %v617_v59  ;;  %v673_v6 = vadd.f32 %v1081_v38, %v619_v60  ;;  %v621_v7 = vmul.f32 %v1070_v31, %v494_v3  ;;  %v623_v8 = vmul.f32 %v1072_v32, %v567_v4 }
 0x108   : > { %702 = vst [vmem:[%s1088_s21 + $0xc0] sm:$0xff] %v670_v63  ;;  %704 = vst [vmem:[%s1088_s21 + $0xd0] sm:$0xff] %v672_v0  ;;  %v674_v29 = vadd.f32 %v1075_v33, %v620_v1  ;;  %v676_v9 = vadd.f32 %v1077_v34, %v622_v2 }
 0x109   : > { %703 = vst [vmem:[%s1088_s21 + $0xc8] sm:$0xff] %v671_v5  ;;  %705 = vst [vmem:[%s1088_s21 + $0xd8] sm:$0xff] %v673_v6  ;;  %v675_v30 = vadd.f32 %v1079_v37, %v621_v7  ;;  %v677_v10 = vadd.f32 %v1081_v38, %v623_v8 }
 0x10a   : > { %706 = vst [vmem:[%s1088_s21 + $0xe0] sm:$0xff] %v674_v29  ;;  %708 = vst [vmem:[%s1088_s21 + $0xf0] sm:$0xff] %v676_v9 }
 0x10b   : > { %707 = vst [vmem:[%s1088_s21 + $0xe8] sm:$0xff] %v675_v30  ;;  %709 = vst [vmem:[%s1088_s21 + $0xf8] sm:$0xff] %v677_v10 }
 0x10c PF: > { %s14_s17 = sadd.s32 1, %s952_s17   ;;  %s1198_s15 = smov %s948_s16 }
 0x10d   : > { %p11_p5 = scmp.ge.s32.totalorder %s14_s17, 4   ;;  %s1199_s16 = smov %s1201_s18 }
 0x10f   :  { %13 = sbr.rel (!%p11_p5) target bundleno = 2 (0x2), region = 75 }

// kernel: generator_forward.9
= control target key start
LH: loop header
LB: loop body
LE: loop exit
PB: predicated region body
PF: predicated region fallthrough
CT: control target
= control target key end

     0   :  { %s1157_s15 = smov 0   ;;  %s1159_s16 = smov 0   ;;  %s1448_s0 = inlined_call_operand.vmem [shape: bf16[512,32], index: 0, kind: input, shape index: {}]   ;;  %s1449_s1 = inlined_call_operand.vmem [shape: bf16[32,256], index: 1, kind: input, shape index: {}]   ;;  %s1450_s2 = inlined_call_operand.vmem [shape: f32[1,256], index: 2, kind: input, shape index: {}]   ;;  %s1451_s3 = inlined_call_operand.vmem [shape: f32[1,256], index: 3, kind: input, shape index: {}]   ;;  %s1452_s4 = inlined_call_operand.vmem [shape: f32[512,256], index: 4, kind: output, shape index: {}]  }
   0x1   :  { %s1161_s17 = smov 0  }
   0x2 LB: > { %s26_s18 = sadd.s32 1, %s1125_s16  ;;  %p1011_p0 = scmp.ge.s32.totalorder %s1129_s17, 1  ;;  %s1129_s17 = sphi %s1161_s17, %s14_s17   ;;  %s1125_s16 = sphi %s1159_s16, %s1454_s16   ;;  %s1121_s15 = sphi %s1157_s15, %s1453_s15  }
   0x3   : > { %p28_p1 = scmp.ge.s32.totalorder %s26_s18, 2  ;;  %p208_p2 = scmp.lt.s32.totalorder %s1129_s17, 3 }
   0x5   : > { %s1456_s18 = smov (%p28_p1, %s26_s18), 0  ;;  %p209_p3 = pnand %p1011_p0, %p208_p2 }
   0x6   : > { %v1085_v0 = vld [vmem:[%s1449_s1 + $0x4] ss:$8 sps:$4 sm:$0xff] (!%p209_p3)   ;;  %s1012_s21 = sshll.u32 (!%p209_p3), %s1121_s15, 5  ;;  %v1087_v1 = vld [vmem:[%s1449_s1] ss:$8 sps:$4 sm:$0xff] (!%p209_p3)   ;;  %v1131_v2 = vmov (!%p209_p3), 0   ;;  %v667_v21 = vlaneseq (!%p209_p3) }
   0x7   : > { %212 = sbr.rel (%p209_p3) target bundleno = 295 (0x127), region = 36  ;;  %504 = vmatprep.mubr.bf16.mxu0 (!%p209_p3), %v1131_v2  ;;  %584 = vmatprep.mubr.bf16.mxu1 (!%p209_p3), %v1131_v2  ;;  %p253_p4 = scmp.lt.s32.totalorder (!%p209_p3), %s1012_s21, 63  ;;  %v1088_v3 = vld [vmem:[%s1449_s1 + $0x14] ss:$8 sps:$4 sm:$0xff] (!%p209_p3)   ;;  %v1090_v4 = vld [vmem:[%s1449_s1 + $0x10] ss:$8 sps:$4 sm:$0xff] (!%p209_p3)  }
   0x8   : > { %472 = vmatprep.subr.bf16.mxu0 (!%p209_p3), %v1085_v0  ;;  %1056 = vmatprep.subr.bf16.mxu1 (!%p209_p3), %v1085_v0  ;;  %vm423_vm0 = vcmask (!%p209_p3), 261120   ;;  %v668_v22 = vshrl.u32 (!%p209_p3), %v667_v21, 7  ;;  %v665_v24 = vld [vmem:[%s1450_s2] sm:$0x3] (!%p209_p3) }
   0x9   : > { %473 = vmatpush1.bf16.msra.mxu0 (!%p209_p3), %v1087_v1  ;;  %1058 = vmatpush1.bf16.msra.mxu1 (!%p209_p3), %v1087_v1  ;;  %v741_v26 = vld [vmem:[%s1451_s3] sm:$0x3] (!%p209_p3) }
   0xa   : > { %474 = vmatprep.subr.bf16.mxu0 (!%p209_p3), %v1088_v3  ;;  %1057 = vmatprep.subr.bf16.mxu1 (!%p209_p3), %v1088_v3  ;;  %v669_v23 = vsub.s32 (!%p209_p3), 0, %v668_v22  ;;  %v673_v25 = vsub.s32 (!%p209_p3), 1, %v668_v22 }
   0xc   : > { %v1233_v27 = vrot.slane (!%p209_p3), %v665_v24, %v669_v23  ;;  %v1235_v28 = vrot.slane (!%p209_p3), %v665_v24, %v673_v25  ;;  %v1238_v29 = vrot.slane (!%p209_p3), %v741_v26, %v669_v23  ;;  %v1240_v32 = vrot.slane (!%p209_p3), %v741_v26, %v673_v25 }
   0xd   : > { %475 = vmatpush1.bf16.msra.mxu0 (!%p209_p3), %v1090_v4  ;;  %1059 = vmatpush1.bf16.msra.mxu1 (!%p209_p3), %v1090_v4 }
   0xe   : > { %s1458_s21 = smov (!%p253_p4, %s1012_s21), 63 }
   0xf   : > { %s1013_s28 = sshll.u32 %s1458_s21, 2  ;;  %s1055_s10 = sshll.u32 %s1458_s21, 4 }
  0x10   : > { %s1193_s5 = scalar_lea.vmem %s1448_s0, %s1013_s28  ;;  %s1247_s13 = scalar_lea.vmem %s1452_s4, %s1055_s10 }
  0x11   : > { %v1091_v5 = vld [vmem:[%s1193_s5] sm:$0xff]   ;;  %v1093_v7 = vld [vmem:[%s1193_s5 + $0x8] sm:$0xff]   ;;  %v1095_v9 = vld [vmem:[%s1193_s5 + $0x10] sm:$0xff]  }
  0x12   : > { %v1092_v6 = vld [vmem:[%s1193_s5 + $0x40] sm:$0xff]   ;;  %1037 = vmatmul.mubr.msk.bf16.vlgmr.msra.gmra.mrb[0].mxu0 %vm423_vm0, %v1091_v5  ;;  %v1094_v8 = vld [vmem:[%s1193_s5 + $0x48] sm:$0xff]   ;;  %v1096_v10 = vld [vmem:[%s1193_s5 + $0x50] sm:$0xff]  }
  0x13   : > { %1045 = vmatmul.mubr.msk.bf16.vlgmr.msra.gmra.mrb[0].mxu1 %vm423_vm0, %v1092_v6  ;;  %514 = vmatprep.mubr.bf16.mxu0 %v1131_v2  ;;  %v1097_v11 = vld [vmem:[%s1193_s5 + $0x18] sm:$0xff]   ;;  %v1099_v13 = vld [vmem:[%s1193_s5 + $0x20] sm:$0xff]   ;;  %v1101_v15 = vld [vmem:[%s1193_s5 + $0x28] sm:$0xff]  }
  0x14   : > { %594 = vmatprep.mubr.bf16.mxu1 %v1131_v2  ;;  %v1098_v12 = vld [vmem:[%s1193_s5 + $0x58] sm:$0xff]   ;;  %v1100_v14 = vld [vmem:[%s1193_s5 + $0x60] sm:$0xff]   ;;  %v1102_v16 = vld [vmem:[%s1193_s5 + $0x68] sm:$0xff]  }
  0x15   : > { %v1103_v17 = vld [vmem:[%s1193_s5 + $0x30] sm:$0xff]   ;;  %v1105_v19 = vld [vmem:[%s1193_s5 + $0x38] sm:$0xff]  }
  0x16   : > { %v1104_v18 = vld [vmem:[%s1193_s5 + $0x70] sm:$0xff]   ;;  %v1106_v20 = vld [vmem:[%s1193_s5 + $0x78] sm:$0xff]  }
  0x1a   : > { %1038 = vmatmul.mubr.msk.bf16.gmra.mrb[4].mxu0 %vm423_vm0, %v1093_v7 }
  0x1b   : > { %1046 = vmatmul.mubr.msk.bf16.gmra.mrb[4].mxu1 %vm423_vm0, %v1094_v8  ;;  %524 = vmatprep.mubr.bf16.mxu0 %v1131_v2 }
  0x1c   : > { %604 = vmatprep.mubr.bf16.mxu1 %v1131_v2 }
  0x22   : > { %1039 = vmatmul.mubr.msk.bf16.gmra.mrb[8].mxu0 %vm423_vm0, %v1095_v9 }
  0x23   : > { %1047 = vmatmul.mubr.msk.bf16.gmra.mrb[8].mxu1 %vm423_vm0, %v1096_v10  ;;  %534 = vmatprep.mubr.bf16.mxu0 %v1131_v2 }
  0x24   : > { %614 = vmatprep.mubr.bf16.mxu1 %v1131_v2 }
  0x2a   : > { %1040 = vmatmul.mubr.msk.bf16.gmra.mrb[12].mxu0 %vm423_vm0, %v1097_v11 }
  0x2b   : > { %1048 = vmatmul.mubr.msk.bf16.gmra.mrb[12].mxu1 %vm423_vm0, %v1098_v12  ;;  %544 = vmatprep.mubr.bf16.mxu0 %v1131_v2 }
  0x2c   : > { %624 = vmatprep.mubr.bf16.mxu1 %v1131_v2 }
  0x32   : > { %1041 = vmatmul.mubr.msk.bf16.gmra.mrb[16].mxu0 %vm423_vm0, %v1099_v13 }
  0x33   : > { %1049 = vmatmul.mubr.msk.bf16.gmra.mrb[16].mxu1 %vm423_vm0, %v1100_v14  ;;  %554 = vmatprep.mubr.bf16.mxu0 %v1131_v2 }
  0x34   : > { %634 = vmatprep.mubr.bf16.mxu1 %v1131_v2 }
  0x3a   : > { %1042 = vmatmul.mubr.msk.bf16.gmra.mrb[20].mxu0 %vm423_vm0, %v1101_v15 }
  0x3b   : > { %1050 = vmatmul.mubr.msk.bf16.gmra.mrb[20].mxu1 %vm423_vm0, %v1102_v16  ;;  %564 = vmatprep.mubr.bf16.mxu0 %v1131_v2 }
  0x3c   : > { %644 = vmatprep.mubr.bf16.mxu1 %v1131_v2 }
  0x42   : > { %1043 = vmatmul.mubr.msk.bf16.gmra.mrb[24].mxu0 %vm423_vm0, %v1103_v17 }
  0x43   : > { %1051 = vmatmul.mubr.msk.bf16.gmra.mrb[24].mxu1 %vm423_vm0, %v1104_v18  ;;  %574 = vmatprep.mubr.bf16.mxu0 %v1131_v2 }
  0x44   : > { %654 = vmatprep.mubr.bf16.mxu1 %v1131_v2 }
  0x4a   : > { %1044 = vmatmul.mubr.msk.bf16.gmra.mrb[28].mxu0 %vm423_vm0, %v1105_v19 }
  0x4b   : > { %1052 = vmatmul.mubr.msk.bf16.gmra.mrb[28].mxu1 %vm423_vm0, %v1106_v20 }
  0xe5   : > { %v506_v30 = vpop.f32.mrb[0].mxu0 }
  0xe6   : > { %v586_v31 = vpop.f32.mrb[0].mxu1  ;;  %v677_v33 = vmul.f32 %v1233_v27, %v506_v30  ;;  %v508_v35 = vpop.f32.mrb[1].mxu0 }
  0xe7   : > { %v709_v34 = vmul.f32 %v1233_v27, %v586_v31  ;;  %v588_v36 = vpop.f32.mrb[1].mxu1  ;;  %v678_v37 = vmul.f32 %v1235_v28, %v508_v35  ;;  %v510_v39 = vpop.f32.mrb[2].mxu0 }
  0xe8   : > { %v710_v38 = vmul.f32 %v1235_v28, %v588_v36  ;;  %v590_v40 = vpop.f32.mrb[2].mxu1  ;;  %v753_v41 = vadd.f32 %v1238_v29, %v677_v33  ;;  %v679_v43 = vmul.f32 %v1233_v27, %v510_v39  ;;  %v512_v45 = vpop.f32.mrb[3].mxu0 }
  0xe9   : > { %v785_v42 = vadd.f32 %v1238_v29, %v709_v34  ;;  %v711_v44 = vmul.f32 %v1233_v27, %v590_v40  ;;  %v592_v46 = vpop.f32.mrb[3].mxu1  ;;  %v754_v47 = vadd.f32 %v1240_v32, %v678_v37  ;;  %v680_v49 = vmul.f32 %v1235_v28, %v512_v45 }
  0xea   : > { %v786_v48 = vadd.f32 %v1240_v32, %v710_v38  ;;  %v712_v50 = vmul.f32 %v1235_v28, %v592_v46  ;;  %817 = vst [vmem:[%s1247_s13] sm:$0xff] %v753_v41  ;;  %v755_v51 = vadd.f32 %v1238_v29, %v679_v43 }
  0xeb   : > { %849 = vst [vmem:[%s1247_s13 + $0x100] sm:$0xff] %v785_v42  ;;  %v787_v52 = vadd.f32 %v1238_v29, %v711_v44  ;;  %818 = vst [vmem:[%s1247_s13 + $0x8] sm:$0xff] %v754_v47  ;;  %v756_v53 = vadd.f32 %v1240_v32, %v680_v49 }
  0xec   : > { %850 = vst [vmem:[%s1247_s13 + $0x108] sm:$0xff] %v786_v48  ;;  %v788_v54 = vadd.f32 %v1240_v32, %v712_v50  ;;  %819 = vst [vmem:[%s1247_s13 + $0x10] sm:$0xff] %v755_v51 }
  0xed   : > { %851 = vst [vmem:[%s1247_s13 + $0x110] sm:$0xff] %v787_v52  ;;  %820 = vst [vmem:[%s1247_s13 + $0x18] sm:$0xff] %v756_v53  ;;  %v516_v55 = vpop.f32.mrb[4].mxu0 }
  0xee   : > { %852 = vst [vmem:[%s1247_s13 + $0x118] sm:$0xff] %v788_v54  ;;  %v596_v56 = vpop.f32.mrb[4].mxu1  ;;  %v681_v57 = vmul.f32 %v1233_v27, %v516_v55  ;;  %v518_v59 = vpop.f32.mrb[5].mxu0 }
  0xef   : > { %v713_v58 = vmul.f32 %v1233_v27, %v596_v56  ;;  %v598_v60 = vpop.f32.mrb[5].mxu1  ;;  %v682_v61 = vmul.f32 %v1235_v28, %v518_v59  ;;  %v520_v63 = vpop.f32.mrb[6].mxu0 }
  0xf0   : > { %v714_v62 = vmul.f32 %v1235_v28, %v598_v60  ;;  %v600_v0 = vpop.f32.mrb[6].mxu1  ;;  %v757_v1 = vadd.f32 %v1238_v29, %v681_v57  ;;  %v683_v3 = vmul.f32 %v1233_v27, %v520_v63  ;;  %v522_v5 = vpop.f32.mrb[7].mxu0 }
  0xf1   : > { %v789_v2 = vadd.f32 %v1238_v29, %v713_v58  ;;  %v715_v4 = vmul.f32 %v1233_v27, %v600_v0  ;;  %v602_v6 = vpop.f32.mrb[7].mxu1  ;;  %v758_v7 = vadd.f32 %v1240_v32, %v682_v61  ;;  %v684_v9 = vmul.f32 %v1235_v28, %v522_v5 }
  0xf2   : > { %v790_v8 = vadd.f32 %v1240_v32, %v714_v62  ;;  %v716_v10 = vmul.f32 %v1235_v28, %v602_v6  ;;  %821 = vst [vmem:[%s1247_s13 + $0x20] sm:$0xff] %v757_v1  ;;  %v759_v11 = vadd.f32 %v1238_v29, %v683_v3 }
  0xf3   : > { %853 = vst [vmem:[%s1247_s13 + $0x120] sm:$0xff] %v789_v2  ;;  %v791_v12 = vadd.f32 %v1238_v29, %v715_v4  ;;  %822 = vst [vmem:[%s1247_s13 + $0x28] sm:$0xff] %v758_v7  ;;  %v760_v13 = vadd.f32 %v1240_v32, %v684_v9 }
  0xf4   : > { %854 = vst [vmem:[%s1247_s13 + $0x128] sm:$0xff] %v790_v8  ;;  %v792_v14 = vadd.f32 %v1240_v32, %v716_v10  ;;  %823 = vst [vmem:[%s1247_s13 + $0x30] sm:$0xff] %v759_v11 }
  0xf5   : > { %855 = vst [vmem:[%s1247_s13 + $0x130] sm:$0xff] %v791_v12  ;;  %824 = vst [vmem:[%s1247_s13 + $0x38] sm:$0xff] %v760_v13  ;;  %v526_v15 = vpop.f32.mrb[8].mxu0 }
  0xf6   : > { %856 = vst [vmem:[%s1247_s13 + $0x138] sm:$0xff] %v792_v14  ;;  %v606_v16 = vpop.f32.mrb[8].mxu1  ;;  %v685_v17 = vmul.f32 %v1233_v27, %v526_v15  ;;  %v528_v19 = vpop.f32.mrb[9].mxu0 }
  0xf7   : > { %v717_v18 = vmul.f32 %v1233_v27, %v606_v16  ;;  %v608_v20 = vpop.f32.mrb[9].mxu1  ;;  %v686_v21 = vmul.f32 %v1235_v28, %v528_v19  ;;  %v530_v23 = vpop.f32.mrb[10].mxu0 }
  0xf8   : > { %v718_v22 = vmul.f32 %v1235_v28, %v608_v20  ;;  %v610_v24 = vpop.f32.mrb[10].mxu1  ;;  %v761_v25 = vadd.f32 %v1238_v29, %v685_v17  ;;  %v687_v30 = vmul.f32 %v1233_v27, %v530_v23  ;;  %v532_v33 = vpop.f32.mrb[11].mxu0 }
  0xf9   : > { %v793_v26 = vadd.f32 %v1238_v29, %v717_v18  ;;  %v719_v31 = vmul.f32 %v1233_v27, %v610_v24  ;;  %v612_v34 = vpop.f32.mrb[11].mxu1  ;;  %v762_v35 = vadd.f32 %v1240_v32, %v686_v21  ;;  %v688_v37 = vmul.f32 %v1235_v28, %v532_v33 }
  0xfa   : > { %v794_v36 = vadd.f32 %v1240_v32, %v718_v22  ;;  %v720_v38 = vmul.f32 %v1235_v28, %v612_v34  ;;  %825 = vst [vmem:[%s1247_s13 + $0x40] sm:$0xff] %v761_v25  ;;  %v763_v39 = vadd.f32 %v1238_v29, %v687_v30 }
  0xfb   : > { %857 = vst [vmem:[%s1247_s13 + $0x140] sm:$0xff] %v793_v26  ;;  %v795_v40 = vadd.f32 %v1238_v29, %v719_v31  ;;  %826 = vst [vmem:[%s1247_s13 + $0x48] sm:$0xff] %v762_v35  ;;  %v764_v41 = vadd.f32 %v1240_v32, %v688_v37 }
  0xfc   : > { %858 = vst [vmem:[%s1247_s13 + $0x148] sm:$0xff] %v794_v36  ;;  %v796_v42 = vadd.f32 %v1240_v32, %v720_v38  ;;  %827 = vst [vmem:[%s1247_s13 + $0x50] sm:$0xff] %v763_v39 }
  0xfd   : > { %859 = vst [vmem:[%s1247_s13 + $0x150] sm:$0xff] %v795_v40  ;;  %828 = vst [vmem:[%s1247_s13 + $0x58] sm:$0xff] %v764_v41  ;;  %v536_v43 = vpop.f32.mrb[12].mxu0 }
  0xfe   : > { %860 = vst [vmem:[%s1247_s13 + $0x158] sm:$0xff] %v796_v42  ;;  %v616_v44 = vpop.f32.mrb[12].mxu1  ;;  %v689_v45 = vmul.f32 %v1233_v27, %v536_v43  ;;  %v538_v47 = vpop.f32.mrb[13].mxu0 }
  0xff   : > { %v721_v46 = vmul.f32 %v1233_v27, %v616_v44  ;;  %v618_v48 = vpop.f32.mrb[13].mxu1  ;;  %v690_v49 = vmul.f32 %v1235_v28, %v538_v47  ;;  %v540_v51 = vpop.f32.mrb[14].mxu0 }
 0x100   : > { %v722_v50 = vmul.f32 %v1235_v28, %v618_v48  ;;  %v620_v52 = vpop.f32.mrb[14].mxu1  ;;  %v765_v53 = vadd.f32 %v1238_v29, %v689_v45  ;;  %v691_v55 = vmul.f32 %v1233_v27, %v540_v51  ;;  %v542_v57 = vpop.f32.mrb[15].mxu0 }
 0x101   : > { %v797_v54 = vadd.f32 %v1238_v29, %v721_v46  ;;  %v723_v56 = vmul.f32 %v1233_v27, %v620_v52  ;;  %v622_v58 = vpop.f32.mrb[15].mxu1  ;;  %v766_v59 = vadd.f32 %v1240_v32, %v690_v49  ;;  %v692_v61 = vmul.f32 %v1235_v28, %v542_v57 }
 0x102   : > { %v798_v60 = vadd.f32 %v1240_v32, %v722_v50  ;;  %v724_v62 = vmul.f32 %v1235_v28, %v622_v58  ;;  %829 = vst [vmem:[%s1247_s13 + $0x60] sm:$0xff] %v765_v53  ;;  %v767_v63 = vadd.f32 %v1238_v29, %v691_v55 }
 0x103   : > { %861 = vst [vmem:[%s1247_s13 + $0x160] sm:$0xff] %v797_v54  ;;  %v799_v0 = vadd.f32 %v1238_v29, %v723_v56  ;;  %830 = vst [vmem:[%s1247_s13 + $0x68] sm:$0xff] %v766_v59  ;;  %v768_v1 = vadd.f32 %v1240_v32, %v692_v61 }
 0x104   : > { %862 = vst [vmem:[%s1247_s13 + $0x168] sm:$0xff] %v798_v60  ;;  %v800_v2 = vadd.f32 %v1240_v32, %v724_v62  ;;  %831 = vst [vmem:[%s1247_s13 + $0x70] sm:$0xff] %v767_v63 }
 0x105   : > { %863 = vst [vmem:[%s1247_s13 + $0x170] sm:$0xff] %v799_v0  ;;  %832 = vst [vmem:[%s1247_s13 + $0x78] sm:$0xff] %v768_v1  ;;  %v546_v3 = vpop.f32.mrb[16].mxu0 }
 0x106   : > { %864 = vst [vmem:[%s1247_s13 + $0x178] sm:$0xff] %v800_v2  ;;  %v626_v4 = vpop.f32.mrb[16].mxu1  ;;  %v693_v5 = vmul.f32 %v1233_v27, %v546_v3  ;;  %v548_v7 = vpop.f32.mrb[17].mxu0 }
 0x107   : > { %v725_v6 = vmul.f32 %v1233_v27, %v626_v4  ;;  %v628_v8 = vpop.f32.mrb[17].mxu1  ;;  %v694_v9 = vmul.f32 %v1235_v28, %v548_v7  ;;  %v550_v11 = vpop.f32.mrb[18].mxu0 }
 0x108   : > { %v726_v10 = vmul.f32 %v1235_v28, %v628_v8  ;;  %v630_v12 = vpop.f32.mrb[18].mxu1  ;;  %v769_v13 = vadd.f32 %v1238_v29, %v693_v5  ;;  %v695_v15 = vmul.f32 %v1233_v27, %v550_v11  ;;  %v552_v17 = vpop.f32.mrb[19].mxu0 }
 0x109   : > { %v801_v14 = vadd.f32 %v1238_v29, %v725_v6  ;;  %v727_v16 = vmul.f32 %v1233_v27, %v630_v12  ;;  %v632_v18 = vpop.f32.mrb[19].mxu1  ;;  %v770_v19 = vadd.f32 %v1240_v32, %v694_v9  ;;  %v696_v21 = vmul.f32 %v1235_v28, %v552_v17 }
 0x10a   : > { %v802_v20 = vadd.f32 %v1240_v32, %v726_v10  ;;  %v728_v22 = vmul.f32 %v1235_v28, %v632_v18  ;;  %833 = vst [vmem:[%s1247_s13 + $0x80] sm:$0xff] %v769_v13  ;;  %v771_v23 = vadd.f32 %v1238_v29, %v695_v15 }
 0x10b   : > { %865 = vst [vmem:[%s1247_s13 + $0x180] sm:$0xff] %v801_v14  ;;  %v803_v24 = vadd.f32 %v1238_v29, %v727_v16  ;;  %834 = vst [vmem:[%s1247_s13 + $0x88] sm:$0xff] %v770_v19  ;;  %v772_v25 = vadd.f32 %v1240_v32, %v696_v21 }
 0x10c   : > { %866 = vst [vmem:[%s1247_s13 + $0x188] sm:$0xff] %v802_v20  ;;  %v804_v26 = vadd.f32 %v1240_v32, %v728_v22  ;;  %835 = vst [vmem:[%s1247_s13 + $0x90] sm:$0xff] %v771_v23 }
 0x10d   : > { %867 = vst [vmem:[%s1247_s13 + $0x190] sm:$0xff] %v803_v24  ;;  %836 = vst [vmem:[%s1247_s13 + $0x98] sm:$0xff] %v772_v25  ;;  %v556_v30 = vpop.f32.mrb[20].mxu0 }
 0x10e   : > { %868 = vst [vmem:[%s1247_s13 + $0x198] sm:$0xff] %v804_v26  ;;  %v636_v31 = vpop.f32.mrb[20].mxu1  ;;  %v697_v33 = vmul.f32 %v1233_v27, %v556_v30  ;;  %v558_v35 = vpop.f32.mrb[21].mxu0 }
 0x10f   : > { %v729_v34 = vmul.f32 %v1233_v27, %v636_v31  ;;  %v638_v36 = vpop.f32.mrb[21].mxu1  ;;  %v698_v37 = vmul.f32 %v1235_v28, %v558_v35  ;;  %v560_v39 = vpop.f32.mrb[22].mxu0 }
 0x110   : > { %v730_v38 = vmul.f32 %v1235_v28, %v638_v36  ;;  %v640_v40 = vpop.f32.mrb[22].mxu1  ;;  %v773_v41 = vadd.f32 %v1238_v29, %v697_v33  ;;  %v699_v43 = vmul.f32 %v1233_v27, %v560_v39  ;;  %v562_v45 = vpop.f32.mrb[23].mxu0 }
 0x111   : > { %v805_v42 = vadd.f32 %v1238_v29, %v729_v34  ;;  %v731_v44 = vmul.f32 %v1233_v27, %v640_v40  ;;  %v642_v46 = vpop.f32.mrb[23].mxu1  ;;  %v774_v47 = vadd.f32 %v1240_v32, %v698_v37  ;;  %v700_v49 = vmul.f32 %v1235_v28, %v562_v45 }
 0x112   : > { %v806_v48 = vadd.f32 %v1240_v32, %v730_v38  ;;  %v732_v50 = vmul.f32 %v1235_v28, %v642_v46  ;;  %837 = vst [vmem:[%s1247_s13 + $0xa0] sm:$0xff] %v773_v41  ;;  %v775_v51 = vadd.f32 %v1238_v29, %v699_v43 }
 0x113   : > { %869 = vst [vmem:[%s1247_s13 + $0x1a0] sm:$0xff] %v805_v42  ;;  %v807_v52 = vadd.f32 %v1238_v29, %v731_v44  ;;  %838 = vst [vmem:[%s1247_s13 + $0xa8] sm:$0xff] %v774_v47  ;;  %v776_v53 = vadd.f32 %v1240_v32, %v700_v49 }
 0x114   : > { %870 = vst [vmem:[%s1247_s13 + $0x1a8] sm:$0xff] %v806_v48  ;;  %v808_v54 = vadd.f32 %v1240_v32, %v732_v50  ;;  %839 = vst [vmem:[%s1247_s13 + $0xb0] sm:$0xff] %v775_v51 }
 0x115   : > { %871 = vst [vmem:[%s1247_s13 + $0x1b0] sm:$0xff] %v807_v52  ;;  %840 = vst [vmem:[%s1247_s13 + $0xb8] sm:$0xff] %v776_v53  ;;  %v566_v55 = vpop.f32.mrb[24].mxu0 }
 0x116   : > { %872 = vst [vmem:[%s1247_s13 + $0x1b8] sm:$0xff] %v808_v54  ;;  %v646_v56 = vpop.f32.mrb[24].mxu1  ;;  %v701_v57 = vmul.f32 %v1233_v27, %v566_v55  ;;  %v568_v59 = vpop.f32.mrb[25].mxu0 }
 0x117   : > { %v733_v58 = vmul.f32 %v1233_v27, %v646_v56  ;;  %v648_v60 = vpop.f32.mrb[25].mxu1  ;;  %v702_v61 = vmul.f32 %v1235_v28, %v568_v59  ;;  %v570_v63 = vpop.f32.mrb[26].mxu0 }
 0x118   : > { %v734_v62 = vmul.f32 %v1235_v28, %v648_v60  ;;  %v650_v0 = vpop.f32.mrb[26].mxu1  ;;  %v777_v1 = vadd.f32 %v1238_v29, %v701_v57  ;;  %v703_v3 = vmul.f32 %v1233_v27, %v570_v63  ;;  %v572_v5 = vpop.f32.mrb[27].mxu0 }
 0x119   : > { %v809_v2 = vadd.f32 %v1238_v29, %v733_v58  ;;  %v735_v4 = vmul.f32 %v1233_v27, %v650_v0  ;;  %v652_v6 = vpop.f32.mrb[27].mxu1  ;;  %v778_v7 = vadd.f32 %v1240_v32, %v702_v61  ;;  %v704_v9 = vmul.f32 %v1235_v28, %v572_v5 }
 0x11a   : > { %v810_v8 = vadd.f32 %v1240_v32, %v734_v62  ;;  %v736_v10 = vmul.f32 %v1235_v28, %v652_v6  ;;  %841 = vst [vmem:[%s1247_s13 + $0xc0] sm:$0xff] %v777_v1  ;;  %v779_v11 = vadd.f32 %v1238_v29, %v703_v3 }
 0x11b   : > { %873 = vst [vmem:[%s1247_s13 + $0x1c0] sm:$0xff] %v809_v2  ;;  %v811_v12 = vadd.f32 %v1238_v29, %v735_v4  ;;  %842 = vst [vmem:[%s1247_s13 + $0xc8] sm:$0xff] %v778_v7  ;;  %v780_v13 = vadd.f32 %v1240_v32, %v704_v9 }
 0x11c   : > { %874 = vst [vmem:[%s1247_s13 + $0x1c8] sm:$0xff] %v810_v8  ;;  %v812_v14 = vadd.f32 %v1240_v32, %v736_v10  ;;  %843 = vst [vmem:[%s1247_s13 + $0xd0] sm:$0xff] %v779_v11 }
 0x11d   : > { %875 = vst [vmem:[%s1247_s13 + $0x1d0] sm:$0xff] %v811_v12  ;;  %844 = vst [vmem:[%s1247_s13 + $0xd8] sm:$0xff] %v780_v13  ;;  %v576_v15 = vpop.f32.mrb[28].mxu0 }
 0x11e   : > { %876 = vst [vmem:[%s1247_s13 + $0x1d8] sm:$0xff] %v812_v14  ;;  %v656_v16 = vpop.f32.mrb[28].mxu1  ;;  %v705_v17 = vmul.f32 %v1233_v27, %v576_v15  ;;  %v578_v19 = vpop.f32.mrb[29].mxu0 }
 0x11f   : > { %v737_v18 = vmul.f32 %v1233_v27, %v656_v16  ;;  %v658_v20 = vpop.f32.mrb[29].mxu1  ;;  %v706_v21 = vmul.f32 %v1235_v28, %v578_v19  ;;  %v580_v23 = vpop.f32.mrb[30].mxu0 }
 0x120   : > { %v738_v22 = vmul.f32 %v1235_v28, %v658_v20  ;;  %v660_v24 = vpop.f32.mrb[30].mxu1  ;;  %v781_v25 = vadd.f32 %v1238_v29, %v705_v17  ;;  %v707_v30 = vmul.f32 %v1233_v27, %v580_v23  ;;  %v582_v33 = vpop.f32.mrb[31].mxu0 }
 0x121   : > { %v813_v26 = vadd.f32 %v1238_v29, %v737_v18  ;;  %v739_v31 = vmul.f32 %v1233_v27, %v660_v24  ;;  %v662_v34 = vpop.f32.mrb[31].mxu1  ;;  %v782_v35 = vadd.f32 %v1240_v32, %v706_v21  ;;  %v708_v37 = vmul.f32 %v1235_v28, %v582_v33 }
 0x122   : > { %v814_v36 = vadd.f32 %v1240_v32, %v738_v22  ;;  %v740_v38 = vmul.f32 %v1235_v28, %v662_v34  ;;  %845 = vst [vmem:[%s1247_s13 + $0xe0] sm:$0xff] %v781_v25  ;;  %v783_v39 = vadd.f32 %v1238_v29, %v707_v30 }
 0x123   : > { %877 = vst [vmem:[%s1247_s13 + $0x1e0] sm:$0xff] %v813_v26  ;;  %v815_v40 = vadd.f32 %v1238_v29, %v739_v31  ;;  %846 = vst [vmem:[%s1247_s13 + $0xe8] sm:$0xff] %v782_v35  ;;  %v784_v27 = vadd.f32 %v1240_v32, %v708_v37 }
 0x124   : > { %878 = vst [vmem:[%s1247_s13 + $0x1e8] sm:$0xff] %v814_v36  ;;  %v816_v41 = vadd.f32 %v1240_v32, %v740_v38  ;;  %847 = vst [vmem:[%s1247_s13 + $0xf0] sm:$0xff] %v783_v39 }
 0x125   : > { %879 = vst [vmem:[%s1247_s13 + $0x1f0] sm:$0xff] %v815_v40  ;;  %848 = vst [vmem:[%s1247_s13 + $0xf8] sm:$0xff] %v784_v27 }
 0x126   : > { %880 = vst [vmem:[%s1247_s13 + $0x1f8] sm:$0xff] %v816_v41 }
 0x127 PF: > { %s14_s17 = sadd.s32 1, %s1129_s17   ;;  %s1453_s15 = smov %s1125_s16 }
 0x128   : > { %p11_p5 = scmp.ge.s32.totalorder %s14_s17, 4   ;;  %s1454_s16 = smov %s1456_s18 }
 0x12a   :  { %13 = sbr.rel (!%p11_p5) target bundleno = 2 (0x2), region = 75 }

// kernel: generator_forward.10
= control target key start
LH: loop header
LB: loop body
LE: loop exit
PB: predicated region body
PF: predicated region fallthrough
CT: control target
= control target key end

     0   :  { %s2453_s15 = smov 0   ;;  %s2455_s16 = smov 0   ;;  %s3019_s0 = inlined_call_operand.vmem [shape: bf16[2048,16], index: 0, kind: input, shape index: {}]   ;;  %s3020_s1 = inlined_call_operand.vmem [shape: bf16[16,128], index: 1, kind: input, shape index: {}]   ;;  %s3021_s2 = inlined_call_operand.vmem [shape: f32[1,128], index: 2, kind: input, shape index: {}]   ;;  %s3022_s3 = inlined_call_operand.vmem [shape: f32[1,128], index: 3, kind: input, shape index: {}]   ;;  %s3023_s4 = inlined_call_operand.vmem [shape: f32[2048,128], index: 4, kind: output, shape index: {}]  }
   0x1   :  { %s2457_s17 = smov 0  }
   0x2 LB: > { %s26_s18 = sadd.s32 1, %s2422_s16  ;;  %p1980_p0 = scmp.ge.s32.totalorder %s2426_s17, 1  ;;  %s2426_s17 = sphi %s2457_s17, %s14_s17   ;;  %s2422_s16 = sphi %s2455_s16, %s3025_s16   ;;  %s2418_s15 = sphi %s2453_s15, %s3024_s15  }
   0x3   : > { %p28_p1 = scmp.ge.s32.totalorder %s26_s18, 2  ;;  %p202_p2 = scmp.lt.s32.totalorder %s2426_s17, 3 }
   0x5   : > { %s3027_s18 = smov (%p28_p1, %s26_s18), 0  ;;  %p203_p3 = pnand %p1980_p0, %p202_p2 }
   0x6   : > { %v2339_v0 = vld [vmem:[%s3020_s1] sm:$0xff] (!%p203_p3)   ;;  %s1981_s21 = sshll.u32 (!%p203_p3), %s2418_s15, 7  ;;  %vm723_vm0 = vcmask (!%p203_p3), 130048  }
   0x7   : > { %206 = sbr.rel (%p203_p3) target bundleno = 360 (0x168), region = 36  ;;  %p242_p4 = scmp.lt.s32.totalorder (!%p203_p3), %s1981_s21, 255  ;;  %2183 = vmatprep.subr.bf16.mxu0 (!%p203_p3), %v2339_v0  ;;  %2313 = vmatprep.subr.bf16.mxu1 (!%p203_p3), %v2339_v0 }
   0x8   : > { %2184 = vmatpush3.bf16.msra.mxu0 (!%p203_p3), %v2339_v0  ;;  %2314 = vmatpush3.bf16.msra.mxu1 (!%p203_p3), %v2339_v0 }
   0xe   : > { %s3029_s21 = smov (!%p242_p4, %s1981_s21), 255 }
   0xf   : > { %s1982_s22 = sshll.u32 %s3029_s21, 2  ;;  %s1984_s28 = sshll.u32 %s3029_s21, 3 }
  0x10   : > { %s2480_s25 = scalar_lea.vmem %s3019_s0, %s1982_s22  ;;  %s2625_s7 = scalar_lea.vmem %s3023_s4, %s1984_s28 }
  0x11   : > { %v2340_v1 = vld [vmem:[%s2480_s25] sm:$0xff]   ;;  %v2342_v3 = vld [vmem:[%s2480_s25 + $0x8] sm:$0xff]   ;;  %v2344_v5 = vld [vmem:[%s2480_s25 + $0x10] sm:$0xff]  }
  0x12   : > { %v2341_v2 = vld [vmem:[%s2480_s25 + $0x100] sm:$0xff]   ;;  %2185 = vmatprep.mubr.msk.bf16.mxu0 %vm723_vm0, %v2340_v1  ;;  %v2343_v4 = vld [vmem:[%s2480_s25 + $0x108] sm:$0xff]   ;;  %v2345_v6 = vld [vmem:[%s2480_s25 + $0x110] sm:$0xff]  }
  0x13   : > { %2249 = vmatprep.mubr.msk.bf16.mxu1 %vm723_vm0, %v2341_v2  ;;  %2186 = vmatmul.mubr.msk.bf16.vlgmr.msra.gmra.mrb[0].mxu0 %vm723_vm0, %v2342_v3  ;;  %v2346_v7 = vld [vmem:[%s2480_s25 + $0x18] sm:$0xff]   ;;  %v2348_v9 = vld [vmem:[%s2480_s25 + $0x20] sm:$0xff]   ;;  %v2350_v11 = vld [vmem:[%s2480_s25 + $0x28] sm:$0xff]  }
  0x14   : > { %2250 = vmatmul.mubr.msk.bf16.vlgmr.msra.gmra.mrb[0].mxu1 %vm723_vm0, %v2343_v4  ;;  %2189 = vmatprep.mubr.msk.bf16.mxu0 %vm723_vm0, %v2344_v5  ;;  %v2347_v8 = vld [vmem:[%s2480_s25 + $0x118] sm:$0xff]   ;;  %v2349_v10 = vld [vmem:[%s2480_s25 + $0x120] sm:$0xff]   ;;  %v2351_v12 = vld [vmem:[%s2480_s25 + $0x128] sm:$0xff]  }
  0x15   : > { %2253 = vmatprep.mubr.msk.bf16.mxu1 %vm723_vm0, %v2345_v6  ;;  %v2352_v13 = vld [vmem:[%s2480_s25 + $0x30] sm:$0xff]   ;;  %v2354_v15 = vld [vmem:[%s2480_s25 + $0x38] sm:$0xff]   ;;  %v2356_v17 = vld [vmem:[%s2480_s25 + $0x40] sm:$0xff]  }
  0x16   : > { %v2353_v14 = vld [vmem:[%s2480_s25 + $0x130] sm:$0xff]   ;;  %v2355_v16 = vld [vmem:[%s2480_s25 + $0x138] sm:$0xff]   ;;  %v2357_v18 = vld [vmem:[%s2480_s25 + $0x140] sm:$0xff]  }
  0x17   : > { %v2358_v19 = vld [vmem:[%s2480_s25 + $0x48] sm:$0xff]   ;;  %v2360_v21 = vld [vmem:[%s2480_s25 + $0x50] sm:$0xff]   ;;  %v2362_v23 = vld [vmem:[%s2480_s25 + $0x58] sm:$0xff]  }
  0x18   : > { %v2359_v20 = vld [vmem:[%s2480_s25 + $0x148] sm:$0xff]   ;;  %v2361_v22 = vld [vmem:[%s2480_s25 + $0x150] sm:$0xff]   ;;  %v2363_v24 = vld [vmem:[%s2480_s25 + $0x158] sm:$0xff]  }
  0x19   : > { %v2364_v25 = vld [vmem:[%s2480_s25 + $0x60] sm:$0xff]   ;;  %v2366_v27 = vld [vmem:[%s2480_s25 + $0x68] sm:$0xff]   ;;  %v2368_v29 = vld [vmem:[%s2480_s25 + $0x70] sm:$0xff]  }
  0x1a   : > { %v2365_v26 = vld [vmem:[%s2480_s25 + $0x160] sm:$0xff]   ;;  %v2367_v28 = vld [vmem:[%s2480_s25 + $0x168] sm:$0xff]   ;;  %v2369_v30 = vld [vmem:[%s2480_s25 + $0x170] sm:$0xff]  }
  0x1b   : > { %2190 = vmatmul.mubr.msk.bf16.gmra.mrb[4].mxu0 %vm723_vm0, %v2346_v7  ;;  %v2370_v31 = vld [vmem:[%s2480_s25 + $0x78] sm:$0xff]   ;;  %v2372_v33 = vld [vmem:[%s2480_s25 + $0x80] sm:$0xff]   ;;  %v2374_v35 = vld [vmem:[%s2480_s25 + $0x88] sm:$0xff]  }
  0x1c   : > { %2254 = vmatmul.mubr.msk.bf16.gmra.mrb[4].mxu1 %vm723_vm0, %v2347_v8  ;;  %2193 = vmatprep.mubr.msk.bf16.mxu0 %vm723_vm0, %v2348_v9  ;;  %v2371_v32 = vld [vmem:[%s2480_s25 + $0x178] sm:$0xff]   ;;  %v2373_v34 = vld [vmem:[%s2480_s25 + $0x180] sm:$0xff]   ;;  %v2375_v36 = vld [vmem:[%s2480_s25 + $0x188] sm:$0xff]  }
  0x1d   : > { %2257 = vmatprep.mubr.msk.bf16.mxu1 %vm723_vm0, %v2349_v10  ;;  %v2376_v37 = vld [vmem:[%s2480_s25 + $0x90] sm:$0xff]   ;;  %v2378_v39 = vld [vmem:[%s2480_s25 + $0x98] sm:$0xff]   ;;  %v2380_v41 = vld [vmem:[%s2480_s25 + $0xa0] sm:$0xff]  }
  0x1e   : > { %v2377_v38 = vld [vmem:[%s2480_s25 + $0x190] sm:$0xff]   ;;  %v2379_v40 = vld [vmem:[%s2480_s25 + $0x198] sm:$0xff]   ;;  %v2381_v42 = vld [vmem:[%s2480_s25 + $0x1a0] sm:$0xff]  }
  0x1f   : > { %v2382_v43 = vld [vmem:[%s2480_s25 + $0xa8] sm:$0xff]   ;;  %v2384_v45 = vld [vmem:[%s2480_s25 + $0xb0] sm:$0xff]   ;;  %v2386_v47 = vld [vmem:[%s2480_s25 + $0xb8] sm:$0xff]  }
  0x20   : > { %v2383_v44 = vld [vmem:[%s2480_s25 + $0x1a8] sm:$0xff]   ;;  %v2385_v46 = vld [vmem:[%s2480_s25 + $0x1b0] sm:$0xff]   ;;  %v2387_v48 = vld [vmem:[%s2480_s25 + $0x1b8] sm:$0xff]  }
  0x21   : > { %v2388_v49 = vld [vmem:[%s2480_s25 + $0xc0] sm:$0xff]   ;;  %v2390_v51 = vld [vmem:[%s2480_s25 + $0xc8] sm:$0xff]   ;;  %v2392_v53 = vld [vmem:[%s2480_s25 + $0xd0] sm:$0xff]  }
  0x22   : > { %v2389_v50 = vld [vmem:[%s2480_s25 + $0x1c0] sm:$0xff]   ;;  %v2391_v52 = vld [vmem:[%s2480_s25 + $0x1c8] sm:$0xff]   ;;  %v2393_v54 = vld [vmem:[%s2480_s25 + $0x1d0] sm:$0xff]  }
  0x23   : > { %2194 = vmatmul.mubr.msk.bf16.gmra.mrb[8].mxu0 %vm723_vm0, %v2350_v11  ;;  %v2394_v55 = vld [vmem:[%s2480_s25 + $0xd8] sm:$0xff]   ;;  %v2396_v57 = vld [vmem:[%s2480_s25 + $0xe0] sm:$0xff]   ;;  %v2398_v59 = vld [vmem:[%s2480_s25 + $0xe8] sm:$0xff]  }
  0x24   : > { %2258 = vmatmul.mubr.msk.bf16.gmra.mrb[8].mxu1 %vm723_vm0, %v2351_v12  ;;  %2197 = vmatprep.mubr.msk.bf16.mxu0 %vm723_vm0, %v2352_v13  ;;  %v2395_v56 = vld [vmem:[%s2480_s25 + $0x1d8] sm:$0xff]   ;;  %v2397_v58 = vld [vmem:[%s2480_s25 + $0x1e0] sm:$0xff]   ;;  %v2399_v60 = vld [vmem:[%s2480_s25 + $0x1e8] sm:$0xff]  }
  0x25   : > { %2261 = vmatprep.mubr.msk.bf16.mxu1 %vm723_vm0, %v2353_v14  ;;  %v2400_v61 = vld [vmem:[%s2480_s25 + $0xf0] sm:$0xff]   ;;  %v2402_v63 = vld [vmem:[%s2480_s25 + $0xf8] sm:$0xff]   ;;  %v2613_v1 = vld [vmem:[%s3021_s2] ss:$0 sm:$0xff] }
  0x26   : > { %v2401_v62 = vld [vmem:[%s2480_s25 + $0x1f0] sm:$0xff]   ;;  %v2403_v0 = vld [vmem:[%s2480_s25 + $0x1f8] sm:$0xff]   ;;  %v2619_v3 = vld [vmem:[%s3022_s3] ss:$0 sm:$0xff] }
  0x2b   : > { %2198 = vmatmul.mubr.msk.bf16.gmra.mrb[12].mxu0 %vm723_vm0, %v2354_v15 }
  0x2c   : > { %2262 = vmatmul.mubr.msk.bf16.gmra.mrb[12].mxu1 %vm723_vm0, %v2355_v16  ;;  %2201 = vmatprep.mubr.msk.bf16.mxu0 %vm723_vm0, %v2356_v17 }
  0x2d   : > { %2265 = vmatprep.mubr.msk.bf16.mxu1 %vm723_vm0, %v2357_v18 }
  0x33   : > { %2202 = vmatmul.mubr.msk.bf16.gmra.mrb[16].mxu0 %vm723_vm0, %v2358_v19 }
  0x34   : > { %2266 = vmatmul.mubr.msk.bf16.gmra.mrb[16].mxu1 %vm723_vm0, %v2359_v20  ;;  %2205 = vmatprep.mubr.msk.bf16.mxu0 %vm723_vm0, %v2360_v21 }
  0x35   : > { %2269 = vmatprep.mubr.msk.bf16.mxu1 %vm723_vm0, %v2361_v22 }
  0x3b   : > { %2206 = vmatmul.mubr.msk.bf16.gmra.mrb[20].mxu0 %vm723_vm0, %v2362_v23 }
  0x3c   : > { %2270 = vmatmul.mubr.msk.bf16.gmra.mrb[20].mxu1 %vm723_vm0, %v2363_v24  ;;  %2209 = vmatprep.mubr.msk.bf16.mxu0 %vm723_vm0, %v2364_v25 }
  0x3d   : > { %2273 = vmatprep.mubr.msk.bf16.mxu1 %vm723_vm0, %v2365_v26 }
  0x43   : > { %2210 = vmatmul.mubr.msk.bf16.gmra.mrb[24].mxu0 %vm723_vm0, %v2366_v27 }
  0x44   : > { %2274 = vmatmul.mubr.msk.bf16.gmra.mrb[24].mxu1 %vm723_vm0, %v2367_v28  ;;  %2213 = vmatprep.mubr.msk.bf16.mxu0 %vm723_vm0, %v2368_v29 }
  0x45   : > { %2277 = vmatprep.mubr.msk.bf16.mxu1 %vm723_vm0, %v2369_v30 }
  0x4b   : > { %2214 = vmatmul.mubr.msk.bf16.gmra.mrb[28].mxu0 %vm723_vm0, %v2370_v31 }
  0x4c   : > { %2278 = vmatmul.mubr.msk.bf16.gmra.mrb[28].mxu1 %vm723_vm0, %v2371_v32  ;;  %2217 = vmatprep.mubr.msk.bf16.mxu0 %vm723_vm0, %v2372_v33 }
  0x4d   : > { %2281 = vmatprep.mubr.msk.bf16.mxu1 %vm723_vm0, %v2373_v34 }
  0x53   : > { %2218 = vmatmul.mubr.msk.bf16.gmra.mrb[32].mxu0 %vm723_vm0, %v2374_v35 }
  0x54   : > { %2282 = vmatmul.mubr.msk.bf16.gmra.mrb[32].mxu1 %vm723_vm0, %v2375_v36  ;;  %2221 = vmatprep.mubr.msk.bf16.mxu0 %vm723_vm0, %v2376_v37 }
  0x55   : > { %2285 = vmatprep.mubr.msk.bf16.mxu1 %vm723_vm0, %v2377_v38 }
  0x5b   : > { %2222 = vmatmul.mubr.msk.bf16.gmra.mrb[36].mxu0 %vm723_vm0, %v2378_v39 }
  0x5c   : > { %2286 = vmatmul.mubr.msk.bf16.gmra.mrb[36].mxu1 %vm723_vm0, %v2379_v40  ;;  %2225 = vmatprep.mubr.msk.bf16.mxu0 %vm723_vm0, %v2380_v41 }
  0x5d   : > { %2289 = vmatprep.mubr.msk.bf16.mxu1 %vm723_vm0, %v2381_v42 }
  0x63   : > { %2226 = vmatmul.mubr.msk.bf16.gmra.mrb[40].mxu0 %vm723_vm0, %v2382_v43 }
  0x64   : > { %2290 = vmatmul.mubr.msk.bf16.gmra.mrb[40].mxu1 %vm723_vm0, %v2383_v44  ;;  %2229 = vmatprep.mubr.msk.bf16.mxu0 %vm723_vm0, %v2384_v45 }
  0x65   : > { %2293 = vmatprep.mubr.msk.bf16.mxu1 %vm723_vm0, %v2385_v46 }
  0x6b   : > { %2230 = vmatmul.mubr.msk.bf16.gmra.mrb[44].mxu0 %vm723_vm0, %v2386_v47 }
  0x6c   : > { %2294 = vmatmul.mubr.msk.bf16.gmra.mrb[44].mxu1 %vm723_vm0, %v2387_v48  ;;  %2233 = vmatprep.mubr.msk.bf16.mxu0 %vm723_vm0, %v2388_v49 }
  0x6d   : > { %2297 = vmatprep.mubr.msk.bf16.mxu1 %vm723_vm0, %v2389_v50 }
  0x73   : > { %2234 = vmatmul.mubr.msk.bf16.gmra.mrb[48].mxu0 %vm723_vm0, %v2390_v51 }
  0x74   : > { %2298 = vmatmul.mubr.msk.bf16.gmra.mrb[48].mxu1 %vm723_vm0, %v2391_v52  ;;  %2237 = vmatprep.mubr.msk.bf16.mxu0 %vm723_vm0, %v2392_v53 }
  0x75   : > { %2301 = vmatprep.mubr.msk.bf16.mxu1 %vm723_vm0, %v2393_v54 }
  0x7b   : > { %2238 = vmatmul.mubr.msk.bf16.gmra.mrb[52].mxu0 %vm723_vm0, %v2394_v55 }
  0x7c   : > { %2302 = vmatmul.mubr.msk.bf16.gmra.mrb[52].mxu1 %vm723_vm0, %v2395_v56  ;;  %2241 = vmatprep.mubr.msk.bf16.mxu0 %vm723_vm0, %v2396_v57 }
  0x7d   : > { %2305 = vmatprep.mubr.msk.bf16.mxu1 %vm723_vm0, %v2397_v58 }
  0x83   : > { %2242 = vmatmul.mubr.msk.bf16.gmra.mrb[56].mxu0 %vm723_vm0, %v2398_v59 }
  0x84   : > { %2306 = vmatmul.mubr.msk.bf16.gmra.mrb[56].mxu1 %vm723_vm0, %v2399_v60  ;;  %2245 = vmatprep.mubr.msk.bf16.mxu0 %vm723_vm0, %v2400_v61 }
  0x85   : > { %2309 = vmatprep.mubr.msk.bf16.mxu1 %vm723_vm0, %v2401_v62 }
  0x8b   : > { %2246 = vmatmul.mubr.msk.bf16.gmra.mrb[60].mxu0 %vm723_vm0, %v2402_v63 }
  0x8c   : > { %2310 = vmatmul.mubr.msk.bf16.gmra.mrb[60].mxu1 %vm723_vm0, %v2403_v0 }
  0xe6   : > { %v2187_v2 = vpop.f32.mrb[0].mxu0 }
  0xe7   : > { %v1470_v4 = vmul.f32 %v2187_v2, %v2613_v1  ;;  %v2251_v5 = vpop.f32.mrb[0].mxu1  ;;  %v950_v6 = vpop.f32.mrb[1].mxu0 }
  0xe8   : > { %v1534_v7 = vmul.f32 %v2251_v5, %v2613_v1  ;;  %v1468_v8 = vmul.f32 %v2613_v1, %v950_v6  ;;  %v1206_v9 = vpop.f32.mrb[1].mxu1  ;;  %v2188_v10 = vpop.f32.mrb[2].mxu0 }
  0xe9   : > { %v1605_v11 = vadd.f32 %v2619_v3, %v1470_v4  ;;  %v1532_v12 = vmul.f32 %v2613_v1, %v1206_v9  ;;  %v1471_v13 = vmul.f32 %v2188_v10, %v2613_v1  ;;  %v2252_v14 = vpop.f32.mrb[2].mxu1  ;;  %v953_v15 = vpop.f32.mrb[3].mxu0 }
  0xea   : > { %v1669_v16 = vadd.f32 %v2619_v3, %v1534_v7  ;;  %v1603_v17 = vadd.f32 %v2619_v3, %v1468_v8  ;;  %v1535_v18 = vmul.f32 %v2252_v14, %v2613_v1  ;;  %v1469_v19 = vmul.f32 %v2613_v1, %v953_v15  ;;  %v1209_v20 = vpop.f32.mrb[3].mxu1 }
  0xeb   : > { %1733 = vst [vmem:[%s2625_s7 + $0x10] sm:$0xff] %v1605_v11  ;;  %v1667_v21 = vadd.f32 %v2619_v3, %v1532_v12  ;;  %v1606_v22 = vadd.f32 %v2619_v3, %v1471_v13  ;;  %v1533_v23 = vmul.f32 %v2613_v1, %v1209_v20 }
  0xec   : > { %1797 = vst [vmem:[%s2625_s7 + $0x210] sm:$0xff] %v1669_v16  ;;  %1731 = vst [vmem:[%s2625_s7] sm:$0xff] %v1603_v17  ;;  %v1670_v24 = vadd.f32 %v2619_v3, %v1535_v18  ;;  %v1604_v25 = vadd.f32 %v2619_v3, %v1469_v19 }
  0xed   : > { %1795 = vst [vmem:[%s2625_s7 + $0x200] sm:$0xff] %v1667_v21  ;;  %1734 = vst [vmem:[%s2625_s7 + $0x18] sm:$0xff] %v1606_v22  ;;  %v1668_v26 = vadd.f32 %v2619_v3, %v1533_v23 }
  0xee   : > { %1798 = vst [vmem:[%s2625_s7 + $0x218] sm:$0xff] %v1670_v24  ;;  %1732 = vst [vmem:[%s2625_s7 + $0x8] sm:$0xff] %v1604_v25  ;;  %v2191_v27 = vpop.f32.mrb[4].mxu0 }
  0xef   : > { %1796 = vst [vmem:[%s2625_s7 + $0x208] sm:$0xff] %v1668_v26  ;;  %v1474_v28 = vmul.f32 %v2191_v27, %v2613_v1  ;;  %v2255_v29 = vpop.f32.mrb[4].mxu1  ;;  %v966_v30 = vpop.f32.mrb[5].mxu0 }
  0xf0   : > { %v1538_v31 = vmul.f32 %v2255_v29, %v2613_v1  ;;  %v1472_v32 = vmul.f32 %v2613_v1, %v966_v30  ;;  %v1222_v33 = vpop.f32.mrb[5].mxu1  ;;  %v2192_v34 = vpop.f32.mrb[6].mxu0 }
  0xf1   : > { %v1609_v35 = vadd.f32 %v2619_v3, %v1474_v28  ;;  %v1536_v36 = vmul.f32 %v2613_v1, %v1222_v33  ;;  %v1475_v37 = vmul.f32 %v2192_v34, %v2613_v1  ;;  %v2256_v38 = vpop.f32.mrb[6].mxu1  ;;  %v969_v39 = vpop.f32.mrb[7].mxu0 }
  0xf2   : > { %v1673_v40 = vadd.f32 %v2619_v3, %v1538_v31  ;;  %v1607_v41 = vadd.f32 %v2619_v3, %v1472_v32  ;;  %v1539_v42 = vmul.f32 %v2256_v38, %v2613_v1  ;;  %v1473_v43 = vmul.f32 %v2613_v1, %v969_v39  ;;  %v1225_v44 = vpop.f32.mrb[7].mxu1 }
  0xf3   : > { %1737 = vst [vmem:[%s2625_s7 + $0x30] sm:$0xff] %v1609_v35  ;;  %v1671_v45 = vadd.f32 %v2619_v3, %v1536_v36  ;;  %v1610_v46 = vadd.f32 %v2619_v3, %v1475_v37  ;;  %v1537_v47 = vmul.f32 %v2613_v1, %v1225_v44 }
  0xf4   : > { %1801 = vst [vmem:[%s2625_s7 + $0x230] sm:$0xff] %v1673_v40  ;;  %1735 = vst [vmem:[%s2625_s7 + $0x20] sm:$0xff] %v1607_v41  ;;  %v1674_v48 = vadd.f32 %v2619_v3, %v1539_v42  ;;  %v1608_v49 = vadd.f32 %v2619_v3, %v1473_v43 }
  0xf5   : > { %1799 = vst [vmem:[%s2625_s7 + $0x220] sm:$0xff] %v1671_v45  ;;  %1738 = vst [vmem:[%s2625_s7 + $0x38] sm:$0xff] %v1610_v46  ;;  %v1672_v50 = vadd.f32 %v2619_v3, %v1537_v47 }
  0xf6   : > { %1802 = vst [vmem:[%s2625_s7 + $0x238] sm:$0xff] %v1674_v48  ;;  %1736 = vst [vmem:[%s2625_s7 + $0x28] sm:$0xff] %v1608_v49  ;;  %v2195_v51 = vpop.f32.mrb[8].mxu0 }
  0xf7   : > { %1800 = vst [vmem:[%s2625_s7 + $0x228] sm:$0xff] %v1672_v50  ;;  %v1478_v52 = vmul.f32 %v2195_v51, %v2613_v1  ;;  %v2259_v53 = vpop.f32.mrb[8].mxu1  ;;  %v982_v54 = vpop.f32.mrb[9].mxu0 }
  0xf8   : > { %v1542_v55 = vmul.f32 %v2259_v53, %v2613_v1  ;;  %v1476_v56 = vmul.f32 %v2613_v1, %v982_v54  ;;  %v1238_v57 = vpop.f32.mrb[9].mxu1  ;;  %v2196_v58 = vpop.f32.mrb[10].mxu0 }
  0xf9   : > { %v1613_v59 = vadd.f32 %v2619_v3, %v1478_v52  ;;  %v1540_v60 = vmul.f32 %v2613_v1, %v1238_v57  ;;  %v1479_v61 = vmul.f32 %v2196_v58, %v2613_v1  ;;  %v2260_v62 = vpop.f32.mrb[10].mxu1  ;;  %v985_v63 = vpop.f32.mrb[11].mxu0 }
  0xfa   : > { %v1677_v0 = vadd.f32 %v2619_v3, %v1542_v55  ;;  %v1611_v2 = vadd.f32 %v2619_v3, %v1476_v56  ;;  %v1543_v4 = vmul.f32 %v2260_v62, %v2613_v1  ;;  %v1477_v5 = vmul.f32 %v2613_v1, %v985_v63  ;;  %v1241_v6 = vpop.f32.mrb[11].mxu1 }
  0xfb   : > { %1741 = vst [vmem:[%s2625_s7 + $0x50] sm:$0xff] %v1613_v59  ;;  %v1675_v7 = vadd.f32 %v2619_v3, %v1540_v60  ;;  %v1614_v8 = vadd.f32 %v2619_v3, %v1479_v61  ;;  %v1541_v9 = vmul.f32 %v2613_v1, %v1241_v6 }
  0xfc   : > { %1805 = vst [vmem:[%s2625_s7 + $0x250] sm:$0xff] %v1677_v0  ;;  %1739 = vst [vmem:[%s2625_s7 + $0x40] sm:$0xff] %v1611_v2  ;;  %v1678_v10 = vadd.f32 %v2619_v3, %v1543_v4  ;;  %v1612_v11 = vadd.f32 %v2619_v3, %v1477_v5 }
  0xfd   : > { %1803 = vst [vmem:[%s2625_s7 + $0x240] sm:$0xff] %v1675_v7  ;;  %1742 = vst [vmem:[%s2625_s7 + $0x58] sm:$0xff] %v1614_v8  ;;  %v1676_v12 = vadd.f32 %v2619_v3, %v1541_v9 }
  0xfe   : > { %1806 = vst [vmem:[%s2625_s7 + $0x258] sm:$0xff] %v1678_v10  ;;  %1740 = vst [vmem:[%s2625_s7 + $0x48] sm:$0xff] %v1612_v11  ;;  %v2199_v13 = vpop.f32.mrb[12].mxu0 }
  0xff   : > { %1804 = vst [vmem:[%s2625_s7 + $0x248] sm:$0xff] %v1676_v12  ;;  %v1482_v14 = vmul.f32 %v2199_v13, %v2613_v1  ;;  %v2263_v15 = vpop.f32.mrb[12].mxu1  ;;  %v998_v16 = vpop.f32.mrb[13].mxu0 }
 0x100   : > { %v1546_v17 = vmul.f32 %v2263_v15, %v2613_v1  ;;  %v1480_v18 = vmul.f32 %v2613_v1, %v998_v16  ;;  %v1254_v19 = vpop.f32.mrb[13].mxu1  ;;  %v2200_v20 = vpop.f32.mrb[14].mxu0 }
 0x101   : > { %v1617_v21 = vadd.f32 %v2619_v3, %v1482_v14  ;;  %v1544_v22 = vmul.f32 %v2613_v1, %v1254_v19  ;;  %v1483_v23 = vmul.f32 %v2200_v20, %v2613_v1  ;;  %v2264_v24 = vpop.f32.mrb[14].mxu1  ;;  %v1001_v25 = vpop.f32.mrb[15].mxu0 }
 0x102   : > { %v1681_v26 = vadd.f32 %v2619_v3, %v1546_v17  ;;  %v1615_v27 = vadd.f32 %v2619_v3, %v1480_v18  ;;  %v1547_v28 = vmul.f32 %v2264_v24, %v2613_v1  ;;  %v1481_v29 = vmul.f32 %v2613_v1, %v1001_v25  ;;  %v1257_v30 = vpop.f32.mrb[15].mxu1 }
 0x103   : > { %1745 = vst [vmem:[%s2625_s7 + $0x70] sm:$0xff] %v1617_v21  ;;  %v1679_v31 = vadd.f32 %v2619_v3, %v1544_v22  ;;  %v1618_v32 = vadd.f32 %v2619_v3, %v1483_v23  ;;  %v1545_v33 = vmul.f32 %v2613_v1, %v1257_v30 }
 0x104   : > { %1809 = vst [vmem:[%s2625_s7 + $0x270] sm:$0xff] %v1681_v26  ;;  %1743 = vst [vmem:[%s2625_s7 + $0x60] sm:$0xff] %v1615_v27  ;;  %v1682_v34 = vadd.f32 %v2619_v3, %v1547_v28  ;;  %v1616_v35 = vadd.f32 %v2619_v3, %v1481_v29 }
 0x105   : > { %1807 = vst [vmem:[%s2625_s7 + $0x260] sm:$0xff] %v1679_v31  ;;  %1746 = vst [vmem:[%s2625_s7 + $0x78] sm:$0xff] %v1618_v32  ;;  %v1680_v36 = vadd.f32 %v2619_v3, %v1545_v33 }
 0x106   : > { %1810 = vst [vmem:[%s2625_s7 + $0x278] sm:$0xff] %v1682_v34  ;;  %1744 = vst [vmem:[%s2625_s7 + $0x68] sm:$0xff] %v1616_v35  ;;  %v2203_v37 = vpop.f32.mrb[16].mxu0 }
 0x107   : > { %1808 = vst [vmem:[%s2625_s7 + $0x268] sm:$0xff] %v1680_v36  ;;  %v1486_v38 = vmul.f32 %v2203_v37, %v2613_v1  ;;  %v2267_v39 = vpop.f32.mrb[16].mxu1  ;;  %v1014_v40 = vpop.f32.mrb[17].mxu0 }
 0x108   : > { %v1550_v41 = vmul.f32 %v2267_v39, %v2613_v1  ;;  %v1484_v42 = vmul.f32 %v2613_v1, %v1014_v40  ;;  %v1270_v43 = vpop.f32.mrb[17].mxu1  ;;  %v2204_v44 = vpop.f32.mrb[18].mxu0 }
 0x109   : > { %v1621_v45 = vadd.f32 %v2619_v3, %v1486_v38  ;;  %v1548_v46 = vmul.f32 %v2613_v1, %v1270_v43  ;;  %v1487_v47 = vmul.f32 %v2204_v44, %v2613_v1  ;;  %v2268_v48 = vpop.f32.mrb[18].mxu1  ;;  %v1017_v49 = vpop.f32.mrb[19].mxu0 }
 0x10a   : > { %v1685_v50 = vadd.f32 %v2619_v3, %v1550_v41  ;;  %v1619_v51 = vadd.f32 %v2619_v3, %v1484_v42  ;;  %v1551_v52 = vmul.f32 %v2268_v48, %v2613_v1  ;;  %v1485_v53 = vmul.f32 %v2613_v1, %v1017_v49  ;;  %v1273_v54 = vpop.f32.mrb[19].mxu1 }
 0x10b   : > { %1749 = vst [vmem:[%s2625_s7 + $0x90] sm:$0xff] %v1621_v45  ;;  %v1683_v55 = vadd.f32 %v2619_v3, %v1548_v46  ;;  %v1622_v56 = vadd.f32 %v2619_v3, %v1487_v47  ;;  %v1549_v57 = vmul.f32 %v2613_v1, %v1273_v54 }
 0x10c   : > { %1813 = vst [vmem:[%s2625_s7 + $0x290] sm:$0xff] %v1685_v50  ;;  %1747 = vst [vmem:[%s2625_s7 + $0x80] sm:$0xff] %v1619_v51  ;;  %v1686_v58 = vadd.f32 %v2619_v3, %v1551_v52  ;;  %v1620_v59 = vadd.f32 %v2619_v3, %v1485_v53 }
 0x10d   : > { %1811 = vst [vmem:[%s2625_s7 + $0x280] sm:$0xff] %v1683_v55  ;;  %1750 = vst [vmem:[%s2625_s7 + $0x98] sm:$0xff] %v1622_v56  ;;  %v1684_v60 = vadd.f32 %v2619_v3, %v1549_v57 }
 0x10e   : > { %1814 = vst [vmem:[%s2625_s7 + $0x298] sm:$0xff] %v1686_v58  ;;  %1748 = vst [vmem:[%s2625_s7 + $0x88] sm:$0xff] %v1620_v59  ;;  %v2207_v61 = vpop.f32.mrb[20].mxu0 }
 0x10f   : > { %1812 = vst [vmem:[%s2625_s7 + $0x288] sm:$0xff] %v1684_v60  ;;  %v1490_v62 = vmul.f32 %v2207_v61, %v2613_v1  ;;  %v2271_v63 = vpop.f32.mrb[20].mxu1  ;;  %v1030_v0 = vpop.f32.mrb[21].mxu0 }
 0x110   : > { %v1554_v2 = vmul.f32 %v2271_v63, %v2613_v1  ;;  %v1488_v4 = vmul.f32 %v2613_v1, %v1030_v0  ;;  %v1286_v5 = vpop.f32.mrb[21].mxu1  ;;  %v2208_v6 = vpop.f32.mrb[22].mxu0 }
 0x111   : > { %v1625_v7 = vadd.f32 %v2619_v3, %v1490_v62  ;;  %v1552_v8 = vmul.f32 %v2613_v1, %v1286_v5  ;;  %v1491_v9 = vmul.f32 %v2208_v6, %v2613_v1  ;;  %v2272_v10 = vpop.f32.mrb[22].mxu1  ;;  %v1033_v11 = vpop.f32.mrb[23].mxu0 }
 0x112   : > { %v1689_v12 = vadd.f32 %v2619_v3, %v1554_v2  ;;  %v1623_v13 = vadd.f32 %v2619_v3, %v1488_v4  ;;  %v1555_v14 = vmul.f32 %v2272_v10, %v2613_v1  ;;  %v1489_v15 = vmul.f32 %v2613_v1, %v1033_v11  ;;  %v1289_v16 = vpop.f32.mrb[23].mxu1 }
 0x113   : > { %1753 = vst [vmem:[%s2625_s7 + $0xb0] sm:$0xff] %v1625_v7  ;;  %v1687_v17 = vadd.f32 %v2619_v3, %v1552_v8  ;;  %v1626_v18 = vadd.f32 %v2619_v3, %v1491_v9  ;;  %v1553_v19 = vmul.f32 %v2613_v1, %v1289_v16 }
 0x114   : > { %1817 = vst [vmem:[%s2625_s7 + $0x2b0] sm:$0xff] %v1689_v12  ;;  %1751 = vst [vmem:[%s2625_s7 + $0xa0] sm:$0xff] %v1623_v13  ;;  %v1690_v20 = vadd.f32 %v2619_v3, %v1555_v14  ;;  %v1624_v21 = vadd.f32 %v2619_v3, %v1489_v15 }
 0x115   : > { %1815 = vst [vmem:[%s2625_s7 + $0x2a0] sm:$0xff] %v1687_v17  ;;  %1754 = vst [vmem:[%s2625_s7 + $0xb8] sm:$0xff] %v1626_v18  ;;  %v1688_v22 = vadd.f32 %v2619_v3, %v1553_v19 }
 0x116   : > { %1818 = vst [vmem:[%s2625_s7 + $0x2b8] sm:$0xff] %v1690_v20  ;;  %1752 = vst [vmem:[%s2625_s7 + $0xa8] sm:$0xff] %v1624_v21  ;;  %v2211_v23 = vpop.f32.mrb[24].mxu0 }
 0x117   : > { %1816 = vst [vmem:[%s2625_s7 + $0x2a8] sm:$0xff] %v1688_v22  ;;  %v1494_v24 = vmul.f32 %v2211_v23, %v2613_v1  ;;  %v2275_v25 = vpop.f32.mrb[24].mxu1  ;;  %v1046_v26 = vpop.f32.mrb[25].mxu0 }
 0x118   : > { %v1558_v27 = vmul.f32 %v2275_v25, %v2613_v1  ;;  %v1492_v28 = vmul.f32 %v2613_v1, %v1046_v26  ;;  %v1302_v29 = vpop.f32.mrb[25].mxu1  ;;  %v2212_v30 = vpop.f32.mrb[26].mxu0 }
 0x119   : > { %v1629_v31 = vadd.f32 %v2619_v3, %v1494_v24  ;;  %v1556_v32 = vmul.f32 %v2613_v1, %v1302_v29  ;;  %v1495_v33 = vmul.f32 %v2212_v30, %v2613_v1  ;;  %v2276_v34 = vpop.f32.mrb[26].mxu1  ;;  %v1049_v35 = vpop.f32.mrb[27].mxu0 }
 0x11a   : > { %v1693_v36 = vadd.f32 %v2619_v3, %v1558_v27  ;;  %v1627_v37 = vadd.f32 %v2619_v3, %v1492_v28  ;;  %v1559_v38 = vmul.f32 %v2276_v34, %v2613_v1  ;;  %v1493_v39 = vmul.f32 %v2613_v1, %v1049_v35  ;;  %v1305_v40 = vpop.f32.mrb[27].mxu1 }
 0x11b   : > { %1757 = vst [vmem:[%s2625_s7 + $0xd0] sm:$0xff] %v1629_v31  ;;  %v1691_v41 = vadd.f32 %v2619_v3, %v1556_v32  ;;  %v1630_v42 = vadd.f32 %v2619_v3, %v1495_v33  ;;  %v1557_v43 = vmul.f32 %v2613_v1, %v1305_v40 }
 0x11c   : > { %1821 = vst [vmem:[%s2625_s7 + $0x2d0] sm:$0xff] %v1693_v36  ;;  %1755 = vst [vmem:[%s2625_s7 + $0xc0] sm:$0xff] %v1627_v37  ;;  %v1694_v44 = vadd.f32 %v2619_v3, %v1559_v38  ;;  %v1628_v45 = vadd.f32 %v2619_v3, %v1493_v39 }
 0x11d   : > { %1819 = vst [vmem:[%s2625_s7 + $0x2c0] sm:$0xff] %v1691_v41  ;;  %1758 = vst [vmem:[%s2625_s7 + $0xd8] sm:$0xff] %v1630_v42  ;;  %v1692_v46 = vadd.f32 %v2619_v3, %v1557_v43 }
 0x11e   : > { %1822 = vst [vmem:[%s2625_s7 + $0x2d8] sm:$0xff] %v1694_v44  ;;  %1756 = vst [vmem:[%s2625_s7 + $0xc8] sm:$0xff] %v1628_v45  ;;  %v2215_v47 = vpop.f32.mrb[28].mxu0 }
 0x11f   : > { %1820 = vst [vmem:[%s2625_s7 + $0x2c8] sm:$0xff] %v1692_v46  ;;  %v1498_v48 = vmul.f32 %v2215_v47, %v2613_v1  ;;  %v2279_v49 = vpop.f32.mrb[28].mxu1  ;;  %v1062_v50 = vpop.f32.mrb[29].mxu0 }
 0x120   : > { %v1562_v51 = vmul.f32 %v2279_v49, %v2613_v1  ;;  %v1496_v52 = vmul.f32 %v2613_v1, %v1062_v50  ;;  %v1318_v53 = vpop.f32.mrb[29].mxu1  ;;  %v2216_v54 = vpop.f32.mrb[30].mxu0 }
 0x121   : > { %v1633_v55 = vadd.f32 %v2619_v3, %v1498_v48  ;;  %v1560_v56 = vmul.f32 %v2613_v1, %v1318_v53  ;;  %v1499_v57 = vmul.f32 %v2216_v54, %v2613_v1  ;;  %v2280_v58 = vpop.f32.mrb[30].mxu1  ;;  %v1065_v59 = vpop.f32.mrb[31].mxu0 }
 0x122   : > { %v1697_v60 = vadd.f32 %v2619_v3, %v1562_v51  ;;  %v1631_v61 = vadd.f32 %v2619_v3, %v1496_v52  ;;  %v1563_v62 = vmul.f32 %v2280_v58, %v2613_v1  ;;  %v1497_v63 = vmul.f32 %v2613_v1, %v1065_v59  ;;  %v1321_v0 = vpop.f32.mrb[31].mxu1 }
 0x123   : > { %1761 = vst [vmem:[%s2625_s7 + $0xf0] sm:$0xff] %v1633_v55  ;;  %v1695_v2 = vadd.f32 %v2619_v3, %v1560_v56  ;;  %v1634_v4 = vadd.f32 %v2619_v3, %v1499_v57  ;;  %v1561_v5 = vmul.f32 %v2613_v1, %v1321_v0 }
 0x124   : > { %1825 = vst [vmem:[%s2625_s7 + $0x2f0] sm:$0xff] %v1697_v60  ;;  %1759 = vst [vmem:[%s2625_s7 + $0xe0] sm:$0xff] %v1631_v61  ;;  %v1698_v6 = vadd.f32 %v2619_v3, %v1563_v62  ;;  %v1632_v7 = vadd.f32 %v2619_v3, %v1497_v63 }
 0x125   : > { %1823 = vst [vmem:[%s2625_s7 + $0x2e0] sm:$0xff] %v1695_v2  ;;  %1762 = vst [vmem:[%s2625_s7 + $0xf8] sm:$0xff] %v1634_v4  ;;  %v1696_v8 = vadd.f32 %v2619_v3, %v1561_v5 }
 0x126   : > { %1826 = vst [vmem:[%s2625_s7 + $0x2f8] sm:$0xff] %v1698_v6  ;;  %1760 = vst [vmem:[%s2625_s7 + $0xe8] sm:$0xff] %v1632_v7  ;;  %v2219_v9 = vpop.f32.mrb[32].mxu0 }
 0x127   : > { %1824 = vst [vmem:[%s2625_s7 + $0x2e8] sm:$0xff] %v1696_v8  ;;  %v1502_v10 = vmul.f32 %v2219_v9, %v2613_v1  ;;  %v2283_v11 = vpop.f32.mrb[32].mxu1  ;;  %v1078_v12 = vpop.f32.mrb[33].mxu0 }
 0x128   : > { %v1566_v13 = vmul.f32 %v2283_v11, %v2613_v1  ;;  %v1500_v14 = vmul.f32 %v2613_v1, %v1078_v12  ;;  %v1334_v15 = vpop.f32.mrb[33].mxu1  ;;  %v2220_v16 = vpop.f32.mrb[34].mxu0 }
 0x129   : > { %v1637_v17 = vadd.f32 %v2619_v3, %v1502_v10  ;;  %v1564_v18 = vmul.f32 %v2613_v1, %v1334_v15  ;;  %v1503_v19 = vmul.f32 %v2220_v16, %v2613_v1  ;;  %v2284_v20 = vpop.f32.mrb[34].mxu1  ;;  %v1081_v21 = vpop.f32.mrb[35].mxu0 }
 0x12a   : > { %v1701_v22 = vadd.f32 %v2619_v3, %v1566_v13  ;;  %v1635_v23 = vadd.f32 %v2619_v3, %v1500_v14  ;;  %v1567_v24 = vmul.f32 %v2284_v20, %v2613_v1  ;;  %v1501_v25 = vmul.f32 %v2613_v1, %v1081_v21  ;;  %v1337_v26 = vpop.f32.mrb[35].mxu1 }
 0x12b   : > { %1765 = vst [vmem:[%s2625_s7 + $0x110] sm:$0xff] %v1637_v17  ;;  %v1699_v27 = vadd.f32 %v2619_v3, %v1564_v18  ;;  %v1638_v28 = vadd.f32 %v2619_v3, %v1503_v19  ;;  %v1565_v29 = vmul.f32 %v2613_v1, %v1337_v26 }
 0x12c   : > { %1829 = vst [vmem:[%s2625_s7 + $0x310] sm:$0xff] %v1701_v22  ;;  %1763 = vst [vmem:[%s2625_s7 + $0x100] sm:$0xff] %v1635_v23  ;;  %v1702_v30 = vadd.f32 %v2619_v3, %v1567_v24  ;;  %v1636_v31 = vadd.f32 %v2619_v3, %v1501_v25 }
 0x12d   : > { %1827 = vst [vmem:[%s2625_s7 + $0x300] sm:$0xff] %v1699_v27  ;;  %1766 = vst [vmem:[%s2625_s7 + $0x118] sm:$0xff] %v1638_v28  ;;  %v1700_v32 = vadd.f32 %v2619_v3, %v1565_v29 }
 0x12e   : > { %1830 = vst [vmem:[%s2625_s7 + $0x318] sm:$0xff] %v1702_v30  ;;  %1764 = vst [vmem:[%s2625_s7 + $0x108] sm:$0xff] %v1636_v31  ;;  %v2223_v33 = vpop.f32.mrb[36].mxu0 }
 0x12f   : > { %1828 = vst [vmem:[%s2625_s7 + $0x308] sm:$0xff] %v1700_v32  ;;  %v1506_v34 = vmul.f32 %v2223_v33, %v2613_v1  ;;  %v2287_v35 = vpop.f32.mrb[36].mxu1  ;;  %v1094_v36 = vpop.f32.mrb[37].mxu0 }
 0x130   : > { %v1570_v37 = vmul.f32 %v2287_v35, %v2613_v1  ;;  %v1504_v38 = vmul.f32 %v2613_v1, %v1094_v36  ;;  %v1350_v39 = vpop.f32.mrb[37].mxu1  ;;  %v2224_v40 = vpop.f32.mrb[38].mxu0 }
 0x131   : > { %v1641_v41 = vadd.f32 %v2619_v3, %v1506_v34  ;;  %v1568_v42 = vmul.f32 %v2613_v1, %v1350_v39  ;;  %v1507_v43 = vmul.f32 %v2224_v40, %v2613_v1  ;;  %v2288_v44 = vpop.f32.mrb[38].mxu1  ;;  %v1097_v45 = vpop.f32.mrb[39].mxu0 }
 0x132   : > { %v1705_v46 = vadd.f32 %v2619_v3, %v1570_v37  ;;  %v1639_v47 = vadd.f32 %v2619_v3, %v1504_v38  ;;  %v1571_v48 = vmul.f32 %v2288_v44, %v2613_v1  ;;  %v1505_v49 = vmul.f32 %v2613_v1, %v1097_v45  ;;  %v1353_v50 = vpop.f32.mrb[39].mxu1 }
 0x133   : > { %1769 = vst [vmem:[%s2625_s7 + $0x130] sm:$0xff] %v1641_v41  ;;  %v1703_v51 = vadd.f32 %v2619_v3, %v1568_v42  ;;  %v1642_v52 = vadd.f32 %v2619_v3, %v1507_v43  ;;  %v1569_v53 = vmul.f32 %v2613_v1, %v1353_v50 }
 0x134   : > { %1833 = vst [vmem:[%s2625_s7 + $0x330] sm:$0xff] %v1705_v46  ;;  %1767 = vst [vmem:[%s2625_s7 + $0x120] sm:$0xff] %v1639_v47  ;;  %v1706_v54 = vadd.f32 %v2619_v3, %v1571_v48  ;;  %v1640_v55 = vadd.f32 %v2619_v3, %v1505_v49 }
 0x135   : > { %1831 = vst [vmem:[%s2625_s7 + $0x320] sm:$0xff] %v1703_v51  ;;  %1770 = vst [vmem:[%s2625_s7 + $0x138] sm:$0xff] %v1642_v52  ;;  %v1704_v56 = vadd.f32 %v2619_v3, %v1569_v53 }
 0x136   : > { %1834 = vst [vmem:[%s2625_s7 + $0x338] sm:$0xff] %v1706_v54  ;;  %1768 = vst [vmem:[%s2625_s7 + $0x128] sm:$0xff] %v1640_v55  ;;  %v2227_v57 = vpop.f32.mrb[40].mxu0 }
 0x137   : > { %1832 = vst [vmem:[%s2625_s7 + $0x328] sm:$0xff] %v1704_v56  ;;  %v1510_v58 = vmul.f32 %v2227_v57, %v2613_v1  ;;  %v2291_v59 = vpop.f32.mrb[40].mxu1  ;;  %v1110_v60 = vpop.f32.mrb[41].mxu0 }
 0x138   : > { %v1574_v61 = vmul.f32 %v2291_v59, %v2613_v1  ;;  %v1508_v62 = vmul.f32 %v2613_v1, %v1110_v60  ;;  %v1366_v63 = vpop.f32.mrb[41].mxu1  ;;  %v2228_v0 = vpop.f32.mrb[42].mxu0 }
 0x139   : > { %v1645_v2 = vadd.f32 %v2619_v3, %v1510_v58  ;;  %v1572_v4 = vmul.f32 %v2613_v1, %v1366_v63  ;;  %v1511_v5 = vmul.f32 %v2228_v0, %v2613_v1  ;;  %v2292_v6 = vpop.f32.mrb[42].mxu1  ;;  %v1113_v7 = vpop.f32.mrb[43].mxu0 }
 0x13a   : > { %v1709_v8 = vadd.f32 %v2619_v3, %v1574_v61  ;;  %v1643_v9 = vadd.f32 %v2619_v3, %v1508_v62  ;;  %v1575_v10 = vmul.f32 %v2292_v6, %v2613_v1  ;;  %v1509_v11 = vmul.f32 %v2613_v1, %v1113_v7  ;;  %v1369_v12 = vpop.f32.mrb[43].mxu1 }
 0x13b   : > { %1773 = vst [vmem:[%s2625_s7 + $0x150] sm:$0xff] %v1645_v2  ;;  %v1707_v13 = vadd.f32 %v2619_v3, %v1572_v4  ;;  %v1646_v14 = vadd.f32 %v2619_v3, %v1511_v5  ;;  %v1573_v15 = vmul.f32 %v2613_v1, %v1369_v12 }
 0x13c   : > { %1837 = vst [vmem:[%s2625_s7 + $0x350] sm:$0xff] %v1709_v8  ;;  %1771 = vst [vmem:[%s2625_s7 + $0x140] sm:$0xff] %v1643_v9  ;;  %v1710_v16 = vadd.f32 %v2619_v3, %v1575_v10  ;;  %v1644_v17 = vadd.f32 %v2619_v3, %v1509_v11 }
 0x13d   : > { %1835 = vst [vmem:[%s2625_s7 + $0x340] sm:$0xff] %v1707_v13  ;;  %1774 = vst [vmem:[%s2625_s7 + $0x158] sm:$0xff] %v1646_v14  ;;  %v1708_v18 = vadd.f32 %v2619_v3, %v1573_v15 }
 0x13e   : > { %1838 = vst [vmem:[%s2625_s7 + $0x358] sm:$0xff] %v1710_v16  ;;  %1772 = vst [vmem:[%s2625_s7 + $0x148] sm:$0xff] %v1644_v17  ;;  %v2231_v19 = vpop.f32.mrb[44].mxu0 }
 0x13f   : > { %1836 = vst [vmem:[%s2625_s7 + $0x348] sm:$0xff] %v1708_v18  ;;  %v1514_v20 = vmul.f32 %v2231_v19, %v2613_v1  ;;  %v2295_v21 = vpop.f32.mrb[44].mxu1  ;;  %v1126_v22 = vpop.f32.mrb[45].mxu0 }
 0x140   : > { %v1578_v23 = vmul.f32 %v2295_v21, %v2613_v1  ;;  %v1512_v24 = vmul.f32 %v2613_v1, %v1126_v22  ;;  %v1382_v25 = vpop.f32.mrb[45].mxu1  ;;  %v2232_v26 = vpop.f32.mrb[46].mxu0 }
 0x141   : > { %v1649_v27 = vadd.f32 %v2619_v3, %v1514_v20  ;;  %v1576_v28 = vmul.f32 %v2613_v1, %v1382_v25  ;;  %v1515_v29 = vmul.f32 %v2232_v26, %v2613_v1  ;;  %v2296_v30 = vpop.f32.mrb[46].mxu1  ;;  %v1129_v31 = vpop.f32.mrb[47].mxu0 }
 0x142   : > { %v1713_v32 = vadd.f32 %v2619_v3, %v1578_v23  ;;  %v1647_v33 = vadd.f32 %v2619_v3, %v1512_v24  ;;  %v1579_v34 = vmul.f32 %v2296_v30, %v2613_v1  ;;  %v1513_v35 = vmul.f32 %v2613_v1, %v1129_v31  ;;  %v1385_v36 = vpop.f32.mrb[47].mxu1 }
 0x143   : > { %1777 = vst [vmem:[%s2625_s7 + $0x170] sm:$0xff] %v1649_v27  ;;  %v1711_v37 = vadd.f32 %v2619_v3, %v1576_v28  ;;  %v1650_v38 = vadd.f32 %v2619_v3, %v1515_v29  ;;  %v1577_v39 = vmul.f32 %v2613_v1, %v1385_v36 }
 0x144   : > { %1841 = vst [vmem:[%s2625_s7 + $0x370] sm:$0xff] %v1713_v32  ;;  %1775 = vst [vmem:[%s2625_s7 + $0x160] sm:$0xff] %v1647_v33  ;;  %v1714_v40 = vadd.f32 %v2619_v3, %v1579_v34  ;;  %v1648_v41 = vadd.f32 %v2619_v3, %v1513_v35 }
 0x145   : > { %1839 = vst [vmem:[%s2625_s7 + $0x360] sm:$0xff] %v1711_v37  ;;  %1778 = vst [vmem:[%s2625_s7 + $0x178] sm:$0xff] %v1650_v38  ;;  %v1712_v42 = vadd.f32 %v2619_v3, %v1577_v39 }
 0x146   : > { %1842 = vst [vmem:[%s2625_s7 + $0x378] sm:$0xff] %v1714_v40  ;;  %1776 = vst [vmem:[%s2625_s7 + $0x168] sm:$0xff] %v1648_v41  ;;  %v2235_v43 = vpop.f32.mrb[48].mxu0 }
 0x147   : > { %1840 = vst [vmem:[%s2625_s7 + $0x368] sm:$0xff] %v1712_v42  ;;  %v1518_v44 = vmul.f32 %v2235_v43, %v2613_v1  ;;  %v2299_v45 = vpop.f32.mrb[48].mxu1  ;;  %v1142_v46 = vpop.f32.mrb[49].mxu0 }
 0x148   : > { %v1582_v47 = vmul.f32 %v2299_v45, %v2613_v1  ;;  %v1516_v48 = vmul.f32 %v2613_v1, %v1142_v46  ;;  %v1398_v49 = vpop.f32.mrb[49].mxu1  ;;  %v2236_v50 = vpop.f32.mrb[50].mxu0 }
 0x149   : > { %v1653_v51 = vadd.f32 %v2619_v3, %v1518_v44  ;;  %v1580_v52 = vmul.f32 %v2613_v1, %v1398_v49  ;;  %v1519_v53 = vmul.f32 %v2236_v50, %v2613_v1  ;;  %v2300_v54 = vpop.f32.mrb[50].mxu1  ;;  %v1145_v55 = vpop.f32.mrb[51].mxu0 }
 0x14a   : > { %v1717_v56 = vadd.f32 %v2619_v3, %v1582_v47  ;;  %v1651_v57 = vadd.f32 %v2619_v3, %v1516_v48  ;;  %v1583_v58 = vmul.f32 %v2300_v54, %v2613_v1  ;;  %v1517_v59 = vmul.f32 %v2613_v1, %v1145_v55  ;;  %v1401_v60 = vpop.f32.mrb[51].mxu1 }
 0x14b   : > { %1781 = vst [vmem:[%s2625_s7 + $0x190] sm:$0xff] %v1653_v51  ;;  %v1715_v61 = vadd.f32 %v2619_v3, %v1580_v52  ;;  %v1654_v62 = vadd.f32 %v2619_v3, %v1519_v53  ;;  %v1581_v63 = vmul.f32 %v2613_v1, %v1401_v60 }
 0x14c   : > { %1845 = vst [vmem:[%s2625_s7 + $0x390] sm:$0xff] %v1717_v56  ;;  %1779 = vst [vmem:[%s2625_s7 + $0x180] sm:$0xff] %v1651_v57  ;;  %v1718_v0 = vadd.f32 %v2619_v3, %v1583_v58  ;;  %v1652_v2 = vadd.f32 %v2619_v3, %v1517_v59 }
 0x14d   : > { %1843 = vst [vmem:[%s2625_s7 + $0x380] sm:$0xff] %v1715_v61  ;;  %1782 = vst [vmem:[%s2625_s7 + $0x198] sm:$0xff] %v1654_v62  ;;  %v1716_v4 = vadd.f32 %v2619_v3, %v1581_v63 }
 0x14e   : > { %1846 = vst [vmem:[%s2625_s7 + $0x398] sm:$0xff] %v1718_v0  ;;  %1780 = vst [vmem:[%s2625_s7 + $0x188] sm:$0xff] %v1652_v2  ;;  %v2239_v5 = vpop.f32.mrb[52].mxu0 }
 0x14f   : > { %1844 = vst [vmem:[%s2625_s7 + $0x388] sm:$0xff] %v1716_v4  ;;  %v1522_v6 = vmul.f32 %v2239_v5, %v2613_v1  ;;  %v2303_v7 = vpop.f32.mrb[52].mxu1  ;;  %v1158_v8 = vpop.f32.mrb[53].mxu0 }
 0x150   : > { %v1586_v9 = vmul.f32 %v2303_v7, %v2613_v1  ;;  %v1520_v10 = vmul.f32 %v2613_v1, %v1158_v8  ;;  %v1414_v11 = vpop.f32.mrb[53].mxu1  ;;  %v2240_v12 = vpop.f32.mrb[54].mxu0 }
 0x151   : > { %v1657_v13 = vadd.f32 %v2619_v3, %v1522_v6  ;;  %v1584_v14 = vmul.f32 %v2613_v1, %v1414_v11  ;;  %v1523_v15 = vmul.f32 %v2240_v12, %v2613_v1  ;;  %v2304_v16 = vpop.f32.mrb[54].mxu1  ;;  %v1161_v17 = vpop.f32.mrb[55].mxu0 }
 0x152   : > { %v1721_v18 = vadd.f32 %v2619_v3, %v1586_v9  ;;  %v1655_v19 = vadd.f32 %v2619_v3, %v1520_v10  ;;  %v1587_v20 = vmul.f32 %v2304_v16, %v2613_v1  ;;  %v1521_v21 = vmul.f32 %v2613_v1, %v1161_v17  ;;  %v1417_v22 = vpop.f32.mrb[55].mxu1 }
 0x153   : > { %1785 = vst [vmem:[%s2625_s7 + $0x1b0] sm:$0xff] %v1657_v13  ;;  %v1719_v23 = vadd.f32 %v2619_v3, %v1584_v14  ;;  %v1658_v24 = vadd.f32 %v2619_v3, %v1523_v15  ;;  %v1585_v25 = vmul.f32 %v2613_v1, %v1417_v22 }
 0x154   : > { %1849 = vst [vmem:[%s2625_s7 + $0x3b0] sm:$0xff] %v1721_v18  ;;  %1783 = vst [vmem:[%s2625_s7 + $0x1a0] sm:$0xff] %v1655_v19  ;;  %v1722_v26 = vadd.f32 %v2619_v3, %v1587_v20  ;;  %v1656_v27 = vadd.f32 %v2619_v3, %v1521_v21 }
 0x155   : > { %1847 = vst [vmem:[%s2625_s7 + $0x3a0] sm:$0xff] %v1719_v23  ;;  %1786 = vst [vmem:[%s2625_s7 + $0x1b8] sm:$0xff] %v1658_v24  ;;  %v1720_v28 = vadd.f32 %v2619_v3, %v1585_v25 }
 0x156   : > { %1850 = vst [vmem:[%s2625_s7 + $0x3b8] sm:$0xff] %v1722_v26  ;;  %1784 = vst [vmem:[%s2625_s7 + $0x1a8] sm:$0xff] %v1656_v27  ;;  %v2243_v29 = vpop.f32.mrb[56].mxu0 }
 0x157   : > { %1848 = vst [vmem:[%s2625_s7 + $0x3a8] sm:$0xff] %v1720_v28  ;;  %v1526_v30 = vmul.f32 %v2243_v29, %v2613_v1  ;;  %v2307_v31 = vpop.f32.mrb[56].mxu1  ;;  %v1174_v32 = vpop.f32.mrb[57].mxu0 }
 0x158   : > { %v1590_v33 = vmul.f32 %v2307_v31, %v2613_v1  ;;  %v1524_v34 = vmul.f32 %v2613_v1, %v1174_v32  ;;  %v1430_v35 = vpop.f32.mrb[57].mxu1  ;;  %v2244_v36 = vpop.f32.mrb[58].mxu0 }
 0x159   : > { %v1661_v37 = vadd.f32 %v2619_v3, %v1526_v30  ;;  %v1588_v38 = vmul.f32 %v2613_v1, %v1430_v35  ;;  %v1527_v39 = vmul.f32 %v2244_v36, %v2613_v1  ;;  %v2308_v40 = vpop.f32.mrb[58].mxu1  ;;  %v1177_v41 = vpop.f32.mrb[59].mxu0 }
 0x15a   : > { %v1725_v42 = vadd.f32 %v2619_v3, %v1590_v33  ;;  %v1659_v43 = vadd.f32 %v2619_v3, %v1524_v34  ;;  %v1591_v44 = vmul.f32 %v2308_v40, %v2613_v1  ;;  %v1525_v45 = vmul.f32 %v2613_v1, %v1177_v41  ;;  %v1433_v46 = vpop.f32.mrb[59].mxu1 }
 0x15b   : > { %1789 = vst [vmem:[%s2625_s7 + $0x1d0] sm:$0xff] %v1661_v37  ;;  %v1723_v47 = vadd.f32 %v2619_v3, %v1588_v38  ;;  %v1662_v48 = vadd.f32 %v2619_v3, %v1527_v39  ;;  %v1589_v49 = vmul.f32 %v2613_v1, %v1433_v46 }
 0x15c   : > { %1853 = vst [vmem:[%s2625_s7 + $0x3d0] sm:$0xff] %v1725_v42  ;;  %1787 = vst [vmem:[%s2625_s7 + $0x1c0] sm:$0xff] %v1659_v43  ;;  %v1726_v50 = vadd.f32 %v2619_v3, %v1591_v44  ;;  %v1660_v51 = vadd.f32 %v2619_v3, %v1525_v45 }
 0x15d   : > { %1851 = vst [vmem:[%s2625_s7 + $0x3c0] sm:$0xff] %v1723_v47  ;;  %1790 = vst [vmem:[%s2625_s7 + $0x1d8] sm:$0xff] %v1662_v48  ;;  %v1724_v52 = vadd.f32 %v2619_v3, %v1589_v49 }
 0x15e   : > { %1854 = vst [vmem:[%s2625_s7 + $0x3d8] sm:$0xff] %v1726_v50  ;;  %1788 = vst [vmem:[%s2625_s7 + $0x1c8] sm:$0xff] %v1660_v51  ;;  %v2247_v53 = vpop.f32.mrb[60].mxu0 }
 0x15f   : > { %1852 = vst [vmem:[%s2625_s7 + $0x3c8] sm:$0xff] %v1724_v52  ;;  %v1530_v54 = vmul.f32 %v2247_v53, %v2613_v1  ;;  %v2311_v55 = vpop.f32.mrb[60].mxu1  ;;  %v1190_v56 = vpop.f32.mrb[61].mxu0 }
 0x160   : > { %v1594_v57 = vmul.f32 %v2311_v55, %v2613_v1  ;;  %v1528_v58 = vmul.f32 %v2613_v1, %v1190_v56  ;;  %v1446_v59 = vpop.f32.mrb[61].mxu1  ;;  %v2248_v60 = vpop.f32.mrb[62].mxu0 }
 0x161   : > { %v1665_v61 = vadd.f32 %v2619_v3, %v1530_v54  ;;  %v1592_v62 = vmul.f32 %v2613_v1, %v1446_v59  ;;  %v1531_v63 = vmul.f32 %v2248_v60, %v2613_v1  ;;  %v2312_v0 = vpop.f32.mrb[62].mxu1  ;;  %v1193_v2 = vpop.f32.mrb[63].mxu0 }
 0x162   : > { %v1729_v4 = vadd.f32 %v2619_v3, %v1594_v57  ;;  %v1663_v5 = vadd.f32 %v2619_v3, %v1528_v58  ;;  %v1595_v6 = vmul.f32 %v2312_v0, %v2613_v1  ;;  %v1529_v7 = vmul.f32 %v2613_v1, %v1193_v2  ;;  %v1449_v8 = vpop.f32.mrb[63].mxu1 }
 0x163   : > { %1793 = vst [vmem:[%s2625_s7 + $0x1f0] sm:$0xff] %v1665_v61  ;;  %v1727_v9 = vadd.f32 %v2619_v3, %v1592_v62  ;;  %v1666_v10 = vadd.f32 %v2619_v3, %v1531_v63  ;;  %v1593_v11 = vmul.f32 %v2613_v1, %v1449_v8 }
 0x164   : > { %1857 = vst [vmem:[%s2625_s7 + $0x3f0] sm:$0xff] %v1729_v4  ;;  %1791 = vst [vmem:[%s2625_s7 + $0x1e0] sm:$0xff] %v1663_v5  ;;  %v1730_v12 = vadd.f32 %v2619_v3, %v1595_v6  ;;  %v1664_v13 = vadd.f32 %v2619_v3, %v1529_v7 }
 0x165   : > { %1855 = vst [vmem:[%s2625_s7 + $0x3e0] sm:$0xff] %v1727_v9  ;;  %1794 = vst [vmem:[%s2625_s7 + $0x1f8] sm:$0xff] %v1666_v10  ;;  %v1728_v14 = vadd.f32 %v2619_v3, %v1593_v11 }
 0x166   : > { %1858 = vst [vmem:[%s2625_s7 + $0x3f8] sm:$0xff] %v1730_v12  ;;  %1792 = vst [vmem:[%s2625_s7 + $0x1e8] sm:$0xff] %v1664_v13 }
 0x167   : > { %1856 = vst [vmem:[%s2625_s7 + $0x3e8] sm:$0xff] %v1728_v14 }
 0x168 PF: > { %s14_s17 = sadd.s32 1, %s2426_s17   ;;  %s3024_s15 = smov %s2422_s16 }
 0x169   : > { %p11_p5 = scmp.ge.s32.totalorder %s14_s17, 4   ;;  %s3025_s16 = smov %s3027_s18 }
 0x16b   :  { %13 = sbr.rel (!%p11_p5) target bundleno = 2 (0x2), region = 75 }

// kernel: generator_forward.11
= control target key start
LH: loop header
LB: loop body
LE: loop exit
PB: predicated region body
PF: predicated region fallthrough
CT: control target
= control target key end

     0   :  { %s2450_s15 = smov 0   ;;  %s2452_s16 = smov 0   ;;  %s3016_s0 = inlined_call_operand.vmem [shape: bf16[8192,8], index: 0, kind: input, shape index: {}]   ;;  %s3017_s1 = inlined_call_operand.vmem [shape: bf16[8,128], index: 1, kind: input, shape index: {}]   ;;  %s3018_s2 = inlined_call_operand.vmem [shape: f32[1,128], index: 2, kind: input, shape index: {}]   ;;  %s3019_s3 = inlined_call_operand.vmem [shape: f32[1,128], index: 3, kind: input, shape index: {}]   ;;  %s3020_s4 = inlined_call_operand.vmem [shape: f32[8192,128], index: 4, kind: output, shape index: {}]  }
   0x1   :  { %s2454_s17 = smov 0  }
   0x2 LB: > { %s26_s18 = sadd.s32 1, %s2419_s16  ;;  %p1977_p0 = scmp.ge.s32.totalorder %s2423_s17, 1  ;;  %s2423_s17 = sphi %s2454_s17, %s14_s17   ;;  %s2419_s16 = sphi %s2452_s16, %s3022_s16   ;;  %s2415_s15 = sphi %s2450_s15, %s3021_s15  }
   0x3   : > { %p28_p1 = scmp.ge.s32.totalorder %s26_s18, 8  ;;  %p202_p2 = scmp.lt.s32.totalorder %s2423_s17, 9 }
   0x5   : > { %s3024_s18 = smov (%p28_p1, %s26_s18), 0  ;;  %p203_p3 = pnand %p1977_p0, %p202_p2 }
   0x6   : > { %v395_v0 = vld [vmem:[%s3017_s1] sm:$0xf] (!%p203_p3)  ;;  %vm909_vm0 = vcmask (!%p203_p3), 1043456   ;;  %s1978_s21 = sshll.u32 (!%p203_p3), %s2415_s15, 7  ;;  %vm716_vm1 = vcmask (!%p203_p3), 64512  }
   0x7   : > { %206 = sbr.rel (%p203_p3) target bundleno = 360 (0x168), region = 36  ;;  %2311 = vmatprep.subr.msk.bf16.mxu0 (!%p203_p3), %vm909_vm0, %v395_v0  ;;  %2312 = vmatprep.subr.msk.bf16.mxu1 (!%p203_p3), %vm909_vm0, %v395_v0  ;;  %v911_v1 = vsel (!%p203_p3), %vm909_vm0, %v395_v0, 0  ;;  %p242_p4 = scmp.lt.s32.totalorder (!%p203_p3), %s1978_s21, 1023 }
   0x8   : > { %2180 = vmatpush3.bf16.msra.mxu0 (!%p203_p3), %v911_v1  ;;  %2310 = vmatpush3.bf16.msra.mxu1 (!%p203_p3), %v911_v1 }
   0xe   : > { %s3026_s21 = smov (!%p242_p4, %s1978_s21), 1023 }
   0xf   : > { %s1979_s22 = sshll.u32 %s3026_s21, 2  ;;  %s1981_s28 = sshll.u32 %s3026_s21, 3 }
  0x10   : > { %s2477_s25 = scalar_lea.vmem %s3016_s0, %s1979_s22  ;;  %s2622_s7 = scalar_lea.vmem %s3020_s4, %s1981_s28 }
  0x11   : > { %v2337_v2 = vld [vmem:[%s2477_s25] sm:$0xff]   ;;  %v2339_v4 = vld [vmem:[%s2477_s25 + $0x8] sm:$0xff]   ;;  %v2341_v6 = vld [vmem:[%s2477_s25 + $0x10] sm:$0xff]  }
  0x12   : > { %v2338_v3 = vld [vmem:[%s2477_s25 + $0x100] sm:$0xff]   ;;  %2181 = vmatprep.mubr.msk.bf16.mxu0 %vm716_vm1, %v2337_v2  ;;  %v2340_v5 = vld [vmem:[%s2477_s25 + $0x108] sm:$0xff]   ;;  %v2342_v7 = vld [vmem:[%s2477_s25 + $0x110] sm:$0xff]  }
  0x13   : > { %2245 = vmatprep.mubr.msk.bf16.mxu1 %vm716_vm1, %v2338_v3  ;;  %2182 = vmatmul.mubr.msk.bf16.vlgmr.msra.gmra.mrb[0].mxu0 %vm716_vm1, %v2339_v4  ;;  %v2343_v8 = vld [vmem:[%s2477_s25 + $0x18] sm:$0xff]   ;;  %v2345_v10 = vld [vmem:[%s2477_s25 + $0x20] sm:$0xff]   ;;  %v2347_v12 = vld [vmem:[%s2477_s25 + $0x28] sm:$0xff]  }
  0x14   : > { %2246 = vmatmul.mubr.msk.bf16.vlgmr.msra.gmra.mrb[0].mxu1 %vm716_vm1, %v2340_v5  ;;  %2185 = vmatprep.mubr.msk.bf16.mxu0 %vm716_vm1, %v2341_v6  ;;  %v2344_v9 = vld [vmem:[%s2477_s25 + $0x118] sm:$0xff]   ;;  %v2346_v11 = vld [vmem:[%s2477_s25 + $0x120] sm:$0xff]   ;;  %v2348_v13 = vld [vmem:[%s2477_s25 + $0x128] sm:$0xff]  }
  0x15   : > { %2249 = vmatprep.mubr.msk.bf16.mxu1 %vm716_vm1, %v2342_v7  ;;  %v2349_v14 = vld [vmem:[%s2477_s25 + $0x30] sm:$0xff]   ;;  %v2351_v16 = vld [vmem:[%s2477_s25 + $0x38] sm:$0xff]   ;;  %v2353_v18 = vld [vmem:[%s2477_s25 + $0x40] sm:$0xff]  }
  0x16   : > { %v2350_v15 = vld [vmem:[%s2477_s25 + $0x130] sm:$0xff]   ;;  %v2352_v17 = vld [vmem:[%s2477_s25 + $0x138] sm:$0xff]   ;;  %v2354_v19 = vld [vmem:[%s2477_s25 + $0x140] sm:$0xff]  }
  0x17   : > { %v2355_v20 = vld [vmem:[%s2477_s25 + $0x48] sm:$0xff]   ;;  %v2357_v22 = vld [vmem:[%s2477_s25 + $0x50] sm:$0xff]   ;;  %v2359_v24 = vld [vmem:[%s2477_s25 + $0x58] sm:$0xff]  }
  0x18   : > { %v2356_v21 = vld [vmem:[%s2477_s25 + $0x148] sm:$0xff]   ;;  %v2358_v23 = vld [vmem:[%s2477_s25 + $0x150] sm:$0xff]   ;;  %v2360_v25 = vld [vmem:[%s2477_s25 + $0x158] sm:$0xff]  }
  0x19   : > { %v2361_v26 = vld [vmem:[%s2477_s25 + $0x60] sm:$0xff]   ;;  %v2363_v28 = vld [vmem:[%s2477_s25 + $0x68] sm:$0xff]   ;;  %v2365_v30 = vld [vmem:[%s2477_s25 + $0x70] sm:$0xff]  }
  0x1a   : > { %v2362_v27 = vld [vmem:[%s2477_s25 + $0x160] sm:$0xff]   ;;  %v2364_v29 = vld [vmem:[%s2477_s25 + $0x168] sm:$0xff]   ;;  %v2366_v31 = vld [vmem:[%s2477_s25 + $0x170] sm:$0xff]  }
  0x1b   : > { %2186 = vmatmul.mubr.msk.bf16.gmra.mrb[4].mxu0 %vm716_vm1, %v2343_v8  ;;  %v2367_v32 = vld [vmem:[%s2477_s25 + $0x78] sm:$0xff]   ;;  %v2369_v34 = vld [vmem:[%s2477_s25 + $0x80] sm:$0xff]   ;;  %v2371_v36 = vld [vmem:[%s2477_s25 + $0x88] sm:$0xff]  }
  0x1c   : > { %2250 = vmatmul.mubr.msk.bf16.gmra.mrb[4].mxu1 %vm716_vm1, %v2344_v9  ;;  %2189 = vmatprep.mubr.msk.bf16.mxu0 %vm716_vm1, %v2345_v10  ;;  %v2368_v33 = vld [vmem:[%s2477_s25 + $0x178] sm:$0xff]   ;;  %v2370_v35 = vld [vmem:[%s2477_s25 + $0x180] sm:$0xff]   ;;  %v2372_v37 = vld [vmem:[%s2477_s25 + $0x188] sm:$0xff]  }
  0x1d   : > { %2253 = vmatprep.mubr.msk.bf16.mxu1 %vm716_vm1, %v2346_v11  ;;  %v2373_v38 = vld [vmem:[%s2477_s25 + $0x90] sm:$0xff]   ;;  %v2375_v40 = vld [vmem:[%s2477_s25 + $0x98] sm:$0xff]   ;;  %v2377_v42 = vld [vmem:[%s2477_s25 + $0xa0] sm:$0xff]  }
  0x1e   : > { %v2374_v39 = vld [vmem:[%s2477_s25 + $0x190] sm:$0xff]   ;;  %v2376_v41 = vld [vmem:[%s2477_s25 + $0x198] sm:$0xff]   ;;  %v2378_v43 = vld [vmem:[%s2477_s25 + $0x1a0] sm:$0xff]  }
  0x1f   : > { %v2379_v44 = vld [vmem:[%s2477_s25 + $0xa8] sm:$0xff]   ;;  %v2381_v46 = vld [vmem:[%s2477_s25 + $0xb0] sm:$0xff]   ;;  %v2383_v48 = vld [vmem:[%s2477_s25 + $0xb8] sm:$0xff]  }
  0x20   : > { %v2380_v45 = vld [vmem:[%s2477_s25 + $0x1a8] sm:$0xff]   ;;  %v2382_v47 = vld [vmem:[%s2477_s25 + $0x1b0] sm:$0xff]   ;;  %v2384_v49 = vld [vmem:[%s2477_s25 + $0x1b8] sm:$0xff]  }
  0x21   : > { %v2385_v50 = vld [vmem:[%s2477_s25 + $0xc0] sm:$0xff]   ;;  %v2387_v52 = vld [vmem:[%s2477_s25 + $0xc8] sm:$0xff]   ;;  %v2389_v54 = vld [vmem:[%s2477_s25 + $0xd0] sm:$0xff]  }
  0x22   : > { %v2386_v51 = vld [vmem:[%s2477_s25 + $0x1c0] sm:$0xff]   ;;  %v2388_v53 = vld [vmem:[%s2477_s25 + $0x1c8] sm:$0xff]   ;;  %v2390_v55 = vld [vmem:[%s2477_s25 + $0x1d0] sm:$0xff]  }
  0x23   : > { %2190 = vmatmul.mubr.msk.bf16.gmra.mrb[8].mxu0 %vm716_vm1, %v2347_v12  ;;  %v2391_v56 = vld [vmem:[%s2477_s25 + $0xd8] sm:$0xff]   ;;  %v2393_v58 = vld [vmem:[%s2477_s25 + $0xe0] sm:$0xff]   ;;  %v2395_v60 = vld [vmem:[%s2477_s25 + $0xe8] sm:$0xff]  }
  0x24   : > { %2254 = vmatmul.mubr.msk.bf16.gmra.mrb[8].mxu1 %vm716_vm1, %v2348_v13  ;;  %2193 = vmatprep.mubr.msk.bf16.mxu0 %vm716_vm1, %v2349_v14  ;;  %v2392_v57 = vld [vmem:[%s2477_s25 + $0x1d8] sm:$0xff]   ;;  %v2394_v59 = vld [vmem:[%s2477_s25 + $0x1e0] sm:$0xff]   ;;  %v2396_v61 = vld [vmem:[%s2477_s25 + $0x1e8] sm:$0xff]  }
  0x25   : > { %2257 = vmatprep.mubr.msk.bf16.mxu1 %vm716_vm1, %v2350_v15  ;;  %v2397_v62 = vld [vmem:[%s2477_s25 + $0xf0] sm:$0xff]   ;;  %v2399_v0 = vld [vmem:[%s2477_s25 + $0xf8] sm:$0xff]   ;;  %v2610_v2 = vld [vmem:[%s3018_s2] ss:$0 sm:$0xff] }
  0x26   : > { %v2398_v63 = vld [vmem:[%s2477_s25 + $0x1f0] sm:$0xff]   ;;  %v2400_v1 = vld [vmem:[%s2477_s25 + $0x1f8] sm:$0xff]   ;;  %v2616_v4 = vld [vmem:[%s3019_s3] ss:$0 sm:$0xff] }
  0x2b   : > { %2194 = vmatmul.mubr.msk.bf16.gmra.mrb[12].mxu0 %vm716_vm1, %v2351_v16 }
  0x2c   : > { %2258 = vmatmul.mubr.msk.bf16.gmra.mrb[12].mxu1 %vm716_vm1, %v2352_v17  ;;  %2197 = vmatprep.mubr.msk.bf16.mxu0 %vm716_vm1, %v2353_v18 }
  0x2d   : > { %2261 = vmatprep.mubr.msk.bf16.mxu1 %vm716_vm1, %v2354_v19 }
  0x33   : > { %2198 = vmatmul.mubr.msk.bf16.gmra.mrb[16].mxu0 %vm716_vm1, %v2355_v20 }
  0x34   : > { %2262 = vmatmul.mubr.msk.bf16.gmra.mrb[16].mxu1 %vm716_vm1, %v2356_v21  ;;  %2201 = vmatprep.mubr.msk.bf16.mxu0 %vm716_vm1, %v2357_v22 }
  0x35   : > { %2265 = vmatprep.mubr.msk.bf16.mxu1 %vm716_vm1, %v2358_v23 }
  0x3b   : > { %2202 = vmatmul.mubr.msk.bf16.gmra.mrb[20].mxu0 %vm716_vm1, %v2359_v24 }
  0x3c   : > { %2266 = vmatmul.mubr.msk.bf16.gmra.mrb[20].mxu1 %vm716_vm1, %v2360_v25  ;;  %2205 = vmatprep.mubr.msk.bf16.mxu0 %vm716_vm1, %v2361_v26 }
  0x3d   : > { %2269 = vmatprep.mubr.msk.bf16.mxu1 %vm716_vm1, %v2362_v27 }
  0x43   : > { %2206 = vmatmul.mubr.msk.bf16.gmra.mrb[24].mxu0 %vm716_vm1, %v2363_v28 }
  0x44   : > { %2270 = vmatmul.mubr.msk.bf16.gmra.mrb[24].mxu1 %vm716_vm1, %v2364_v29  ;;  %2209 = vmatprep.mubr.msk.bf16.mxu0 %vm716_vm1, %v2365_v30 }
  0x45   : > { %2273 = vmatprep.mubr.msk.bf16.mxu1 %vm716_vm1, %v2366_v31 }
  0x4b   : > { %2210 = vmatmul.mubr.msk.bf16.gmra.mrb[28].mxu0 %vm716_vm1, %v2367_v32 }
  0x4c   : > { %2274 = vmatmul.mubr.msk.bf16.gmra.mrb[28].mxu1 %vm716_vm1, %v2368_v33  ;;  %2213 = vmatprep.mubr.msk.bf16.mxu0 %vm716_vm1, %v2369_v34 }
  0x4d   : > { %2277 = vmatprep.mubr.msk.bf16.mxu1 %vm716_vm1, %v2370_v35 }
  0x53   : > { %2214 = vmatmul.mubr.msk.bf16.gmra.mrb[32].mxu0 %vm716_vm1, %v2371_v36 }
  0x54   : > { %2278 = vmatmul.mubr.msk.bf16.gmra.mrb[32].mxu1 %vm716_vm1, %v2372_v37  ;;  %2217 = vmatprep.mubr.msk.bf16.mxu0 %vm716_vm1, %v2373_v38 }
  0x55   : > { %2281 = vmatprep.mubr.msk.bf16.mxu1 %vm716_vm1, %v2374_v39 }
  0x5b   : > { %2218 = vmatmul.mubr.msk.bf16.gmra.mrb[36].mxu0 %vm716_vm1, %v2375_v40 }
  0x5c   : > { %2282 = vmatmul.mubr.msk.bf16.gmra.mrb[36].mxu1 %vm716_vm1, %v2376_v41  ;;  %2221 = vmatprep.mubr.msk.bf16.mxu0 %vm716_vm1, %v2377_v42 }
  0x5d   : > { %2285 = vmatprep.mubr.msk.bf16.mxu1 %vm716_vm1, %v2378_v43 }
  0x63   : > { %2222 = vmatmul.mubr.msk.bf16.gmra.mrb[40].mxu0 %vm716_vm1, %v2379_v44 }
  0x64   : > { %2286 = vmatmul.mubr.msk.bf16.gmra.mrb[40].mxu1 %vm716_vm1, %v2380_v45  ;;  %2225 = vmatprep.mubr.msk.bf16.mxu0 %vm716_vm1, %v2381_v46 }
  0x65   : > { %2289 = vmatprep.mubr.msk.bf16.mxu1 %vm716_vm1, %v2382_v47 }
  0x6b   : > { %2226 = vmatmul.mubr.msk.bf16.gmra.mrb[44].mxu0 %vm716_vm1, %v2383_v48 }
  0x6c   : > { %2290 = vmatmul.mubr.msk.bf16.gmra.mrb[44].mxu1 %vm716_vm1, %v2384_v49  ;;  %2229 = vmatprep.mubr.msk.bf16.mxu0 %vm716_vm1, %v2385_v50 }
  0x6d   : > { %2293 = vmatprep.mubr.msk.bf16.mxu1 %vm716_vm1, %v2386_v51 }
  0x73   : > { %2230 = vmatmul.mubr.msk.bf16.gmra.mrb[48].mxu0 %vm716_vm1, %v2387_v52 }
  0x74   : > { %2294 = vmatmul.mubr.msk.bf16.gmra.mrb[48].mxu1 %vm716_vm1, %v2388_v53  ;;  %2233 = vmatprep.mubr.msk.bf16.mxu0 %vm716_vm1, %v2389_v54 }
  0x75   : > { %2297 = vmatprep.mubr.msk.bf16.mxu1 %vm716_vm1, %v2390_v55 }
  0x7b   : > { %2234 = vmatmul.mubr.msk.bf16.gmra.mrb[52].mxu0 %vm716_vm1, %v2391_v56 }
  0x7c   : > { %2298 = vmatmul.mubr.msk.bf16.gmra.mrb[52].mxu1 %vm716_vm1, %v2392_v57  ;;  %2237 = vmatprep.mubr.msk.bf16.mxu0 %vm716_vm1, %v2393_v58 }
  0x7d   : > { %2301 = vmatprep.mubr.msk.bf16.mxu1 %vm716_vm1, %v2394_v59 }
  0x83   : > { %2238 = vmatmul.mubr.msk.bf16.gmra.mrb[56].mxu0 %vm716_vm1, %v2395_v60 }
  0x84   : > { %2302 = vmatmul.mubr.msk.bf16.gmra.mrb[56].mxu1 %vm716_vm1, %v2396_v61  ;;  %2241 = vmatprep.mubr.msk.bf16.mxu0 %vm716_vm1, %v2397_v62 }
  0x85   : > { %2305 = vmatprep.mubr.msk.bf16.mxu1 %vm716_vm1, %v2398_v63 }
  0x8b   : > { %2242 = vmatmul.mubr.msk.bf16.gmra.mrb[60].mxu0 %vm716_vm1, %v2399_v0 }
  0x8c   : > { %2306 = vmatmul.mubr.msk.bf16.gmra.mrb[60].mxu1 %vm716_vm1, %v2400_v1 }
  0xe6   : > { %v2183_v3 = vpop.f32.mrb[0].mxu0 }
  0xe7   : > { %v1467_v5 = vmul.f32 %v2183_v3, %v2610_v2  ;;  %v2247_v6 = vpop.f32.mrb[0].mxu1  ;;  %v947_v7 = vpop.f32.mrb[1].mxu0 }
  0xe8   : > { %v1531_v8 = vmul.f32 %v2247_v6, %v2610_v2  ;;  %v1465_v9 = vmul.f32 %v2610_v2, %v947_v7  ;;  %v1203_v10 = vpop.f32.mrb[1].mxu1  ;;  %v2184_v11 = vpop.f32.mrb[2].mxu0 }
  0xe9   : > { %v1602_v12 = vadd.f32 %v2616_v4, %v1467_v5  ;;  %v1529_v13 = vmul.f32 %v2610_v2, %v1203_v10  ;;  %v1468_v14 = vmul.f32 %v2184_v11, %v2610_v2  ;;  %v2248_v15 = vpop.f32.mrb[2].mxu1  ;;  %v950_v16 = vpop.f32.mrb[3].mxu0 }
  0xea   : > { %v1666_v17 = vadd.f32 %v2616_v4, %v1531_v8  ;;  %v1600_v18 = vadd.f32 %v2616_v4, %v1465_v9  ;;  %v1532_v19 = vmul.f32 %v2248_v15, %v2610_v2  ;;  %v1466_v20 = vmul.f32 %v2610_v2, %v950_v16  ;;  %v1206_v21 = vpop.f32.mrb[3].mxu1 }
  0xeb   : > { %1730 = vst [vmem:[%s2622_s7 + $0x10] sm:$0xff] %v1602_v12  ;;  %v1664_v22 = vadd.f32 %v2616_v4, %v1529_v13  ;;  %v1603_v23 = vadd.f32 %v2616_v4, %v1468_v14  ;;  %v1530_v24 = vmul.f32 %v2610_v2, %v1206_v21 }
  0xec   : > { %1794 = vst [vmem:[%s2622_s7 + $0x210] sm:$0xff] %v1666_v17  ;;  %1728 = vst [vmem:[%s2622_s7] sm:$0xff] %v1600_v18  ;;  %v1667_v25 = vadd.f32 %v2616_v4, %v1532_v19  ;;  %v1601_v26 = vadd.f32 %v2616_v4, %v1466_v20 }
  0xed   : > { %1792 = vst [vmem:[%s2622_s7 + $0x200] sm:$0xff] %v1664_v22  ;;  %1731 = vst [vmem:[%s2622_s7 + $0x18] sm:$0xff] %v1603_v23  ;;  %v1665_v27 = vadd.f32 %v2616_v4, %v1530_v24 }
  0xee   : > { %1795 = vst [vmem:[%s2622_s7 + $0x218] sm:$0xff] %v1667_v25  ;;  %1729 = vst [vmem:[%s2622_s7 + $0x8] sm:$0xff] %v1601_v26  ;;  %v2187_v28 = vpop.f32.mrb[4].mxu0 }
  0xef   : > { %1793 = vst [vmem:[%s2622_s7 + $0x208] sm:$0xff] %v1665_v27  ;;  %v1471_v29 = vmul.f32 %v2187_v28, %v2610_v2  ;;  %v2251_v30 = vpop.f32.mrb[4].mxu1  ;;  %v963_v31 = vpop.f32.mrb[5].mxu0 }
  0xf0   : > { %v1535_v32 = vmul.f32 %v2251_v30, %v2610_v2  ;;  %v1469_v33 = vmul.f32 %v2610_v2, %v963_v31  ;;  %v1219_v34 = vpop.f32.mrb[5].mxu1  ;;  %v2188_v35 = vpop.f32.mrb[6].mxu0 }
  0xf1   : > { %v1606_v36 = vadd.f32 %v2616_v4, %v1471_v29  ;;  %v1533_v37 = vmul.f32 %v2610_v2, %v1219_v34  ;;  %v1472_v38 = vmul.f32 %v2188_v35, %v2610_v2  ;;  %v2252_v39 = vpop.f32.mrb[6].mxu1  ;;  %v966_v40 = vpop.f32.mrb[7].mxu0 }
  0xf2   : > { %v1670_v41 = vadd.f32 %v2616_v4, %v1535_v32  ;;  %v1604_v42 = vadd.f32 %v2616_v4, %v1469_v33  ;;  %v1536_v43 = vmul.f32 %v2252_v39, %v2610_v2  ;;  %v1470_v44 = vmul.f32 %v2610_v2, %v966_v40  ;;  %v1222_v45 = vpop.f32.mrb[7].mxu1 }
  0xf3   : > { %1734 = vst [vmem:[%s2622_s7 + $0x30] sm:$0xff] %v1606_v36  ;;  %v1668_v46 = vadd.f32 %v2616_v4, %v1533_v37  ;;  %v1607_v47 = vadd.f32 %v2616_v4, %v1472_v38  ;;  %v1534_v48 = vmul.f32 %v2610_v2, %v1222_v45 }
  0xf4   : > { %1798 = vst [vmem:[%s2622_s7 + $0x230] sm:$0xff] %v1670_v41  ;;  %1732 = vst [vmem:[%s2622_s7 + $0x20] sm:$0xff] %v1604_v42  ;;  %v1671_v49 = vadd.f32 %v2616_v4, %v1536_v43  ;;  %v1605_v50 = vadd.f32 %v2616_v4, %v1470_v44 }
  0xf5   : > { %1796 = vst [vmem:[%s2622_s7 + $0x220] sm:$0xff] %v1668_v46  ;;  %1735 = vst [vmem:[%s2622_s7 + $0x38] sm:$0xff] %v1607_v47  ;;  %v1669_v51 = vadd.f32 %v2616_v4, %v1534_v48 }
  0xf6   : > { %1799 = vst [vmem:[%s2622_s7 + $0x238] sm:$0xff] %v1671_v49  ;;  %1733 = vst [vmem:[%s2622_s7 + $0x28] sm:$0xff] %v1605_v50  ;;  %v2191_v52 = vpop.f32.mrb[8].mxu0 }
  0xf7   : > { %1797 = vst [vmem:[%s2622_s7 + $0x228] sm:$0xff] %v1669_v51  ;;  %v1475_v53 = vmul.f32 %v2191_v52, %v2610_v2  ;;  %v2255_v54 = vpop.f32.mrb[8].mxu1  ;;  %v979_v55 = vpop.f32.mrb[9].mxu0 }
  0xf8   : > { %v1539_v56 = vmul.f32 %v2255_v54, %v2610_v2  ;;  %v1473_v57 = vmul.f32 %v2610_v2, %v979_v55  ;;  %v1235_v58 = vpop.f32.mrb[9].mxu1  ;;  %v2192_v59 = vpop.f32.mrb[10].mxu0 }
  0xf9   : > { %v1610_v60 = vadd.f32 %v2616_v4, %v1475_v53  ;;  %v1537_v61 = vmul.f32 %v2610_v2, %v1235_v58  ;;  %v1476_v62 = vmul.f32 %v2192_v59, %v2610_v2  ;;  %v2256_v63 = vpop.f32.mrb[10].mxu1  ;;  %v982_v0 = vpop.f32.mrb[11].mxu0 }
  0xfa   : > { %v1674_v1 = vadd.f32 %v2616_v4, %v1539_v56  ;;  %v1608_v3 = vadd.f32 %v2616_v4, %v1473_v57  ;;  %v1540_v5 = vmul.f32 %v2256_v63, %v2610_v2  ;;  %v1474_v6 = vmul.f32 %v2610_v2, %v982_v0  ;;  %v1238_v7 = vpop.f32.mrb[11].mxu1 }
  0xfb   : > { %1738 = vst [vmem:[%s2622_s7 + $0x50] sm:$0xff] %v1610_v60  ;;  %v1672_v8 = vadd.f32 %v2616_v4, %v1537_v61  ;;  %v1611_v9 = vadd.f32 %v2616_v4, %v1476_v62  ;;  %v1538_v10 = vmul.f32 %v2610_v2, %v1238_v7 }
  0xfc   : > { %1802 = vst [vmem:[%s2622_s7 + $0x250] sm:$0xff] %v1674_v1  ;;  %1736 = vst [vmem:[%s2622_s7 + $0x40] sm:$0xff] %v1608_v3  ;;  %v1675_v11 = vadd.f32 %v2616_v4, %v1540_v5  ;;  %v1609_v12 = vadd.f32 %v2616_v4, %v1474_v6 }
  0xfd   : > { %1800 = vst [vmem:[%s2622_s7 + $0x240] sm:$0xff] %v1672_v8  ;;  %1739 = vst [vmem:[%s2622_s7 + $0x58] sm:$0xff] %v1611_v9  ;;  %v1673_v13 = vadd.f32 %v2616_v4, %v1538_v10 }
  0xfe   : > { %1803 = vst [vmem:[%s2622_s7 + $0x258] sm:$0xff] %v1675_v11  ;;  %1737 = vst [vmem:[%s2622_s7 + $0x48] sm:$0xff] %v1609_v12  ;;  %v2195_v14 = vpop.f32.mrb[12].mxu0 }
  0xff   : > { %1801 = vst [vmem:[%s2622_s7 + $0x248] sm:$0xff] %v1673_v13  ;;  %v1479_v15 = vmul.f32 %v2195_v14, %v2610_v2  ;;  %v2259_v16 = vpop.f32.mrb[12].mxu1  ;;  %v995_v17 = vpop.f32.mrb[13].mxu0 }
 0x100   : > { %v1543_v18 = vmul.f32 %v2259_v16, %v2610_v2  ;;  %v1477_v19 = vmul.f32 %v2610_v2, %v995_v17  ;;  %v1251_v20 = vpop.f32.mrb[13].mxu1  ;;  %v2196_v21 = vpop.f32.mrb[14].mxu0 }
 0x101   : > { %v1614_v22 = vadd.f32 %v2616_v4, %v1479_v15  ;;  %v1541_v23 = vmul.f32 %v2610_v2, %v1251_v20  ;;  %v1480_v24 = vmul.f32 %v2196_v21, %v2610_v2  ;;  %v2260_v25 = vpop.f32.mrb[14].mxu1  ;;  %v998_v26 = vpop.f32.mrb[15].mxu0 }
 0x102   : > { %v1678_v27 = vadd.f32 %v2616_v4, %v1543_v18  ;;  %v1612_v28 = vadd.f32 %v2616_v4, %v1477_v19  ;;  %v1544_v29 = vmul.f32 %v2260_v25, %v2610_v2  ;;  %v1478_v30 = vmul.f32 %v2610_v2, %v998_v26  ;;  %v1254_v31 = vpop.f32.mrb[15].mxu1 }
 0x103   : > { %1742 = vst [vmem:[%s2622_s7 + $0x70] sm:$0xff] %v1614_v22  ;;  %v1676_v32 = vadd.f32 %v2616_v4, %v1541_v23  ;;  %v1615_v33 = vadd.f32 %v2616_v4, %v1480_v24  ;;  %v1542_v34 = vmul.f32 %v2610_v2, %v1254_v31 }
 0x104   : > { %1806 = vst [vmem:[%s2622_s7 + $0x270] sm:$0xff] %v1678_v27  ;;  %1740 = vst [vmem:[%s2622_s7 + $0x60] sm:$0xff] %v1612_v28  ;;  %v1679_v35 = vadd.f32 %v2616_v4, %v1544_v29  ;;  %v1613_v36 = vadd.f32 %v2616_v4, %v1478_v30 }
 0x105   : > { %1804 = vst [vmem:[%s2622_s7 + $0x260] sm:$0xff] %v1676_v32  ;;  %1743 = vst [vmem:[%s2622_s7 + $0x78] sm:$0xff] %v1615_v33  ;;  %v1677_v37 = vadd.f32 %v2616_v4, %v1542_v34 }
 0x106   : > { %1807 = vst [vmem:[%s2622_s7 + $0x278] sm:$0xff] %v1679_v35  ;;  %1741 = vst [vmem:[%s2622_s7 + $0x68] sm:$0xff] %v1613_v36  ;;  %v2199_v38 = vpop.f32.mrb[16].mxu0 }
 0x107   : > { %1805 = vst [vmem:[%s2622_s7 + $0x268] sm:$0xff] %v1677_v37  ;;  %v1483_v39 = vmul.f32 %v2199_v38, %v2610_v2  ;;  %v2263_v40 = vpop.f32.mrb[16].mxu1  ;;  %v1011_v41 = vpop.f32.mrb[17].mxu0 }
 0x108   : > { %v1547_v42 = vmul.f32 %v2263_v40, %v2610_v2  ;;  %v1481_v43 = vmul.f32 %v2610_v2, %v1011_v41  ;;  %v1267_v44 = vpop.f32.mrb[17].mxu1  ;;  %v2200_v45 = vpop.f32.mrb[18].mxu0 }
 0x109   : > { %v1618_v46 = vadd.f32 %v2616_v4, %v1483_v39  ;;  %v1545_v47 = vmul.f32 %v2610_v2, %v1267_v44  ;;  %v1484_v48 = vmul.f32 %v2200_v45, %v2610_v2  ;;  %v2264_v49 = vpop.f32.mrb[18].mxu1  ;;  %v1014_v50 = vpop.f32.mrb[19].mxu0 }
 0x10a   : > { %v1682_v51 = vadd.f32 %v2616_v4, %v1547_v42  ;;  %v1616_v52 = vadd.f32 %v2616_v4, %v1481_v43  ;;  %v1548_v53 = vmul.f32 %v2264_v49, %v2610_v2  ;;  %v1482_v54 = vmul.f32 %v2610_v2, %v1014_v50  ;;  %v1270_v55 = vpop.f32.mrb[19].mxu1 }
 0x10b   : > { %1746 = vst [vmem:[%s2622_s7 + $0x90] sm:$0xff] %v1618_v46  ;;  %v1680_v56 = vadd.f32 %v2616_v4, %v1545_v47  ;;  %v1619_v57 = vadd.f32 %v2616_v4, %v1484_v48  ;;  %v1546_v58 = vmul.f32 %v2610_v2, %v1270_v55 }
 0x10c   : > { %1810 = vst [vmem:[%s2622_s7 + $0x290] sm:$0xff] %v1682_v51  ;;  %1744 = vst [vmem:[%s2622_s7 + $0x80] sm:$0xff] %v1616_v52  ;;  %v1683_v59 = vadd.f32 %v2616_v4, %v1548_v53  ;;  %v1617_v60 = vadd.f32 %v2616_v4, %v1482_v54 }
 0x10d   : > { %1808 = vst [vmem:[%s2622_s7 + $0x280] sm:$0xff] %v1680_v56  ;;  %1747 = vst [vmem:[%s2622_s7 + $0x98] sm:$0xff] %v1619_v57  ;;  %v1681_v61 = vadd.f32 %v2616_v4, %v1546_v58 }
 0x10e   : > { %1811 = vst [vmem:[%s2622_s7 + $0x298] sm:$0xff] %v1683_v59  ;;  %1745 = vst [vmem:[%s2622_s7 + $0x88] sm:$0xff] %v1617_v60  ;;  %v2203_v62 = vpop.f32.mrb[20].mxu0 }
 0x10f   : > { %1809 = vst [vmem:[%s2622_s7 + $0x288] sm:$0xff] %v1681_v61  ;;  %v1487_v63 = vmul.f32 %v2203_v62, %v2610_v2  ;;  %v2267_v0 = vpop.f32.mrb[20].mxu1  ;;  %v1027_v1 = vpop.f32.mrb[21].mxu0 }
 0x110   : > { %v1551_v3 = vmul.f32 %v2267_v0, %v2610_v2  ;;  %v1485_v5 = vmul.f32 %v2610_v2, %v1027_v1  ;;  %v1283_v6 = vpop.f32.mrb[21].mxu1  ;;  %v2204_v7 = vpop.f32.mrb[22].mxu0 }
 0x111   : > { %v1622_v8 = vadd.f32 %v2616_v4, %v1487_v63  ;;  %v1549_v9 = vmul.f32 %v2610_v2, %v1283_v6  ;;  %v1488_v10 = vmul.f32 %v2204_v7, %v2610_v2  ;;  %v2268_v11 = vpop.f32.mrb[22].mxu1  ;;  %v1030_v12 = vpop.f32.mrb[23].mxu0 }
 0x112   : > { %v1686_v13 = vadd.f32 %v2616_v4, %v1551_v3  ;;  %v1620_v14 = vadd.f32 %v2616_v4, %v1485_v5  ;;  %v1552_v15 = vmul.f32 %v2268_v11, %v2610_v2  ;;  %v1486_v16 = vmul.f32 %v2610_v2, %v1030_v12  ;;  %v1286_v17 = vpop.f32.mrb[23].mxu1 }
 0x113   : > { %1750 = vst [vmem:[%s2622_s7 + $0xb0] sm:$0xff] %v1622_v8  ;;  %v1684_v18 = vadd.f32 %v2616_v4, %v1549_v9  ;;  %v1623_v19 = vadd.f32 %v2616_v4, %v1488_v10  ;;  %v1550_v20 = vmul.f32 %v2610_v2, %v1286_v17 }
 0x114   : > { %1814 = vst [vmem:[%s2622_s7 + $0x2b0] sm:$0xff] %v1686_v13  ;;  %1748 = vst [vmem:[%s2622_s7 + $0xa0] sm:$0xff] %v1620_v14  ;;  %v1687_v21 = vadd.f32 %v2616_v4, %v1552_v15  ;;  %v1621_v22 = vadd.f32 %v2616_v4, %v1486_v16 }
 0x115   : > { %1812 = vst [vmem:[%s2622_s7 + $0x2a0] sm:$0xff] %v1684_v18  ;;  %1751 = vst [vmem:[%s2622_s7 + $0xb8] sm:$0xff] %v1623_v19  ;;  %v1685_v23 = vadd.f32 %v2616_v4, %v1550_v20 }
 0x116   : > { %1815 = vst [vmem:[%s2622_s7 + $0x2b8] sm:$0xff] %v1687_v21  ;;  %1749 = vst [vmem:[%s2622_s7 + $0xa8] sm:$0xff] %v1621_v22  ;;  %v2207_v24 = vpop.f32.mrb[24].mxu0 }
 0x117   : > { %1813 = vst [vmem:[%s2622_s7 + $0x2a8] sm:$0xff] %v1685_v23  ;;  %v1491_v25 = vmul.f32 %v2207_v24, %v2610_v2  ;;  %v2271_v26 = vpop.f32.mrb[24].mxu1  ;;  %v1043_v27 = vpop.f32.mrb[25].mxu0 }
 0x118   : > { %v1555_v28 = vmul.f32 %v2271_v26, %v2610_v2  ;;  %v1489_v29 = vmul.f32 %v2610_v2, %v1043_v27  ;;  %v1299_v30 = vpop.f32.mrb[25].mxu1  ;;  %v2208_v31 = vpop.f32.mrb[26].mxu0 }
 0x119   : > { %v1626_v32 = vadd.f32 %v2616_v4, %v1491_v25  ;;  %v1553_v33 = vmul.f32 %v2610_v2, %v1299_v30  ;;  %v1492_v34 = vmul.f32 %v2208_v31, %v2610_v2  ;;  %v2272_v35 = vpop.f32.mrb[26].mxu1  ;;  %v1046_v36 = vpop.f32.mrb[27].mxu0 }
 0x11a   : > { %v1690_v37 = vadd.f32 %v2616_v4, %v1555_v28  ;;  %v1624_v38 = vadd.f32 %v2616_v4, %v1489_v29  ;;  %v1556_v39 = vmul.f32 %v2272_v35, %v2610_v2  ;;  %v1490_v40 = vmul.f32 %v2610_v2, %v1046_v36  ;;  %v1302_v41 = vpop.f32.mrb[27].mxu1 }
 0x11b   : > { %1754 = vst [vmem:[%s2622_s7 + $0xd0] sm:$0xff] %v1626_v32  ;;  %v1688_v42 = vadd.f32 %v2616_v4, %v1553_v33  ;;  %v1627_v43 = vadd.f32 %v2616_v4, %v1492_v34  ;;  %v1554_v44 = vmul.f32 %v2610_v2, %v1302_v41 }
 0x11c   : > { %1818 = vst [vmem:[%s2622_s7 + $0x2d0] sm:$0xff] %v1690_v37  ;;  %1752 = vst [vmem:[%s2622_s7 + $0xc0] sm:$0xff] %v1624_v38  ;;  %v1691_v45 = vadd.f32 %v2616_v4, %v1556_v39  ;;  %v1625_v46 = vadd.f32 %v2616_v4, %v1490_v40 }
 0x11d   : > { %1816 = vst [vmem:[%s2622_s7 + $0x2c0] sm:$0xff] %v1688_v42  ;;  %1755 = vst [vmem:[%s2622_s7 + $0xd8] sm:$0xff] %v1627_v43  ;;  %v1689_v47 = vadd.f32 %v2616_v4, %v1554_v44 }
 0x11e   : > { %1819 = vst [vmem:[%s2622_s7 + $0x2d8] sm:$0xff] %v1691_v45  ;;  %1753 = vst [vmem:[%s2622_s7 + $0xc8] sm:$0xff] %v1625_v46  ;;  %v2211_v48 = vpop.f32.mrb[28].mxu0 }
 0x11f   : > { %1817 = vst [vmem:[%s2622_s7 + $0x2c8] sm:$0xff] %v1689_v47  ;;  %v1495_v49 = vmul.f32 %v2211_v48, %v2610_v2  ;;  %v2275_v50 = vpop.f32.mrb[28].mxu1  ;;  %v1059_v51 = vpop.f32.mrb[29].mxu0 }
 0x120   : > { %v1559_v52 = vmul.f32 %v2275_v50, %v2610_v2  ;;  %v1493_v53 = vmul.f32 %v2610_v2, %v1059_v51  ;;  %v1315_v54 = vpop.f32.mrb[29].mxu1  ;;  %v2212_v55 = vpop.f32.mrb[30].mxu0 }
 0x121   : > { %v1630_v56 = vadd.f32 %v2616_v4, %v1495_v49  ;;  %v1557_v57 = vmul.f32 %v2610_v2, %v1315_v54  ;;  %v1496_v58 = vmul.f32 %v2212_v55, %v2610_v2  ;;  %v2276_v59 = vpop.f32.mrb[30].mxu1  ;;  %v1062_v60 = vpop.f32.mrb[31].mxu0 }
 0x122   : > { %v1694_v61 = vadd.f32 %v2616_v4, %v1559_v52  ;;  %v1628_v62 = vadd.f32 %v2616_v4, %v1493_v53  ;;  %v1560_v63 = vmul.f32 %v2276_v59, %v2610_v2  ;;  %v1494_v0 = vmul.f32 %v2610_v2, %v1062_v60  ;;  %v1318_v1 = vpop.f32.mrb[31].mxu1 }
 0x123   : > { %1758 = vst [vmem:[%s2622_s7 + $0xf0] sm:$0xff] %v1630_v56  ;;  %v1692_v3 = vadd.f32 %v2616_v4, %v1557_v57  ;;  %v1631_v5 = vadd.f32 %v2616_v4, %v1496_v58  ;;  %v1558_v6 = vmul.f32 %v2610_v2, %v1318_v1 }
 0x124   : > { %1822 = vst [vmem:[%s2622_s7 + $0x2f0] sm:$0xff] %v1694_v61  ;;  %1756 = vst [vmem:[%s2622_s7 + $0xe0] sm:$0xff] %v1628_v62  ;;  %v1695_v7 = vadd.f32 %v2616_v4, %v1560_v63  ;;  %v1629_v8 = vadd.f32 %v2616_v4, %v1494_v0 }
 0x125   : > { %1820 = vst [vmem:[%s2622_s7 + $0x2e0] sm:$0xff] %v1692_v3  ;;  %1759 = vst [vmem:[%s2622_s7 + $0xf8] sm:$0xff] %v1631_v5  ;;  %v1693_v9 = vadd.f32 %v2616_v4, %v1558_v6 }
 0x126   : > { %1823 = vst [vmem:[%s2622_s7 + $0x2f8] sm:$0xff] %v1695_v7  ;;  %1757 = vst [vmem:[%s2622_s7 + $0xe8] sm:$0xff] %v1629_v8  ;;  %v2215_v10 = vpop.f32.mrb[32].mxu0 }
 0x127   : > { %1821 = vst [vmem:[%s2622_s7 + $0x2e8] sm:$0xff] %v1693_v9  ;;  %v1499_v11 = vmul.f32 %v2215_v10, %v2610_v2  ;;  %v2279_v12 = vpop.f32.mrb[32].mxu1  ;;  %v1075_v13 = vpop.f32.mrb[33].mxu0 }
 0x128   : > { %v1563_v14 = vmul.f32 %v2279_v12, %v2610_v2  ;;  %v1497_v15 = vmul.f32 %v2610_v2, %v1075_v13  ;;  %v1331_v16 = vpop.f32.mrb[33].mxu1  ;;  %v2216_v17 = vpop.f32.mrb[34].mxu0 }
 0x129   : > { %v1634_v18 = vadd.f32 %v2616_v4, %v1499_v11  ;;  %v1561_v19 = vmul.f32 %v2610_v2, %v1331_v16  ;;  %v1500_v20 = vmul.f32 %v2216_v17, %v2610_v2  ;;  %v2280_v21 = vpop.f32.mrb[34].mxu1  ;;  %v1078_v22 = vpop.f32.mrb[35].mxu0 }
 0x12a   : > { %v1698_v23 = vadd.f32 %v2616_v4, %v1563_v14  ;;  %v1632_v24 = vadd.f32 %v2616_v4, %v1497_v15  ;;  %v1564_v25 = vmul.f32 %v2280_v21, %v2610_v2  ;;  %v1498_v26 = vmul.f32 %v2610_v2, %v1078_v22  ;;  %v1334_v27 = vpop.f32.mrb[35].mxu1 }
 0x12b   : > { %1762 = vst [vmem:[%s2622_s7 + $0x110] sm:$0xff] %v1634_v18  ;;  %v1696_v28 = vadd.f32 %v2616_v4, %v1561_v19  ;;  %v1635_v29 = vadd.f32 %v2616_v4, %v1500_v20  ;;  %v1562_v30 = vmul.f32 %v2610_v2, %v1334_v27 }
 0x12c   : > { %1826 = vst [vmem:[%s2622_s7 + $0x310] sm:$0xff] %v1698_v23  ;;  %1760 = vst [vmem:[%s2622_s7 + $0x100] sm:$0xff] %v1632_v24  ;;  %v1699_v31 = vadd.f32 %v2616_v4, %v1564_v25  ;;  %v1633_v32 = vadd.f32 %v2616_v4, %v1498_v26 }
 0x12d   : > { %1824 = vst [vmem:[%s2622_s7 + $0x300] sm:$0xff] %v1696_v28  ;;  %1763 = vst [vmem:[%s2622_s7 + $0x118] sm:$0xff] %v1635_v29  ;;  %v1697_v33 = vadd.f32 %v2616_v4, %v1562_v30 }
 0x12e   : > { %1827 = vst [vmem:[%s2622_s7 + $0x318] sm:$0xff] %v1699_v31  ;;  %1761 = vst [vmem:[%s2622_s7 + $0x108] sm:$0xff] %v1633_v32  ;;  %v2219_v34 = vpop.f32.mrb[36].mxu0 }
 0x12f   : > { %1825 = vst [vmem:[%s2622_s7 + $0x308] sm:$0xff] %v1697_v33  ;;  %v1503_v35 = vmul.f32 %v2219_v34, %v2610_v2  ;;  %v2283_v36 = vpop.f32.mrb[36].mxu1  ;;  %v1091_v37 = vpop.f32.mrb[37].mxu0 }
 0x130   : > { %v1567_v38 = vmul.f32 %v2283_v36, %v2610_v2  ;;  %v1501_v39 = vmul.f32 %v2610_v2, %v1091_v37  ;;  %v1347_v40 = vpop.f32.mrb[37].mxu1  ;;  %v2220_v41 = vpop.f32.mrb[38].mxu0 }
 0x131   : > { %v1638_v42 = vadd.f32 %v2616_v4, %v1503_v35  ;;  %v1565_v43 = vmul.f32 %v2610_v2, %v1347_v40  ;;  %v1504_v44 = vmul.f32 %v2220_v41, %v2610_v2  ;;  %v2284_v45 = vpop.f32.mrb[38].mxu1  ;;  %v1094_v46 = vpop.f32.mrb[39].mxu0 }
 0x132   : > { %v1702_v47 = vadd.f32 %v2616_v4, %v1567_v38  ;;  %v1636_v48 = vadd.f32 %v2616_v4, %v1501_v39  ;;  %v1568_v49 = vmul.f32 %v2284_v45, %v2610_v2  ;;  %v1502_v50 = vmul.f32 %v2610_v2, %v1094_v46  ;;  %v1350_v51 = vpop.f32.mrb[39].mxu1 }
 0x133   : > { %1766 = vst [vmem:[%s2622_s7 + $0x130] sm:$0xff] %v1638_v42  ;;  %v1700_v52 = vadd.f32 %v2616_v4, %v1565_v43  ;;  %v1639_v53 = vadd.f32 %v2616_v4, %v1504_v44  ;;  %v1566_v54 = vmul.f32 %v2610_v2, %v1350_v51 }
 0x134   : > { %1830 = vst [vmem:[%s2622_s7 + $0x330] sm:$0xff] %v1702_v47  ;;  %1764 = vst [vmem:[%s2622_s7 + $0x120] sm:$0xff] %v1636_v48  ;;  %v1703_v55 = vadd.f32 %v2616_v4, %v1568_v49  ;;  %v1637_v56 = vadd.f32 %v2616_v4, %v1502_v50 }
 0x135   : > { %1828 = vst [vmem:[%s2622_s7 + $0x320] sm:$0xff] %v1700_v52  ;;  %1767 = vst [vmem:[%s2622_s7 + $0x138] sm:$0xff] %v1639_v53  ;;  %v1701_v57 = vadd.f32 %v2616_v4, %v1566_v54 }
 0x136   : > { %1831 = vst [vmem:[%s2622_s7 + $0x338] sm:$0xff] %v1703_v55  ;;  %1765 = vst [vmem:[%s2622_s7 + $0x128] sm:$0xff] %v1637_v56  ;;  %v2223_v58 = vpop.f32.mrb[40].mxu0 }
 0x137   : > { %1829 = vst [vmem:[%s2622_s7 + $0x328] sm:$0xff] %v1701_v57  ;;  %v1507_v59 = vmul.f32 %v2223_v58, %v2610_v2  ;;  %v2287_v60 = vpop.f32.mrb[40].mxu1  ;;  %v1107_v61 = vpop.f32.mrb[41].mxu0 }
 0x138   : > { %v1571_v62 = vmul.f32 %v2287_v60, %v2610_v2  ;;  %v1505_v63 = vmul.f32 %v2610_v2, %v1107_v61  ;;  %v1363_v0 = vpop.f32.mrb[41].mxu1  ;;  %v2224_v1 = vpop.f32.mrb[42].mxu0 }
 0x139   : > { %v1642_v3 = vadd.f32 %v2616_v4, %v1507_v59  ;;  %v1569_v5 = vmul.f32 %v2610_v2, %v1363_v0  ;;  %v1508_v6 = vmul.f32 %v2224_v1, %v2610_v2  ;;  %v2288_v7 = vpop.f32.mrb[42].mxu1  ;;  %v1110_v8 = vpop.f32.mrb[43].mxu0 }
 0x13a   : > { %v1706_v9 = vadd.f32 %v2616_v4, %v1571_v62  ;;  %v1640_v10 = vadd.f32 %v2616_v4, %v1505_v63  ;;  %v1572_v11 = vmul.f32 %v2288_v7, %v2610_v2  ;;  %v1506_v12 = vmul.f32 %v2610_v2, %v1110_v8  ;;  %v1366_v13 = vpop.f32.mrb[43].mxu1 }
 0x13b   : > { %1770 = vst [vmem:[%s2622_s7 + $0x150] sm:$0xff] %v1642_v3  ;;  %v1704_v14 = vadd.f32 %v2616_v4, %v1569_v5  ;;  %v1643_v15 = vadd.f32 %v2616_v4, %v1508_v6  ;;  %v1570_v16 = vmul.f32 %v2610_v2, %v1366_v13 }
 0x13c   : > { %1834 = vst [vmem:[%s2622_s7 + $0x350] sm:$0xff] %v1706_v9  ;;  %1768 = vst [vmem:[%s2622_s7 + $0x140] sm:$0xff] %v1640_v10  ;;  %v1707_v17 = vadd.f32 %v2616_v4, %v1572_v11  ;;  %v1641_v18 = vadd.f32 %v2616_v4, %v1506_v12 }
 0x13d   : > { %1832 = vst [vmem:[%s2622_s7 + $0x340] sm:$0xff] %v1704_v14  ;;  %1771 = vst [vmem:[%s2622_s7 + $0x158] sm:$0xff] %v1643_v15  ;;  %v1705_v19 = vadd.f32 %v2616_v4, %v1570_v16 }
 0x13e   : > { %1835 = vst [vmem:[%s2622_s7 + $0x358] sm:$0xff] %v1707_v17  ;;  %1769 = vst [vmem:[%s2622_s7 + $0x148] sm:$0xff] %v1641_v18  ;;  %v2227_v20 = vpop.f32.mrb[44].mxu0 }
 0x13f   : > { %1833 = vst [vmem:[%s2622_s7 + $0x348] sm:$0xff] %v1705_v19  ;;  %v1511_v21 = vmul.f32 %v2227_v20, %v2610_v2  ;;  %v2291_v22 = vpop.f32.mrb[44].mxu1  ;;  %v1123_v23 = vpop.f32.mrb[45].mxu0 }
 0x140   : > { %v1575_v24 = vmul.f32 %v2291_v22, %v2610_v2  ;;  %v1509_v25 = vmul.f32 %v2610_v2, %v1123_v23  ;;  %v1379_v26 = vpop.f32.mrb[45].mxu1  ;;  %v2228_v27 = vpop.f32.mrb[46].mxu0 }
 0x141   : > { %v1646_v28 = vadd.f32 %v2616_v4, %v1511_v21  ;;  %v1573_v29 = vmul.f32 %v2610_v2, %v1379_v26  ;;  %v1512_v30 = vmul.f32 %v2228_v27, %v2610_v2  ;;  %v2292_v31 = vpop.f32.mrb[46].mxu1  ;;  %v1126_v32 = vpop.f32.mrb[47].mxu0 }
 0x142   : > { %v1710_v33 = vadd.f32 %v2616_v4, %v1575_v24  ;;  %v1644_v34 = vadd.f32 %v2616_v4, %v1509_v25  ;;  %v1576_v35 = vmul.f32 %v2292_v31, %v2610_v2  ;;  %v1510_v36 = vmul.f32 %v2610_v2, %v1126_v32  ;;  %v1382_v37 = vpop.f32.mrb[47].mxu1 }
 0x143   : > { %1774 = vst [vmem:[%s2622_s7 + $0x170] sm:$0xff] %v1646_v28  ;;  %v1708_v38 = vadd.f32 %v2616_v4, %v1573_v29  ;;  %v1647_v39 = vadd.f32 %v2616_v4, %v1512_v30  ;;  %v1574_v40 = vmul.f32 %v2610_v2, %v1382_v37 }
 0x144   : > { %1838 = vst [vmem:[%s2622_s7 + $0x370] sm:$0xff] %v1710_v33  ;;  %1772 = vst [vmem:[%s2622_s7 + $0x160] sm:$0xff] %v1644_v34  ;;  %v1711_v41 = vadd.f32 %v2616_v4, %v1576_v35  ;;  %v1645_v42 = vadd.f32 %v2616_v4, %v1510_v36 }
 0x145   : > { %1836 = vst [vmem:[%s2622_s7 + $0x360] sm:$0xff] %v1708_v38  ;;  %1775 = vst [vmem:[%s2622_s7 + $0x178] sm:$0xff] %v1647_v39  ;;  %v1709_v43 = vadd.f32 %v2616_v4, %v1574_v40 }
 0x146   : > { %1839 = vst [vmem:[%s2622_s7 + $0x378] sm:$0xff] %v1711_v41  ;;  %1773 = vst [vmem:[%s2622_s7 + $0x168] sm:$0xff] %v1645_v42  ;;  %v2231_v44 = vpop.f32.mrb[48].mxu0 }
 0x147   : > { %1837 = vst [vmem:[%s2622_s7 + $0x368] sm:$0xff] %v1709_v43  ;;  %v1515_v45 = vmul.f32 %v2231_v44, %v2610_v2  ;;  %v2295_v46 = vpop.f32.mrb[48].mxu1  ;;  %v1139_v47 = vpop.f32.mrb[49].mxu0 }
 0x148   : > { %v1579_v48 = vmul.f32 %v2295_v46, %v2610_v2  ;;  %v1513_v49 = vmul.f32 %v2610_v2, %v1139_v47  ;;  %v1395_v50 = vpop.f32.mrb[49].mxu1  ;;  %v2232_v51 = vpop.f32.mrb[50].mxu0 }
 0x149   : > { %v1650_v52 = vadd.f32 %v2616_v4, %v1515_v45  ;;  %v1577_v53 = vmul.f32 %v2610_v2, %v1395_v50  ;;  %v1516_v54 = vmul.f32 %v2232_v51, %v2610_v2  ;;  %v2296_v55 = vpop.f32.mrb[50].mxu1  ;;  %v1142_v56 = vpop.f32.mrb[51].mxu0 }
 0x14a   : > { %v1714_v57 = vadd.f32 %v2616_v4, %v1579_v48  ;;  %v1648_v58 = vadd.f32 %v2616_v4, %v1513_v49  ;;  %v1580_v59 = vmul.f32 %v2296_v55, %v2610_v2  ;;  %v1514_v60 = vmul.f32 %v2610_v2, %v1142_v56  ;;  %v1398_v61 = vpop.f32.mrb[51].mxu1 }
 0x14b   : > { %1778 = vst [vmem:[%s2622_s7 + $0x190] sm:$0xff] %v1650_v52  ;;  %v1712_v62 = vadd.f32 %v2616_v4, %v1577_v53  ;;  %v1651_v63 = vadd.f32 %v2616_v4, %v1516_v54  ;;  %v1578_v0 = vmul.f32 %v2610_v2, %v1398_v61 }
 0x14c   : > { %1842 = vst [vmem:[%s2622_s7 + $0x390] sm:$0xff] %v1714_v57  ;;  %1776 = vst [vmem:[%s2622_s7 + $0x180] sm:$0xff] %v1648_v58  ;;  %v1715_v1 = vadd.f32 %v2616_v4, %v1580_v59  ;;  %v1649_v3 = vadd.f32 %v2616_v4, %v1514_v60 }
 0x14d   : > { %1840 = vst [vmem:[%s2622_s7 + $0x380] sm:$0xff] %v1712_v62  ;;  %1779 = vst [vmem:[%s2622_s7 + $0x198] sm:$0xff] %v1651_v63  ;;  %v1713_v5 = vadd.f32 %v2616_v4, %v1578_v0 }
 0x14e   : > { %1843 = vst [vmem:[%s2622_s7 + $0x398] sm:$0xff] %v1715_v1  ;;  %1777 = vst [vmem:[%s2622_s7 + $0x188] sm:$0xff] %v1649_v3  ;;  %v2235_v6 = vpop.f32.mrb[52].mxu0 }
 0x14f   : > { %1841 = vst [vmem:[%s2622_s7 + $0x388] sm:$0xff] %v1713_v5  ;;  %v1519_v7 = vmul.f32 %v2235_v6, %v2610_v2  ;;  %v2299_v8 = vpop.f32.mrb[52].mxu1  ;;  %v1155_v9 = vpop.f32.mrb[53].mxu0 }
 0x150   : > { %v1583_v10 = vmul.f32 %v2299_v8, %v2610_v2  ;;  %v1517_v11 = vmul.f32 %v2610_v2, %v1155_v9  ;;  %v1411_v12 = vpop.f32.mrb[53].mxu1  ;;  %v2236_v13 = vpop.f32.mrb[54].mxu0 }
 0x151   : > { %v1654_v14 = vadd.f32 %v2616_v4, %v1519_v7  ;;  %v1581_v15 = vmul.f32 %v2610_v2, %v1411_v12  ;;  %v1520_v16 = vmul.f32 %v2236_v13, %v2610_v2  ;;  %v2300_v17 = vpop.f32.mrb[54].mxu1  ;;  %v1158_v18 = vpop.f32.mrb[55].mxu0 }
 0x152   : > { %v1718_v19 = vadd.f32 %v2616_v4, %v1583_v10  ;;  %v1652_v20 = vadd.f32 %v2616_v4, %v1517_v11  ;;  %v1584_v21 = vmul.f32 %v2300_v17, %v2610_v2  ;;  %v1518_v22 = vmul.f32 %v2610_v2, %v1158_v18  ;;  %v1414_v23 = vpop.f32.mrb[55].mxu1 }
 0x153   : > { %1782 = vst [vmem:[%s2622_s7 + $0x1b0] sm:$0xff] %v1654_v14  ;;  %v1716_v24 = vadd.f32 %v2616_v4, %v1581_v15  ;;  %v1655_v25 = vadd.f32 %v2616_v4, %v1520_v16  ;;  %v1582_v26 = vmul.f32 %v2610_v2, %v1414_v23 }
 0x154   : > { %1846 = vst [vmem:[%s2622_s7 + $0x3b0] sm:$0xff] %v1718_v19  ;;  %1780 = vst [vmem:[%s2622_s7 + $0x1a0] sm:$0xff] %v1652_v20  ;;  %v1719_v27 = vadd.f32 %v2616_v4, %v1584_v21  ;;  %v1653_v28 = vadd.f32 %v2616_v4, %v1518_v22 }
 0x155   : > { %1844 = vst [vmem:[%s2622_s7 + $0x3a0] sm:$0xff] %v1716_v24  ;;  %1783 = vst [vmem:[%s2622_s7 + $0x1b8] sm:$0xff] %v1655_v25  ;;  %v1717_v29 = vadd.f32 %v2616_v4, %v1582_v26 }
 0x156   : > { %1847 = vst [vmem:[%s2622_s7 + $0x3b8] sm:$0xff] %v1719_v27  ;;  %1781 = vst [vmem:[%s2622_s7 + $0x1a8] sm:$0xff] %v1653_v28  ;;  %v2239_v30 = vpop.f32.mrb[56].mxu0 }
 0x157   : > { %1845 = vst [vmem:[%s2622_s7 + $0x3a8] sm:$0xff] %v1717_v29  ;;  %v1523_v31 = vmul.f32 %v2239_v30, %v2610_v2  ;;  %v2303_v32 = vpop.f32.mrb[56].mxu1  ;;  %v1171_v33 = vpop.f32.mrb[57].mxu0 }
 0x158   : > { %v1587_v34 = vmul.f32 %v2303_v32, %v2610_v2  ;;  %v1521_v35 = vmul.f32 %v2610_v2, %v1171_v33  ;;  %v1427_v36 = vpop.f32.mrb[57].mxu1  ;;  %v2240_v37 = vpop.f32.mrb[58].mxu0 }
 0x159   : > { %v1658_v38 = vadd.f32 %v2616_v4, %v1523_v31  ;;  %v1585_v39 = vmul.f32 %v2610_v2, %v1427_v36  ;;  %v1524_v40 = vmul.f32 %v2240_v37, %v2610_v2  ;;  %v2304_v41 = vpop.f32.mrb[58].mxu1  ;;  %v1174_v42 = vpop.f32.mrb[59].mxu0 }
 0x15a   : > { %v1722_v43 = vadd.f32 %v2616_v4, %v1587_v34  ;;  %v1656_v44 = vadd.f32 %v2616_v4, %v1521_v35  ;;  %v1588_v45 = vmul.f32 %v2304_v41, %v2610_v2  ;;  %v1522_v46 = vmul.f32 %v2610_v2, %v1174_v42  ;;  %v1430_v47 = vpop.f32.mrb[59].mxu1 }
 0x15b   : > { %1786 = vst [vmem:[%s2622_s7 + $0x1d0] sm:$0xff] %v1658_v38  ;;  %v1720_v48 = vadd.f32 %v2616_v4, %v1585_v39  ;;  %v1659_v49 = vadd.f32 %v2616_v4, %v1524_v40  ;;  %v1586_v50 = vmul.f32 %v2610_v2, %v1430_v47 }
 0x15c   : > { %1850 = vst [vmem:[%s2622_s7 + $0x3d0] sm:$0xff] %v1722_v43  ;;  %1784 = vst [vmem:[%s2622_s7 + $0x1c0] sm:$0xff] %v1656_v44  ;;  %v1723_v51 = vadd.f32 %v2616_v4, %v1588_v45  ;;  %v1657_v52 = vadd.f32 %v2616_v4, %v1522_v46 }
 0x15d   : > { %1848 = vst [vmem:[%s2622_s7 + $0x3c0] sm:$0xff] %v1720_v48  ;;  %1787 = vst [vmem:[%s2622_s7 + $0x1d8] sm:$0xff] %v1659_v49  ;;  %v1721_v53 = vadd.f32 %v2616_v4, %v1586_v50 }
 0x15e   : > { %1851 = vst [vmem:[%s2622_s7 + $0x3d8] sm:$0xff] %v1723_v51  ;;  %1785 = vst [vmem:[%s2622_s7 + $0x1c8] sm:$0xff] %v1657_v52  ;;  %v2243_v54 = vpop.f32.mrb[60].mxu0 }
 0x15f   : > { %1849 = vst [vmem:[%s2622_s7 + $0x3c8] sm:$0xff] %v1721_v53  ;;  %v1527_v55 = vmul.f32 %v2243_v54, %v2610_v2  ;;  %v2307_v56 = vpop.f32.mrb[60].mxu1  ;;  %v1187_v57 = vpop.f32.mrb[61].mxu0 }
 0x160   : > { %v1591_v58 = vmul.f32 %v2307_v56, %v2610_v2  ;;  %v1525_v59 = vmul.f32 %v2610_v2, %v1187_v57  ;;  %v1443_v60 = vpop.f32.mrb[61].mxu1  ;;  %v2244_v61 = vpop.f32.mrb[62].mxu0 }
 0x161   : > { %v1662_v62 = vadd.f32 %v2616_v4, %v1527_v55  ;;  %v1589_v63 = vmul.f32 %v2610_v2, %v1443_v60  ;;  %v1528_v0 = vmul.f32 %v2244_v61, %v2610_v2  ;;  %v2308_v1 = vpop.f32.mrb[62].mxu1  ;;  %v1190_v3 = vpop.f32.mrb[63].mxu0 }
 0x162   : > { %v1726_v5 = vadd.f32 %v2616_v4, %v1591_v58  ;;  %v1660_v6 = vadd.f32 %v2616_v4, %v1525_v59  ;;  %v1592_v7 = vmul.f32 %v2308_v1, %v2610_v2  ;;  %v1526_v8 = vmul.f32 %v2610_v2, %v1190_v3  ;;  %v1446_v9 = vpop.f32.mrb[63].mxu1 }
 0x163   : > { %1790 = vst [vmem:[%s2622_s7 + $0x1f0] sm:$0xff] %v1662_v62  ;;  %v1724_v10 = vadd.f32 %v2616_v4, %v1589_v63  ;;  %v1663_v11 = vadd.f32 %v2616_v4, %v1528_v0  ;;  %v1590_v12 = vmul.f32 %v2610_v2, %v1446_v9 }
 0x164   : > { %1854 = vst [vmem:[%s2622_s7 + $0x3f0] sm:$0xff] %v1726_v5  ;;  %1788 = vst [vmem:[%s2622_s7 + $0x1e0] sm:$0xff] %v1660_v6  ;;  %v1727_v13 = vadd.f32 %v2616_v4, %v1592_v7  ;;  %v1661_v14 = vadd.f32 %v2616_v4, %v1526_v8 }
 0x165   : > { %1852 = vst [vmem:[%s2622_s7 + $0x3e0] sm:$0xff] %v1724_v10  ;;  %1791 = vst [vmem:[%s2622_s7 + $0x1f8] sm:$0xff] %v1663_v11  ;;  %v1725_v15 = vadd.f32 %v2616_v4, %v1590_v12 }
 0x166   : > { %1855 = vst [vmem:[%s2622_s7 + $0x3f8] sm:$0xff] %v1727_v13  ;;  %1789 = vst [vmem:[%s2622_s7 + $0x1e8] sm:$0xff] %v1661_v14 }
 0x167   : > { %1853 = vst [vmem:[%s2622_s7 + $0x3e8] sm:$0xff] %v1725_v15 }
 0x168 PF: > { %s14_s17 = sadd.s32 1, %s2423_s17   ;;  %s3021_s15 = smov %s2419_s16 }
 0x169   : > { %p11_p5 = scmp.ge.s32.totalorder %s14_s17, 10   ;;  %s3022_s16 = smov %s3024_s18 }
 0x16b   :  { %13 = sbr.rel (!%p11_p5) target bundleno = 2 (0x2), region = 75 }

</bundles_post_ra>
